<compile_context>
chip_gen: v6e
topology: v6e:2x2x1
jax: 0.10.0
libtpu: 0.0.40
codegen_flags: <defaults>
</compile_context>

<pallas_src>
import math
import jax
import jax.numpy as jnp
from jax import lax
from jax.experimental import pallas as pl
from jax.experimental.pallas import tpu as pltpu

# ---------------- model hyper-parameters (small, synthetic) ----------------
B = 2          # batch
C = 3          # channels (normalize_images assumes 3)
H = W = 16     # spatial
PATCH = 4      # patch size
NPH = H // PATCH
NPW = W // PATCH
N = NPH * NPW          # tokens per image = 16
BN = B * N             # tokens in the folded batch = 32
P = C * PATCH * PATCH  # flattened patch dim = 48
D = 32                 # embed dim
NUM_HEADS = 4
HD = D // NUM_HEADS
MLP = 4 * D
L = 2                  # number of transformer blocks
EPS = 1e-5
SCALE = 1.0 / math.sqrt(HD)

# ImageNet normalization constants used by the Swin AutoImageProcessor
IMAGE_MEAN = jnp.array([0.485, 0.456, 0.406], dtype=jnp.float32)
IMAGE_STD = jnp.array([0.229, 0.224, 0.225], dtype=jnp.float32)


def _layer_norm(x, g, b):
    mu = jnp.mean(x, axis=-1, keepdims=True)
    xc = x - mu
    var = jnp.mean(xc * xc, axis=-1, keepdims=True)
    return xc * lax.rsqrt(var + EPS) * g + b


def vision_encoder_kernel(
    x_ref,                     # (BN, P)   f32  raw (un-normalized) patches
    mask_ref,                  # (BN, BN)  f32  block-diagonal additive mask
    wp_ref, bp_ref,            # (P, D) bf16, (1, D) f32   (image norm folded in)
    peg_ref, peb_ref,          # (1, D) f32
    ln1g_ref, ln1b_ref,        # (L, 1, D) f32
    wqkv_ref, bqkv_ref,        # (L, D, 3D) bf16, (L, 1, 3D) f32  (Q-scale folded in)
    wo_ref, bo_ref,            # (L*NUM_HEADS, HD, D) bf16, (L, 1, D) f32
    ln2g_ref, ln2b_ref,        # (L, 1, D) f32
    wm1_ref, bm1_ref,          # (L, D, MLP) bf16, (L, 1, MLP) f32
    wm2_ref, bm2_ref,          # (L, MLP, D) bf16, (L, 1, D) f32
    lnfg_ref, lnfb_ref,        # (1, D) f32
    out_ref,                   # (B, D) f32
):
    # ---- patch embedding (stride-PATCH conv as a matmul; img-norm pre-folded) ----
    x = x_ref[...].astype(jnp.bfloat16)                           # (BN, P)
    h = jnp.dot(x, wp_ref[...], preferred_element_type=jnp.float32) + bp_ref[...]
    h = _layer_norm(h, peg_ref[...], peb_ref[...])                # (BN, D) f32

    attn_bias = mask_ref[...]                                     # (BN, BN) f32

    # ---- transformer blocks ----
    for l in range(L):
        # ---- multi-head self-attention, whole batch folded ----
        y = _layer_norm(h, ln1g_ref[l], ln1b_ref[l]).astype(jnp.bfloat16)
        # fused QKV projection: one lane-dense (BN, D) @ (D, 3D) matmul
        qkv = jnp.dot(y, wqkv_ref[l],
                      preferred_element_type=jnp.float32) + bqkv_ref[l]   # (BN, 3D)

        attn = jnp.zeros((BN, D), jnp.float32)
        for hh in range(NUM_HEADS):
            q = qkv[:, hh * HD:(hh + 1) * HD].astype(jnp.bfloat16)             # (BN, HD)
            k = qkv[:, D + hh * HD:D + (hh + 1) * HD].astype(jnp.bfloat16)     # (BN, HD)
            v = qkv[:, 2 * D + hh * HD:2 * D + (hh + 1) * HD].astype(jnp.bfloat16)
            # q @ k^T without materializing a transpose: contract the HD axes.
            # Cross-image interactions are killed by the -1e9 block-diagonal mask,
            # so this is exactly per-image attention (Q already carries 1/sqrt(HD)).
            s = lax.dot_general(
                q, k, dimension_numbers=(((1,), (1,)), ((), ())),
                preferred_element_type=jnp.float32) + attn_bias             # (BN, BN)
            s = s - jnp.max(s, axis=-1, keepdims=True)
            p = jnp.exp(s)
            p = p * pl.reciprocal(jnp.sum(p, axis=-1, keepdims=True), approx=True)
            ho = jnp.dot(p.astype(jnp.bfloat16), v,
                         preferred_element_type=jnp.float32)                 # (BN, HD)
            # fused output projection: accumulate head_out @ Wo[head] directly
            attn = attn + jnp.dot(ho.astype(jnp.bfloat16),
                                  wo_ref[l * NUM_HEADS + hh],
                                  preferred_element_type=jnp.float32)
        h = h + attn + bo_ref[l]

        # ---- MLP (lane-dense: hidden dim = 128) ----
        y2 = _layer_norm(h, ln2g_ref[l], ln2b_ref[l]).astype(jnp.bfloat16)
        m = jnp.dot(y2, wm1_ref[l], preferred_element_type=jnp.float32) + bm1_ref[l]
        m = jax.nn.gelu(m, approximate=True)   # TODO(synk): HF Swin uses exact erf GELU
        m = jnp.dot(m.astype(jnp.bfloat16), wm2_ref[l],
                    preferred_element_type=jnp.float32) + bm2_ref[l]
        h = h + m

    # ---- final LN + mean over the sequence dim of each image ----
    hf = _layer_norm(h, lnfg_ref[...], lnfb_ref[...])             # (BN, D)
    pooled = [jnp.mean(hf[b * N:(b + 1) * N, :], axis=0, keepdims=True)
              for b in range(B)]
    out_ref[...] = jnp.concatenate(pooled, axis=0)                # single (B, D) store


def init_params(key):
    ks = jax.random.split(key, 8)
    sigma = 0.02
    return dict(
        wp=sigma * jax.random.normal(ks[0], (P, D), jnp.float32),
        bp=jnp.zeros((1, D), jnp.float32),
        peg=jnp.ones((1, D), jnp.float32),
        peb=jnp.zeros((1, D), jnp.float32),
        ln1g=jnp.ones((L, 1, D), jnp.float32),
        ln1b=jnp.zeros((L, 1, D), jnp.float32),
        wqkv=sigma * jax.random.normal(ks[1], (L, D, 3 * D), jnp.float32),
        bqkv=jnp.zeros((L, 1, 3 * D), jnp.float32),
        wo=sigma * jax.random.normal(ks[2], (L, D, D), jnp.float32),
        bo=jnp.zeros((L, 1, D), jnp.float32),
        ln2g=jnp.ones((L, 1, D), jnp.float32),
        ln2b=jnp.zeros((L, 1, D), jnp.float32),
        wm1=sigma * jax.random.normal(ks[3], (L, D, MLP), jnp.float32),
        bm1=jnp.zeros((L, 1, MLP), jnp.float32),
        wm2=sigma * jax.random.normal(ks[4], (L, MLP, D), jnp.float32),
        bm2=jnp.zeros((L, 1, D), jnp.float32),
        lnfg=jnp.ones((1, D), jnp.float32),
        lnfb=jnp.zeros((1, D), jnp.float32),
    )


def vision_encoder_forward(images, params):
    """images: (B, 3, H, W) NCHW (cast to f32).  Returns (B, D) pooled embeddings."""
    x = images.astype(jnp.float32)
    assert x.shape == (B, C, H, W)

    # im2col for the stride-PATCH patch-embed conv; flatten order (c, ph, pw)
    # matches PyTorch Conv2d weight layout (D, C, p, p).  Whole batch folded.
    patches = (
        x.reshape(B, C, NPH, PATCH, NPW, PATCH)
        .transpose(0, 2, 4, 1, 3, 5)
        .reshape(BN, P)
    )

    # Fold the ImageNet (x - mean)/std normalization into the patch-embed weights:
    #   ((x - m)/s) @ Wp + bp  ==  x @ (Wp / s) + (bp - (m/s) @ Wp)
    mean_flat = jnp.repeat(IMAGE_MEAN, PATCH * PATCH)             # (P,)
    std_flat = jnp.repeat(IMAGE_STD, PATCH * PATCH)               # (P,)
    wp_eff = (params["wp"] / std_flat[:, None]).astype(jnp.bfloat16)
    bp_eff = params["bp"] - (mean_flat / std_flat)[None, :] @ params["wp"]

    # Fold the 1/sqrt(head_dim) attention scale into the Q columns of the fused QKV
    # projection (columns [0:D] are Q, [D:2D] K, [2D:3D] V; head h owns the HD-wide
    # sub-block h*HD:(h+1)*HD of each — the natural head split).
    col_scale = jnp.concatenate([jnp.full((D,), SCALE, jnp.float32),
                                 jnp.ones((2 * D,), jnp.float32)])
    wqkv_eff = (params["wqkv"] * col_scale[None, None, :]).astype(jnp.bfloat16)
    bqkv_eff = params["bqkv"] * col_scale[None, None, :]

    # Output projection split per head on the weight side: (L, D, D) -> (L*NH, HD, D).
    wo_h = params["wo"].reshape(L * NUM_HEADS, HD, D).astype(jnp.bfloat16)

    wm1 = params["wm1"].astype(jnp.bfloat16)
    wm2 = params["wm2"].astype(jnp.bfloat16)

    # Block-diagonal additive mask so that the batch-folded score matmul stays
    # exactly per-image attention.
    img_id = jnp.repeat(jnp.arange(B, dtype=jnp.int32), N)        # (BN,)
    attn_bias = jnp.where(img_id[:, None] == img_id[None, :],
                          0.0, -1e9).astype(jnp.float32)          # (BN, BN)

    args = (
        patches, attn_bias, wp_eff, bp_eff, params["peg"], params["peb"],
        params["ln1g"], params["ln1b"],
        wqkv_eff, bqkv_eff, wo_h, params["bo"],
        params["ln2g"], params["ln2b"],
        wm1, params["bm1"], wm2, params["bm2"],
        params["lnfg"], params["lnfb"],
    )

    vmem = pl.BlockSpec(memory_space=pltpu.MemorySpace.VMEM)
    out = pl.pallas_call(
        vision_encoder_kernel,
        out_shape=jax.ShapeDtypeStruct((B, D), jnp.float32),
        in_specs=[vmem] * len(args),
        out_specs=vmem,
    )(*args)
    return out   # == outputs.last_hidden_state.mean(dim=1)


if __name__ == "__main__":
    key = jax.random.PRNGKey(0)
    k_img, k_par = jax.random.split(key)
    images = jax.random.uniform(k_img, (B, C, H, W), dtype=jnp.float32)
    params = init_params(k_par)

    out = vision_encoder_forward(images, params)
    jax.block_until_ready(out)
    assert out.shape == (B, D) and out.dtype == jnp.float32
    assert bool(jnp.all(jnp.isfinite(out)))
    print("KERNEL_OK")
</pallas_src>

<mosaic_0001>
module attributes {stable_mosaic.version = 11 : i64} {
  func.func @vision_encoder_kernel(%arg0: memref<32x48xf32, #tpu.memory_space<vmem>>, %arg1: memref<32x32xf32, #tpu.memory_space<vmem>>, %arg2: memref<48x32xbf16, #tpu.memory_space<vmem>>, %arg3: memref<1x32xf32, #tpu.memory_space<vmem>>, %arg4: memref<1x32xf32, #tpu.memory_space<vmem>>, %arg5: memref<1x32xf32, #tpu.memory_space<vmem>>, %arg6: memref<2x1x32xf32, #tpu.memory_space<vmem>>, %arg7: memref<2x1x32xf32, #tpu.memory_space<vmem>>, %arg8: memref<2x32x96xbf16, #tpu.memory_space<vmem>>, %arg9: memref<2x1x96xf32, #tpu.memory_space<vmem>>, %arg10: memref<8x8x32xbf16, #tpu.memory_space<vmem>>, %arg11: memref<2x1x32xf32, #tpu.memory_space<vmem>>, %arg12: memref<2x1x32xf32, #tpu.memory_space<vmem>>, %arg13: memref<2x1x32xf32, #tpu.memory_space<vmem>>, %arg14: memref<2x32x128xbf16, #tpu.memory_space<vmem>>, %arg15: memref<2x1x128xf32, #tpu.memory_space<vmem>>, %arg16: memref<2x128x32xbf16, #tpu.memory_space<vmem>>, %arg17: memref<2x1x32xf32, #tpu.memory_space<vmem>>, %arg18: memref<1x32xf32, #tpu.memory_space<vmem>>, %arg19: memref<1x32xf32, #tpu.memory_space<vmem>>, %arg20: memref<2x32xf32, #tpu.memory_space<vmem>>) attributes {dimension_semantics = [], scalar_prefetch = 0 : i64, scratch_operands = 0 : i64, tpu.core_type = #tpu.core_type<tc>} {
    %c0 = arith.constant 0 : index
    %c0_0 = arith.constant 0 : index
    %0 = vector.load %arg0[%c0, %c0_0] : memref<32x48xf32, #tpu.memory_space<vmem>>, vector<32x48xf32>
    %1 = arith.truncf %0 : vector<32x48xf32> to vector<32x48xbf16>
    %c0_1 = arith.constant 0 : index
    %c0_2 = arith.constant 0 : index
    %2 = vector.load %arg2[%c0_1, %c0_2] : memref<48x32xbf16, #tpu.memory_space<vmem>>, vector<48x32xbf16>
    %cst = arith.constant dense<0.000000e+00> : vector<32x32xf32>
    %3 = tpu.matmul %1, %2, %cst {dimension_numbers = #tpu.dot_dimension_numbers<[1], [0], [0], [1], [0, 0, 1, 1], [], []>} : vector<32x48xbf16>, vector<48x32xbf16>, vector<32x32xf32> -> vector<32x32xf32>
    %c0_3 = arith.constant 0 : index
    %c0_4 = arith.constant 0 : index
    %4 = vector.load %arg3[%c0_3, %c0_4] : memref<1x32xf32, #tpu.memory_space<vmem>>, vector<1x32xf32>
    %5 = vector.broadcast %4 : vector<1x32xf32> to vector<32x32xf32>
    %6 = arith.addf %3, %5 : vector<32x32xf32>
    %c0_5 = arith.constant 0 : index
    %c0_6 = arith.constant 0 : index
    %7 = vector.load %arg4[%c0_5, %c0_6] : memref<1x32xf32, #tpu.memory_space<vmem>>, vector<1x32xf32>
    %c0_7 = arith.constant 0 : index
    %c0_8 = arith.constant 0 : index
    %8 = vector.load %arg5[%c0_7, %c0_8] : memref<1x32xf32, #tpu.memory_space<vmem>>, vector<1x32xf32>
    %cst_9 = arith.constant dense<0.000000e+00> : vector<32xf32>
    %9 = vector.multi_reduction <add>, %6, %cst_9 [1] : vector<32x32xf32> to vector<32xf32>
    %10 = vector.shape_cast %9 : vector<32xf32> to vector<32x1xf32>
    %cst_10 = arith.constant 3.200000e+01 : f32
    %11 = vector.broadcast %cst_10 : f32 to vector<32x1xf32>
    %12 = arith.divf %10, %11 : vector<32x1xf32>
    %13 = vector.broadcast %12 : vector<32x1xf32> to vector<32x32xf32>
    %14 = arith.subf %6, %13 : vector<32x32xf32>
    %15 = arith.mulf %14, %14 : vector<32x32xf32>
    %cst_11 = arith.constant dense<0.000000e+00> : vector<32xf32>
    %16 = vector.multi_reduction <add>, %15, %cst_11 [1] : vector<32x32xf32> to vector<32xf32>
    %17 = vector.shape_cast %16 : vector<32xf32> to vector<32x1xf32>
    %cst_12 = arith.constant 3.200000e+01 : f32
    %18 = vector.broadcast %cst_12 : f32 to vector<32x1xf32>
    %19 = arith.divf %17, %18 : vector<32x1xf32>
    %cst_13 = arith.constant 9.99999974E-6 : f32
    %20 = vector.broadcast %cst_13 : f32 to vector<32x1xf32>
    %21 = arith.addf %19, %20 : vector<32x1xf32>
    %22 = math.rsqrt %21 : vector<32x1xf32>
    %23 = vector.broadcast %22 : vector<32x1xf32> to vector<32x32xf32>
    %24 = arith.mulf %14, %23 : vector<32x32xf32>
    %25 = vector.broadcast %7 : vector<1x32xf32> to vector<32x32xf32>
    %26 = arith.mulf %24, %25 : vector<32x32xf32>
    %27 = vector.broadcast %8 : vector<1x32xf32> to vector<32x32xf32>
    %28 = arith.addf %26, %27 : vector<32x32xf32>
    %c0_14 = arith.constant 0 : index
    %c0_15 = arith.constant 0 : index
    %29 = vector.load %arg1[%c0_14, %c0_15] : memref<32x32xf32, #tpu.memory_space<vmem>>, vector<32x32xf32>
    %c0_16 = arith.constant 0 : index
    %c0_17 = arith.constant 0 : index
    %c0_18 = arith.constant 0 : index
    %30 = vector.load %arg6[%c0_16, %c0_17, %c0_18] : memref<2x1x32xf32, #tpu.memory_space<vmem>>, vector<1x1x32xf32>
    %31 = vector.shape_cast %30 : vector<1x1x32xf32> to vector<1x32xf32>
    %c0_19 = arith.constant 0 : index
    %c0_20 = arith.constant 0 : index
    %c0_21 = arith.constant 0 : index
    %32 = vector.load %arg7[%c0_19, %c0_20, %c0_21] : memref<2x1x32xf32, #tpu.memory_space<vmem>>, vector<1x1x32xf32>
    %33 = vector.shape_cast %32 : vector<1x1x32xf32> to vector<1x32xf32>
    %cst_22 = arith.constant dense<0.000000e+00> : vector<32xf32>
    %34 = vector.multi_reduction <add>, %28, %cst_22 [1] : vector<32x32xf32> to vector<32xf32>
    %35 = vector.shape_cast %34 : vector<32xf32> to vector<32x1xf32>
    %cst_23 = arith.constant 3.200000e+01 : f32
    %36 = vector.broadcast %cst_23 : f32 to vector<32x1xf32>
    %37 = arith.divf %35, %36 : vector<32x1xf32>
    %38 = vector.broadcast %37 : vector<32x1xf32> to vector<32x32xf32>
    %39 = arith.subf %28, %38 : vector<32x32xf32>
    %40 = arith.mulf %39, %39 : vector<32x32xf32>
    %cst_24 = arith.constant dense<0.000000e+00> : vector<32xf32>
    %41 = vector.multi_reduction <add>, %40, %cst_24 [1] : vector<32x32xf32> to vector<32xf32>
    %42 = vector.shape_cast %41 : vector<32xf32> to vector<32x1xf32>
    %cst_25 = arith.constant 3.200000e+01 : f32
    %43 = vector.broadcast %cst_25 : f32 to vector<32x1xf32>
    %44 = arith.divf %42, %43 : vector<32x1xf32>
    %cst_26 = arith.constant 9.99999974E-6 : f32
    %45 = vector.broadcast %cst_26 : f32 to vector<32x1xf32>
    %46 = arith.addf %44, %45 : vector<32x1xf32>
    %47 = math.rsqrt %46 : vector<32x1xf32>
    %48 = vector.broadcast %47 : vector<32x1xf32> to vector<32x32xf32>
    %49 = arith.mulf %39, %48 : vector<32x32xf32>
    %50 = vector.broadcast %31 : vector<1x32xf32> to vector<32x32xf32>
    %51 = arith.mulf %49, %50 : vector<32x32xf32>
    %52 = vector.broadcast %33 : vector<1x32xf32> to vector<32x32xf32>
    %53 = arith.addf %51, %52 : vector<32x32xf32>
    %54 = arith.truncf %53 : vector<32x32xf32> to vector<32x32xbf16>
    %c0_27 = arith.constant 0 : index
    %c0_28 = arith.constant 0 : index
    %c0_29 = arith.constant 0 : index
    %55 = vector.load %arg8[%c0_27, %c0_28, %c0_29] : memref<2x32x96xbf16, #tpu.memory_space<vmem>>, vector<1x32x96xbf16>
    %56 = vector.shape_cast %55 : vector<1x32x96xbf16> to vector<32x96xbf16>
    %cst_30 = arith.constant dense<0.000000e+00> : vector<32x96xf32>
    %57 = tpu.matmul %54, %56, %cst_30 {dimension_numbers = #tpu.dot_dimension_numbers<[1], [0], [0], [1], [0, 0, 1, 1], [], []>} : vector<32x32xbf16>, vector<32x96xbf16>, vector<32x96xf32> -> vector<32x96xf32>
    %c0_31 = arith.constant 0 : index
    %c0_32 = arith.constant 0 : index
    %c0_33 = arith.constant 0 : index
    %58 = vector.load %arg9[%c0_31, %c0_32, %c0_33] : memref<2x1x96xf32, #tpu.memory_space<vmem>>, vector<1x1x96xf32>
    %59 = vector.shape_cast %58 : vector<1x1x96xf32> to vector<1x96xf32>
    %60 = vector.broadcast %59 : vector<1x96xf32> to vector<32x96xf32>
    %61 = arith.addf %57, %60 : vector<32x96xf32>
    %cst_34 = arith.constant 0.000000e+00 : f32
    %62 = vector.broadcast %cst_34 : f32 to vector<32x32xf32>
    %63 = vector.extract_strided_slice %61 {offsets = [0, 0], sizes = [32, 8], strides = [1, 1]} : vector<32x96xf32> to vector<32x8xf32>
    %64 = arith.truncf %63 : vector<32x8xf32> to vector<32x8xbf16>
    %65 = vector.extract_strided_slice %61 {offsets = [0, 32], sizes = [32, 8], strides = [1, 1]} : vector<32x96xf32> to vector<32x8xf32>
    %66 = arith.truncf %65 : vector<32x8xf32> to vector<32x8xbf16>
    %67 = vector.extract_strided_slice %61 {offsets = [0, 64], sizes = [32, 8], strides = [1, 1]} : vector<32x96xf32> to vector<32x8xf32>
    %68 = arith.truncf %67 : vector<32x8xf32> to vector<32x8xbf16>
    %cst_35 = arith.constant dense<0.000000e+00> : vector<32x32xf32>
    %69 = tpu.matmul %64, %66, %cst_35 {dimension_numbers = #tpu.dot_dimension_numbers<[1], [1], [0], [0], [0, 0, 1, 0], [], []>} : vector<32x8xbf16>, vector<32x8xbf16>, vector<32x32xf32> -> vector<32x32xf32>
    %70 = arith.addf %69, %29 : vector<32x32xf32>
    %cst_36 = arith.constant dense<0xFF800000> : vector<32xf32>
    %71 = vector.multi_reduction <maximumf>, %70, %cst_36 [1] : vector<32x32xf32> to vector<32xf32>
    %72 = vector.shape_cast %71 : vector<32xf32> to vector<32x1xf32>
    %73 = vector.broadcast %72 : vector<32x1xf32> to vector<32x32xf32>
    %74 = arith.subf %70, %73 : vector<32x32xf32>
    %75 = math.exp %74 : vector<32x32xf32>
    %cst_37 = arith.constant dense<0.000000e+00> : vector<32xf32>
    %76 = vector.multi_reduction <add>, %75, %cst_37 [1] : vector<32x32xf32> to vector<32xf32>
    %77 = vector.shape_cast %76 : vector<32xf32> to vector<32x1xf32>
    %78 = tpu.reciprocal %77 {approx = true} : vector<32x1xf32> -> vector<32x1xf32>
    %79 = vector.broadcast %78 : vector<32x1xf32> to vector<32x32xf32>
    %80 = arith.mulf %75, %79 : vector<32x32xf32>
    %81 = arith.truncf %80 : vector<32x32xf32> to vector<32x32xbf16>
    %cst_38 = arith.constant dense<0.000000e+00> : vector<32x8xf32>
    %82 = tpu.matmul %81, %68, %cst_38 {dimension_numbers = #tpu.dot_dimension_numbers<[1], [0], [0], [1], [0, 0, 1, 1], [], []>} : vector<32x32xbf16>, vector<32x8xbf16>, vector<32x8xf32> -> vector<32x8xf32>
    %83 = arith.truncf %82 : vector<32x8xf32> to vector<32x8xbf16>
    %c0_39 = arith.constant 0 : index
    %c0_40 = arith.constant 0 : index
    %c0_41 = arith.constant 0 : index
    %84 = vector.load %arg10[%c0_39, %c0_40, %c0_41] : memref<8x8x32xbf16, #tpu.memory_space<vmem>>, vector<1x8x32xbf16>
    %85 = vector.shape_cast %84 : vector<1x8x32xbf16> to vector<8x32xbf16>
    %cst_42 = arith.constant dense<0.000000e+00> : vector<32x32xf32>
    %86 = tpu.matmul %83, %85, %cst_42 {dimension_numbers = #tpu.dot_dimension_numbers<[1], [0], [0], [1], [0, 0, 1, 1], [], []>} : vector<32x8xbf16>, vector<8x32xbf16>, vector<32x32xf32> -> vector<32x32xf32>
    %87 = arith.addf %62, %86 : vector<32x32xf32>
    %88 = vector.extract_strided_slice %61 {offsets = [0, 8], sizes = [32, 8], strides = [1, 1]} : vector<32x96xf32> to vector<32x8xf32>
    %89 = arith.truncf %88 : vector<32x8xf32> to vector<32x8xbf16>
    %90 = vector.extract_strided_slice %61 {offsets = [0, 40], sizes = [32, 8], strides = [1, 1]} : vector<32x96xf32> to vector<32x8xf32>
    %91 = arith.truncf %90 : vector<32x8xf32> to vector<32x8xbf16>
    %92 = vector.extract_strided_slice %61 {offsets = [0, 72], sizes = [32, 8], strides = [1, 1]} : vector<32x96xf32> to vector<32x8xf32>
    %93 = arith.truncf %92 : vector<32x8xf32> to vector<32x8xbf16>
    %cst_43 = arith.constant dense<0.000000e+00> : vector<32x32xf32>
    %94 = tpu.matmul %89, %91, %cst_43 {dimension_numbers = #tpu.dot_dimension_numbers<[1], [1], [0], [0], [0, 0, 1, 0], [], []>} : vector<32x8xbf16>, vector<32x8xbf16>, vector<32x32xf32> -> vector<32x32xf32>
    %95 = arith.addf %94, %29 : vector<32x32xf32>
    %cst_44 = arith.constant dense<0xFF800000> : vector<32xf32>
    %96 = vector.multi_reduction <maximumf>, %95, %cst_44 [1] : vector<32x32xf32> to vector<32xf32>
    %97 = vector.shape_cast %96 : vector<32xf32> to vector<32x1xf32>
    %98 = vector.broadcast %97 : vector<32x1xf32> to vector<32x32xf32>
    %99 = arith.subf %95, %98 : vector<32x32xf32>
    %100 = math.exp %99 : vector<32x32xf32>
    %cst_45 = arith.constant dense<0.000000e+00> : vector<32xf32>
    %101 = vector.multi_reduction <add>, %100, %cst_45 [1] : vector<32x32xf32> to vector<32xf32>
    %102 = vector.shape_cast %101 : vector<32xf32> to vector<32x1xf32>
    %103 = tpu.reciprocal %102 {approx = true} : vector<32x1xf32> -> vector<32x1xf32>
    %104 = vector.broadcast %103 : vector<32x1xf32> to vector<32x32xf32>
    %105 = arith.mulf %100, %104 : vector<32x32xf32>
    %106 = arith.truncf %105 : vector<32x32xf32> to vector<32x32xbf16>
    %cst_46 = arith.constant dense<0.000000e+00> : vector<32x8xf32>
    %107 = tpu.matmul %106, %93, %cst_46 {dimension_numbers = #tpu.dot_dimension_numbers<[1], [0], [0], [1], [0, 0, 1, 1], [], []>} : vector<32x32xbf16>, vector<32x8xbf16>, vector<32x8xf32> -> vector<32x8xf32>
    %108 = arith.truncf %107 : vector<32x8xf32> to vector<32x8xbf16>
    %c1 = arith.constant 1 : index
    %c0_47 = arith.constant 0 : index
    %c0_48 = arith.constant 0 : index
    %109 = vector.load %arg10[%c1, %c0_47, %c0_48] : memref<8x8x32xbf16, #tpu.memory_space<vmem>>, vector<1x8x32xbf16>
    %110 = vector.shape_cast %109 : vector<1x8x32xbf16> to vector<8x32xbf16>
    %cst_49 = arith.constant dense<0.000000e+00> : vector<32x32xf32>
    %111 = tpu.matmul %108, %110, %cst_49 {dimension_numbers = #tpu.dot_dimension_numbers<[1], [0], [0], [1], [0, 0, 1, 1], [], []>} : vector<32x8xbf16>, vector<8x32xbf16>, vector<32x32xf32> -> vector<32x32xf32>
    %112 = arith.addf %87, %111 : vector<32x32xf32>
    %113 = vector.extract_strided_slice %61 {offsets = [0, 16], sizes = [32, 8], strides = [1, 1]} : vector<32x96xf32> to vector<32x8xf32>
    %114 = arith.truncf %113 : vector<32x8xf32> to vector<32x8xbf16>
    %115 = vector.extract_strided_slice %61 {offsets = [0, 48], sizes = [32, 8], strides = [1, 1]} : vector<32x96xf32> to vector<32x8xf32>
    %116 = arith.truncf %115 : vector<32x8xf32> to vector<32x8xbf16>
    %117 = vector.extract_strided_slice %61 {offsets = [0, 80], sizes = [32, 8], strides = [1, 1]} : vector<32x96xf32> to vector<32x8xf32>
    %118 = arith.truncf %117 : vector<32x8xf32> to vector<32x8xbf16>
    %cst_50 = arith.constant dense<0.000000e+00> : vector<32x32xf32>
    %119 = tpu.matmul %114, %116, %cst_50 {dimension_numbers = #tpu.dot_dimension_numbers<[1], [1], [0], [0], [0, 0, 1, 0], [], []>} : vector<32x8xbf16>, vector<32x8xbf16>, vector<32x32xf32> -> vector<32x32xf32>
    %120 = arith.addf %119, %29 : vector<32x32xf32>
    %cst_51 = arith.constant dense<0xFF800000> : vector<32xf32>
    %121 = vector.multi_reduction <maximumf>, %120, %cst_51 [1] : vector<32x32xf32> to vector<32xf32>
    %122 = vector.shape_cast %121 : vector<32xf32> to vector<32x1xf32>
    %123 = vector.broadcast %122 : vector<32x1xf32> to vector<32x32xf32>
    %124 = arith.subf %120, %123 : vector<32x32xf32>
    %125 = math.exp %124 : vector<32x32xf32>
    %cst_52 = arith.constant dense<0.000000e+00> : vector<32xf32>
    %126 = vector.multi_reduction <add>, %125, %cst_52 [1] : vector<32x32xf32> to vector<32xf32>
    %127 = vector.shape_cast %126 : vector<32xf32> to vector<32x1xf32>
    %128 = tpu.reciprocal %127 {approx = true} : vector<32x1xf32> -> vector<32x1xf32>
    %129 = vector.broadcast %128 : vector<32x1xf32> to vector<32x32xf32>
    %130 = arith.mulf %125, %129 : vector<32x32xf32>
    %131 = arith.truncf %130 : vector<32x32xf32> to vector<32x32xbf16>
    %cst_53 = arith.constant dense<0.000000e+00> : vector<32x8xf32>
    %132 = tpu.matmul %131, %118, %cst_53 {dimension_numbers = #tpu.dot_dimension_numbers<[1], [0], [0], [1], [0, 0, 1, 1], [], []>} : vector<32x32xbf16>, vector<32x8xbf16>, vector<32x8xf32> -> vector<32x8xf32>
    %133 = arith.truncf %132 : vector<32x8xf32> to vector<32x8xbf16>
    %c2 = arith.constant 2 : index
    %c0_54 = arith.constant 0 : index
    %c0_55 = arith.constant 0 : index
    %134 = vector.load %arg10[%c2, %c0_54, %c0_55] : memref<8x8x32xbf16, #tpu.memory_space<vmem>>, vector<1x8x32xbf16>
    %135 = vector.shape_cast %134 : vector<1x8x32xbf16> to vector<8x32xbf16>
    %cst_56 = arith.constant dense<0.000000e+00> : vector<32x32xf32>
    %136 = tpu.matmul %133, %135, %cst_56 {dimension_numbers = #tpu.dot_dimension_numbers<[1], [0], [0], [1], [0, 0, 1, 1], [], []>} : vector<32x8xbf16>, vector<8x32xbf16>, vector<32x32xf32> -> vector<32x32xf32>
    %137 = arith.addf %112, %136 : vector<32x32xf32>
    %138 = vector.extract_strided_slice %61 {offsets = [0, 24], sizes = [32, 8], strides = [1, 1]} : vector<32x96xf32> to vector<32x8xf32>
    %139 = arith.truncf %138 : vector<32x8xf32> to vector<32x8xbf16>
    %140 = vector.extract_strided_slice %61 {offsets = [0, 56], sizes = [32, 8], strides = [1, 1]} : vector<32x96xf32> to vector<32x8xf32>
    %141 = arith.truncf %140 : vector<32x8xf32> to vector<32x8xbf16>
    %142 = vector.extract_strided_slice %61 {offsets = [0, 88], sizes = [32, 8], strides = [1, 1]} : vector<32x96xf32> to vector<32x8xf32>
    %143 = arith.truncf %142 : vector<32x8xf32> to vector<32x8xbf16>
    %cst_57 = arith.constant dense<0.000000e+00> : vector<32x32xf32>
    %144 = tpu.matmul %139, %141, %cst_57 {dimension_numbers = #tpu.dot_dimension_numbers<[1], [1], [0], [0], [0, 0, 1, 0], [], []>} : vector<32x8xbf16>, vector<32x8xbf16>, vector<32x32xf32> -> vector<32x32xf32>
    %145 = arith.addf %144, %29 : vector<32x32xf32>
    %cst_58 = arith.constant dense<0xFF800000> : vector<32xf32>
    %146 = vector.multi_reduction <maximumf>, %145, %cst_58 [1] : vector<32x32xf32> to vector<32xf32>
    %147 = vector.shape_cast %146 : vector<32xf32> to vector<32x1xf32>
    %148 = vector.broadcast %147 : vector<32x1xf32> to vector<32x32xf32>
    %149 = arith.subf %145, %148 : vector<32x32xf32>
    %150 = math.exp %149 : vector<32x32xf32>
    %cst_59 = arith.constant dense<0.000000e+00> : vector<32xf32>
    %151 = vector.multi_reduction <add>, %150, %cst_59 [1] : vector<32x32xf32> to vector<32xf32>
    %152 = vector.shape_cast %151 : vector<32xf32> to vector<32x1xf32>
    %153 = tpu.reciprocal %152 {approx = true} : vector<32x1xf32> -> vector<32x1xf32>
    %154 = vector.broadcast %153 : vector<32x1xf32> to vector<32x32xf32>
    %155 = arith.mulf %150, %154 : vector<32x32xf32>
    %156 = arith.truncf %155 : vector<32x32xf32> to vector<32x32xbf16>
    %cst_60 = arith.constant dense<0.000000e+00> : vector<32x8xf32>
    %157 = tpu.matmul %156, %143, %cst_60 {dimension_numbers = #tpu.dot_dimension_numbers<[1], [0], [0], [1], [0, 0, 1, 1], [], []>} : vector<32x32xbf16>, vector<32x8xbf16>, vector<32x8xf32> -> vector<32x8xf32>
    %158 = arith.truncf %157 : vector<32x8xf32> to vector<32x8xbf16>
    %c3 = arith.constant 3 : index
    %c0_61 = arith.constant 0 : index
    %c0_62 = arith.constant 0 : index
    %159 = vector.load %arg10[%c3, %c0_61, %c0_62] : memref<8x8x32xbf16, #tpu.memory_space<vmem>>, vector<1x8x32xbf16>
    %160 = vector.shape_cast %159 : vector<1x8x32xbf16> to vector<8x32xbf16>
    %cst_63 = arith.constant dense<0.000000e+00> : vector<32x32xf32>
    %161 = tpu.matmul %158, %160, %cst_63 {dimension_numbers = #tpu.dot_dimension_numbers<[1], [0], [0], [1], [0, 0, 1, 1], [], []>} : vector<32x8xbf16>, vector<8x32xbf16>, vector<32x32xf32> -> vector<32x32xf32>
    %162 = arith.addf %137, %161 : vector<32x32xf32>
    %163 = arith.addf %28, %162 : vector<32x32xf32>
    %c0_64 = arith.constant 0 : index
    %c0_65 = arith.constant 0 : index
    %c0_66 = arith.constant 0 : index
    %164 = vector.load %arg11[%c0_64, %c0_65, %c0_66] : memref<2x1x32xf32, #tpu.memory_space<vmem>>, vector<1x1x32xf32>
    %165 = vector.shape_cast %164 : vector<1x1x32xf32> to vector<1x32xf32>
    %166 = vector.broadcast %165 : vector<1x32xf32> to vector<32x32xf32>
    %167 = arith.addf %163, %166 : vector<32x32xf32>
    %c0_67 = arith.constant 0 : index
    %c0_68 = arith.constant 0 : index
    %c0_69 = arith.constant 0 : index
    %168 = vector.load %arg12[%c0_67, %c0_68, %c0_69] : memref<2x1x32xf32, #tpu.memory_space<vmem>>, vector<1x1x32xf32>
    %169 = vector.shape_cast %168 : vector<1x1x32xf32> to vector<1x32xf32>
    %c0_70 = arith.constant 0 : index
    %c0_71 = arith.constant 0 : index
    %c0_72 = arith.constant 0 : index
    %170 = vector.load %arg13[%c0_70, %c0_71, %c0_72] : memref<2x1x32xf32, #tpu.memory_space<vmem>>, vector<1x1x32xf32>
    %171 = vector.shape_cast %170 : vector<1x1x32xf32> to vector<1x32xf32>
    %cst_73 = arith.constant dense<0.000000e+00> : vector<32xf32>
    %172 = vector.multi_reduction <add>, %167, %cst_73 [1] : vector<32x32xf32> to vector<32xf32>
    %173 = vector.shape_cast %172 : vector<32xf32> to vector<32x1xf32>
    %cst_74 = arith.constant 3.200000e+01 : f32
    %174 = vector.broadcast %cst_74 : f32 to vector<32x1xf32>
    %175 = arith.divf %173, %174 : vector<32x1xf32>
    %176 = vector.broadcast %175 : vector<32x1xf32> to vector<32x32xf32>
    %177 = arith.subf %167, %176 : vector<32x32xf32>
    %178 = arith.mulf %177, %177 : vector<32x32xf32>
    %cst_75 = arith.constant dense<0.000000e+00> : vector<32xf32>
    %179 = vector.multi_reduction <add>, %178, %cst_75 [1] : vector<32x32xf32> to vector<32xf32>
    %180 = vector.shape_cast %179 : vector<32xf32> to vector<32x1xf32>
    %cst_76 = arith.constant 3.200000e+01 : f32
    %181 = vector.broadcast %cst_76 : f32 to vector<32x1xf32>
    %182 = arith.divf %180, %181 : vector<32x1xf32>
    %cst_77 = arith.constant 9.99999974E-6 : f32
    %183 = vector.broadcast %cst_77 : f32 to vector<32x1xf32>
    %184 = arith.addf %182, %183 : vector<32x1xf32>
    %185 = math.rsqrt %184 : vector<32x1xf32>
    %186 = vector.broadcast %185 : vector<32x1xf32> to vector<32x32xf32>
    %187 = arith.mulf %177, %186 : vector<32x32xf32>
    %188 = vector.broadcast %169 : vector<1x32xf32> to vector<32x32xf32>
    %189 = arith.mulf %187, %188 : vector<32x32xf32>
    %190 = vector.broadcast %171 : vector<1x32xf32> to vector<32x32xf32>
    %191 = arith.addf %189, %190 : vector<32x32xf32>
    %192 = arith.truncf %191 : vector<32x32xf32> to vector<32x32xbf16>
    %c0_78 = arith.constant 0 : index
    %c0_79 = arith.constant 0 : index
    %c0_80 = arith.constant 0 : index
    %193 = vector.load %arg14[%c0_78, %c0_79, %c0_80] : memref<2x32x128xbf16, #tpu.memory_space<vmem>>, vector<1x32x128xbf16>
    %194 = vector.shape_cast %193 : vector<1x32x128xbf16> to vector<32x128xbf16>
    %cst_81 = arith.constant dense<0.000000e+00> : vector<32x128xf32>
    %195 = tpu.matmul %192, %194, %cst_81 {dimension_numbers = #tpu.dot_dimension_numbers<[1], [0], [0], [1], [0, 0, 1, 1], [], []>} : vector<32x32xbf16>, vector<32x128xbf16>, vector<32x128xf32> -> vector<32x128xf32>
    %c0_82 = arith.constant 0 : index
    %c0_83 = arith.constant 0 : index
    %c0_84 = arith.constant 0 : index
    %196 = vector.load %arg15[%c0_82, %c0_83, %c0_84] : memref<2x1x128xf32, #tpu.memory_space<vmem>>, vector<1x1x128xf32>
    %197 = vector.shape_cast %196 : vector<1x1x128xf32> to vector<1x128xf32>
    %198 = vector.broadcast %197 : vector<1x128xf32> to vector<32x128xf32>
    %199 = arith.addf %195, %198 : vector<32x128xf32>
    %200 = arith.mulf %199, %199 : vector<32x128xf32>
    %201 = arith.mulf %199, %200 : vector<32x128xf32>
    %cst_85 = arith.constant 4.471500e-02 : f32
    %202 = vector.broadcast %cst_85 : f32 to vector<32x128xf32>
    %203 = arith.mulf %202, %201 : vector<32x128xf32>
    %204 = arith.addf %199, %203 : vector<32x128xf32>
    %cst_86 = arith.constant 0.797884583 : f32
    %205 = vector.broadcast %cst_86 : f32 to vector<32x128xf32>
    %206 = arith.mulf %205, %204 : vector<32x128xf32>
    %207 = math.tanh %206 : vector<32x128xf32>
    %cst_87 = arith.constant 1.000000e+00 : f32
    %208 = vector.broadcast %cst_87 : f32 to vector<32x128xf32>
    %209 = arith.addf %208, %207 : vector<32x128xf32>
    %cst_88 = arith.constant 5.000000e-01 : f32
    %210 = vector.broadcast %cst_88 : f32 to vector<32x128xf32>
    %211 = arith.mulf %210, %209 : vector<32x128xf32>
    %212 = arith.mulf %199, %211 : vector<32x128xf32>
    %213 = arith.truncf %212 : vector<32x128xf32> to vector<32x128xbf16>
    %c0_89 = arith.constant 0 : index
    %c0_90 = arith.constant 0 : index
    %c0_91 = arith.constant 0 : index
    %214 = vector.load %arg16[%c0_89, %c0_90, %c0_91] : memref<2x128x32xbf16, #tpu.memory_space<vmem>>, vector<1x128x32xbf16>
    %215 = vector.shape_cast %214 : vector<1x128x32xbf16> to vector<128x32xbf16>
    %cst_92 = arith.constant dense<0.000000e+00> : vector<32x32xf32>
    %216 = tpu.matmul %213, %215, %cst_92 {dimension_numbers = #tpu.dot_dimension_numbers<[1], [0], [0], [1], [0, 0, 1, 1], [], []>} : vector<32x128xbf16>, vector<128x32xbf16>, vector<32x32xf32> -> vector<32x32xf32>
    %c0_93 = arith.constant 0 : index
    %c0_94 = arith.constant 0 : index
    %c0_95 = arith.constant 0 : index
    %217 = vector.load %arg17[%c0_93, %c0_94, %c0_95] : memref<2x1x32xf32, #tpu.memory_space<vmem>>, vector<1x1x32xf32>
    %218 = vector.shape_cast %217 : vector<1x1x32xf32> to vector<1x32xf32>
    %219 = vector.broadcast %218 : vector<1x32xf32> to vector<32x32xf32>
    %220 = arith.addf %216, %219 : vector<32x32xf32>
    %221 = arith.addf %167, %220 : vector<32x32xf32>
    %c1_96 = arith.constant 1 : index
    %c0_97 = arith.constant 0 : index
    %c0_98 = arith.constant 0 : index
    %222 = vector.load %arg6[%c1_96, %c0_97, %c0_98] : memref<2x1x32xf32, #tpu.memory_space<vmem>>, vector<1x1x32xf32>
    %223 = vector.shape_cast %222 : vector<1x1x32xf32> to vector<1x32xf32>
    %c1_99 = arith.constant 1 : index
    %c0_100 = arith.constant 0 : index
    %c0_101 = arith.constant 0 : index
    %224 = vector.load %arg7[%c1_99, %c0_100, %c0_101] : memref<2x1x32xf32, #tpu.memory_space<vmem>>, vector<1x1x32xf32>
    %225 = vector.shape_cast %224 : vector<1x1x32xf32> to vector<1x32xf32>
    %cst_102 = arith.constant dense<0.000000e+00> : vector<32xf32>
    %226 = vector.multi_reduction <add>, %221, %cst_102 [1] : vector<32x32xf32> to vector<32xf32>
    %227 = vector.shape_cast %226 : vector<32xf32> to vector<32x1xf32>
    %cst_103 = arith.constant 3.200000e+01 : f32
    %228 = vector.broadcast %cst_103 : f32 to vector<32x1xf32>
    %229 = arith.divf %227, %228 : vector<32x1xf32>
    %230 = vector.broadcast %229 : vector<32x1xf32> to vector<32x32xf32>
    %231 = arith.subf %221, %230 : vector<32x32xf32>
    %232 = arith.mulf %231, %231 : vector<32x32xf32>
    %cst_104 = arith.constant dense<0.000000e+00> : vector<32xf32>
    %233 = vector.multi_reduction <add>, %232, %cst_104 [1] : vector<32x32xf32> to vector<32xf32>
    %234 = vector.shape_cast %233 : vector<32xf32> to vector<32x1xf32>
    %cst_105 = arith.constant 3.200000e+01 : f32
    %235 = vector.broadcast %cst_105 : f32 to vector<32x1xf32>
    %236 = arith.divf %234, %235 : vector<32x1xf32>
    %cst_106 = arith.constant 9.99999974E-6 : f32
    %237 = vector.broadcast %cst_106 : f32 to vector<32x1xf32>
    %238 = arith.addf %236, %237 : vector<32x1xf32>
    %239 = math.rsqrt %238 : vector<32x1xf32>
    %240 = vector.broadcast %239 : vector<32x1xf32> to vector<32x32xf32>
    %241 = arith.mulf %231, %240 : vector<32x32xf32>
    %242 = vector.broadcast %223 : vector<1x32xf32> to vector<32x32xf32>
    %243 = arith.mulf %241, %242 : vector<32x32xf32>
    %244 = vector.broadcast %225 : vector<1x32xf32> to vector<32x32xf32>
    %245 = arith.addf %243, %244 : vector<32x32xf32>
    %246 = arith.truncf %245 : vector<32x32xf32> to vector<32x32xbf16>
    %c1_107 = arith.constant 1 : index
    %c0_108 = arith.constant 0 : index
    %c0_109 = arith.constant 0 : index
    %247 = vector.load %arg8[%c1_107, %c0_108, %c0_109] : memref<2x32x96xbf16, #tpu.memory_space<vmem>>, vector<1x32x96xbf16>
    %248 = vector.shape_cast %247 : vector<1x32x96xbf16> to vector<32x96xbf16>
    %cst_110 = arith.constant dense<0.000000e+00> : vector<32x96xf32>
    %249 = tpu.matmul %246, %248, %cst_110 {dimension_numbers = #tpu.dot_dimension_numbers<[1], [0], [0], [1], [0, 0, 1, 1], [], []>} : vector<32x32xbf16>, vector<32x96xbf16>, vector<32x96xf32> -> vector<32x96xf32>
    %c1_111 = arith.constant 1 : index
    %c0_112 = arith.constant 0 : index
    %c0_113 = arith.constant 0 : index
    %250 = vector.load %arg9[%c1_111, %c0_112, %c0_113] : memref<2x1x96xf32, #tpu.memory_space<vmem>>, vector<1x1x96xf32>
    %251 = vector.shape_cast %250 : vector<1x1x96xf32> to vector<1x96xf32>
    %252 = vector.broadcast %251 : vector<1x96xf32> to vector<32x96xf32>
    %253 = arith.addf %249, %252 : vector<32x96xf32>
    %cst_114 = arith.constant 0.000000e+00 : f32
    %254 = vector.broadcast %cst_114 : f32 to vector<32x32xf32>
    %255 = vector.extract_strided_slice %253 {offsets = [0, 0], sizes = [32, 8], strides = [1, 1]} : vector<32x96xf32> to vector<32x8xf32>
    %256 = arith.truncf %255 : vector<32x8xf32> to vector<32x8xbf16>
    %257 = vector.extract_strided_slice %253 {offsets = [0, 32], sizes = [32, 8], strides = [1, 1]} : vector<32x96xf32> to vector<32x8xf32>
    %258 = arith.truncf %257 : vector<32x8xf32> to vector<32x8xbf16>
    %259 = vector.extract_strided_slice %253 {offsets = [0, 64], sizes = [32, 8], strides = [1, 1]} : vector<32x96xf32> to vector<32x8xf32>
    %260 = arith.truncf %259 : vector<32x8xf32> to vector<32x8xbf16>
    %cst_115 = arith.constant dense<0.000000e+00> : vector<32x32xf32>
    %261 = tpu.matmul %256, %258, %cst_115 {dimension_numbers = #tpu.dot_dimension_numbers<[1], [1], [0], [0], [0, 0, 1, 0], [], []>} : vector<32x8xbf16>, vector<32x8xbf16>, vector<32x32xf32> -> vector<32x32xf32>
    %262 = arith.addf %261, %29 : vector<32x32xf32>
    %cst_116 = arith.constant dense<0xFF800000> : vector<32xf32>
    %263 = vector.multi_reduction <maximumf>, %262, %cst_116 [1] : vector<32x32xf32> to vector<32xf32>
    %264 = vector.shape_cast %263 : vector<32xf32> to vector<32x1xf32>
    %265 = vector.broadcast %264 : vector<32x1xf32> to vector<32x32xf32>
    %266 = arith.subf %262, %265 : vector<32x32xf32>
    %267 = math.exp %266 : vector<32x32xf32>
    %cst_117 = arith.constant dense<0.000000e+00> : vector<32xf32>
    %268 = vector.multi_reduction <add>, %267, %cst_117 [1] : vector<32x32xf32> to vector<32xf32>
    %269 = vector.shape_cast %268 : vector<32xf32> to vector<32x1xf32>
    %270 = tpu.reciprocal %269 {approx = true} : vector<32x1xf32> -> vector<32x1xf32>
    %271 = vector.broadcast %270 : vector<32x1xf32> to vector<32x32xf32>
    %272 = arith.mulf %267, %271 : vector<32x32xf32>
    %273 = arith.truncf %272 : vector<32x32xf32> to vector<32x32xbf16>
    %cst_118 = arith.constant dense<0.000000e+00> : vector<32x8xf32>
    %274 = tpu.matmul %273, %260, %cst_118 {dimension_numbers = #tpu.dot_dimension_numbers<[1], [0], [0], [1], [0, 0, 1, 1], [], []>} : vector<32x32xbf16>, vector<32x8xbf16>, vector<32x8xf32> -> vector<32x8xf32>
    %275 = arith.truncf %274 : vector<32x8xf32> to vector<32x8xbf16>
    %c4 = arith.constant 4 : index
    %c0_119 = arith.constant 0 : index
    %c0_120 = arith.constant 0 : index
    %276 = vector.load %arg10[%c4, %c0_119, %c0_120] : memref<8x8x32xbf16, #tpu.memory_space<vmem>>, vector<1x8x32xbf16>
    %277 = vector.shape_cast %276 : vector<1x8x32xbf16> to vector<8x32xbf16>
    %cst_121 = arith.constant dense<0.000000e+00> : vector<32x32xf32>
    %278 = tpu.matmul %275, %277, %cst_121 {dimension_numbers = #tpu.dot_dimension_numbers<[1], [0], [0], [1], [0, 0, 1, 1], [], []>} : vector<32x8xbf16>, vector<8x32xbf16>, vector<32x32xf32> -> vector<32x32xf32>
    %279 = arith.addf %254, %278 : vector<32x32xf32>
    %280 = vector.extract_strided_slice %253 {offsets = [0, 8], sizes = [32, 8], strides = [1, 1]} : vector<32x96xf32> to vector<32x8xf32>
    %281 = arith.truncf %280 : vector<32x8xf32> to vector<32x8xbf16>
    %282 = vector.extract_strided_slice %253 {offsets = [0, 40], sizes = [32, 8], strides = [1, 1]} : vector<32x96xf32> to vector<32x8xf32>
    %283 = arith.truncf %282 : vector<32x8xf32> to vector<32x8xbf16>
    %284 = vector.extract_strided_slice %253 {offsets = [0, 72], sizes = [32, 8], strides = [1, 1]} : vector<32x96xf32> to vector<32x8xf32>
    %285 = arith.truncf %284 : vector<32x8xf32> to vector<32x8xbf16>
    %cst_122 = arith.constant dense<0.000000e+00> : vector<32x32xf32>
    %286 = tpu.matmul %281, %283, %cst_122 {dimension_numbers = #tpu.dot_dimension_numbers<[1], [1], [0], [0], [0, 0, 1, 0], [], []>} : vector<32x8xbf16>, vector<32x8xbf16>, vector<32x32xf32> -> vector<32x32xf32>
    %287 = arith.addf %286, %29 : vector<32x32xf32>
    %cst_123 = arith.constant dense<0xFF800000> : vector<32xf32>
    %288 = vector.multi_reduction <maximumf>, %287, %cst_123 [1] : vector<32x32xf32> to vector<32xf32>
    %289 = vector.shape_cast %288 : vector<32xf32> to vector<32x1xf32>
    %290 = vector.broadcast %289 : vector<32x1xf32> to vector<32x32xf32>
    %291 = arith.subf %287, %290 : vector<32x32xf32>
    %292 = math.exp %291 : vector<32x32xf32>
    %cst_124 = arith.constant dense<0.000000e+00> : vector<32xf32>
    %293 = vector.multi_reduction <add>, %292, %cst_124 [1] : vector<32x32xf32> to vector<32xf32>
    %294 = vector.shape_cast %293 : vector<32xf32> to vector<32x1xf32>
    %295 = tpu.reciprocal %294 {approx = true} : vector<32x1xf32> -> vector<32x1xf32>
    %296 = vector.broadcast %295 : vector<32x1xf32> to vector<32x32xf32>
    %297 = arith.mulf %292, %296 : vector<32x32xf32>
    %298 = arith.truncf %297 : vector<32x32xf32> to vector<32x32xbf16>
    %cst_125 = arith.constant dense<0.000000e+00> : vector<32x8xf32>
    %299 = tpu.matmul %298, %285, %cst_125 {dimension_numbers = #tpu.dot_dimension_numbers<[1], [0], [0], [1], [0, 0, 1, 1], [], []>} : vector<32x32xbf16>, vector<32x8xbf16>, vector<32x8xf32> -> vector<32x8xf32>
    %300 = arith.truncf %299 : vector<32x8xf32> to vector<32x8xbf16>
    %c5 = arith.constant 5 : index
    %c0_126 = arith.constant 0 : index
    %c0_127 = arith.constant 0 : index
    %301 = vector.load %arg10[%c5, %c0_126, %c0_127] : memref<8x8x32xbf16, #tpu.memory_space<vmem>>, vector<1x8x32xbf16>
    %302 = vector.shape_cast %301 : vector<1x8x32xbf16> to vector<8x32xbf16>
    %cst_128 = arith.constant dense<0.000000e+00> : vector<32x32xf32>
    %303 = tpu.matmul %300, %302, %cst_128 {dimension_numbers = #tpu.dot_dimension_numbers<[1], [0], [0], [1], [0, 0, 1, 1], [], []>} : vector<32x8xbf16>, vector<8x32xbf16>, vector<32x32xf32> -> vector<32x32xf32>
    %304 = arith.addf %279, %303 : vector<32x32xf32>
    %305 = vector.extract_strided_slice %253 {offsets = [0, 16], sizes = [32, 8], strides = [1, 1]} : vector<32x96xf32> to vector<32x8xf32>
    %306 = arith.truncf %305 : vector<32x8xf32> to vector<32x8xbf16>
    %307 = vector.extract_strided_slice %253 {offsets = [0, 48], sizes = [32, 8], strides = [1, 1]} : vector<32x96xf32> to vector<32x8xf32>
    %308 = arith.truncf %307 : vector<32x8xf32> to vector<32x8xbf16>
    %309 = vector.extract_strided_slice %253 {offsets = [0, 80], sizes = [32, 8], strides = [1, 1]} : vector<32x96xf32> to vector<32x8xf32>
    %310 = arith.truncf %309 : vector<32x8xf32> to vector<32x8xbf16>
    %cst_129 = arith.constant dense<0.000000e+00> : vector<32x32xf32>
    %311 = tpu.matmul %306, %308, %cst_129 {dimension_numbers = #tpu.dot_dimension_numbers<[1], [1], [0], [0], [0, 0, 1, 0], [], []>} : vector<32x8xbf16>, vector<32x8xbf16>, vector<32x32xf32> -> vector<32x32xf32>
    %312 = arith.addf %311, %29 : vector<32x32xf32>
    %cst_130 = arith.constant dense<0xFF800000> : vector<32xf32>
    %313 = vector.multi_reduction <maximumf>, %312, %cst_130 [1] : vector<32x32xf32> to vector<32xf32>
    %314 = vector.shape_cast %313 : vector<32xf32> to vector<32x1xf32>
    %315 = vector.broadcast %314 : vector<32x1xf32> to vector<32x32xf32>
    %316 = arith.subf %312, %315 : vector<32x32xf32>
    %317 = math.exp %316 : vector<32x32xf32>
    %cst_131 = arith.constant dense<0.000000e+00> : vector<32xf32>
    %318 = vector.multi_reduction <add>, %317, %cst_131 [1] : vector<32x32xf32> to vector<32xf32>
    %319 = vector.shape_cast %318 : vector<32xf32> to vector<32x1xf32>
    %320 = tpu.reciprocal %319 {approx = true} : vector<32x1xf32> -> vector<32x1xf32>
    %321 = vector.broadcast %320 : vector<32x1xf32> to vector<32x32xf32>
    %322 = arith.mulf %317, %321 : vector<32x32xf32>
    %323 = arith.truncf %322 : vector<32x32xf32> to vector<32x32xbf16>
    %cst_132 = arith.constant dense<0.000000e+00> : vector<32x8xf32>
    %324 = tpu.matmul %323, %310, %cst_132 {dimension_numbers = #tpu.dot_dimension_numbers<[1], [0], [0], [1], [0, 0, 1, 1], [], []>} : vector<32x32xbf16>, vector<32x8xbf16>, vector<32x8xf32> -> vector<32x8xf32>
    %325 = arith.truncf %324 : vector<32x8xf32> to vector<32x8xbf16>
    %c6 = arith.constant 6 : index
    %c0_133 = arith.constant 0 : index
    %c0_134 = arith.constant 0 : index
    %326 = vector.load %arg10[%c6, %c0_133, %c0_134] : memref<8x8x32xbf16, #tpu.memory_space<vmem>>, vector<1x8x32xbf16>
    %327 = vector.shape_cast %326 : vector<1x8x32xbf16> to vector<8x32xbf16>
    %cst_135 = arith.constant dense<0.000000e+00> : vector<32x32xf32>
    %328 = tpu.matmul %325, %327, %cst_135 {dimension_numbers = #tpu.dot_dimension_numbers<[1], [0], [0], [1], [0, 0, 1, 1], [], []>} : vector<32x8xbf16>, vector<8x32xbf16>, vector<32x32xf32> -> vector<32x32xf32>
    %329 = arith.addf %304, %328 : vector<32x32xf32>
    %330 = vector.extract_strided_slice %253 {offsets = [0, 24], sizes = [32, 8], strides = [1, 1]} : vector<32x96xf32> to vector<32x8xf32>
    %331 = arith.truncf %330 : vector<32x8xf32> to vector<32x8xbf16>
    %332 = vector.extract_strided_slice %253 {offsets = [0, 56], sizes = [32, 8], strides = [1, 1]} : vector<32x96xf32> to vector<32x8xf32>
    %333 = arith.truncf %332 : vector<32x8xf32> to vector<32x8xbf16>
    %334 = vector.extract_strided_slice %253 {offsets = [0, 88], sizes = [32, 8], strides = [1, 1]} : vector<32x96xf32> to vector<32x8xf32>
    %335 = arith.truncf %334 : vector<32x8xf32> to vector<32x8xbf16>
    %cst_136 = arith.constant dense<0.000000e+00> : vector<32x32xf32>
    %336 = tpu.matmul %331, %333, %cst_136 {dimension_numbers = #tpu.dot_dimension_numbers<[1], [1], [0], [0], [0, 0, 1, 0], [], []>} : vector<32x8xbf16>, vector<32x8xbf16>, vector<32x32xf32> -> vector<32x32xf32>
    %337 = arith.addf %336, %29 : vector<32x32xf32>
    %cst_137 = arith.constant dense<0xFF800000> : vector<32xf32>
    %338 = vector.multi_reduction <maximumf>, %337, %cst_137 [1] : vector<32x32xf32> to vector<32xf32>
    %339 = vector.shape_cast %338 : vector<32xf32> to vector<32x1xf32>
    %340 = vector.broadcast %339 : vector<32x1xf32> to vector<32x32xf32>
    %341 = arith.subf %337, %340 : vector<32x32xf32>
    %342 = math.exp %341 : vector<32x32xf32>
    %cst_138 = arith.constant dense<0.000000e+00> : vector<32xf32>
    %343 = vector.multi_reduction <add>, %342, %cst_138 [1] : vector<32x32xf32> to vector<32xf32>
    %344 = vector.shape_cast %343 : vector<32xf32> to vector<32x1xf32>
    %345 = tpu.reciprocal %344 {approx = true} : vector<32x1xf32> -> vector<32x1xf32>
    %346 = vector.broadcast %345 : vector<32x1xf32> to vector<32x32xf32>
    %347 = arith.mulf %342, %346 : vector<32x32xf32>
    %348 = arith.truncf %347 : vector<32x32xf32> to vector<32x32xbf16>
    %cst_139 = arith.constant dense<0.000000e+00> : vector<32x8xf32>
    %349 = tpu.matmul %348, %335, %cst_139 {dimension_numbers = #tpu.dot_dimension_numbers<[1], [0], [0], [1], [0, 0, 1, 1], [], []>} : vector<32x32xbf16>, vector<32x8xbf16>, vector<32x8xf32> -> vector<32x8xf32>
    %350 = arith.truncf %349 : vector<32x8xf32> to vector<32x8xbf16>
    %c7 = arith.constant 7 : index
    %c0_140 = arith.constant 0 : index
    %c0_141 = arith.constant 0 : index
    %351 = vector.load %arg10[%c7, %c0_140, %c0_141] : memref<8x8x32xbf16, #tpu.memory_space<vmem>>, vector<1x8x32xbf16>
    %352 = vector.shape_cast %351 : vector<1x8x32xbf16> to vector<8x32xbf16>
    %cst_142 = arith.constant dense<0.000000e+00> : vector<32x32xf32>
    %353 = tpu.matmul %350, %352, %cst_142 {dimension_numbers = #tpu.dot_dimension_numbers<[1], [0], [0], [1], [0, 0, 1, 1], [], []>} : vector<32x8xbf16>, vector<8x32xbf16>, vector<32x32xf32> -> vector<32x32xf32>
    %354 = arith.addf %329, %353 : vector<32x32xf32>
    %355 = arith.addf %221, %354 : vector<32x32xf32>
    %c1_143 = arith.constant 1 : index
    %c0_144 = arith.constant 0 : index
    %c0_145 = arith.constant 0 : index
    %356 = vector.load %arg11[%c1_143, %c0_144, %c0_145] : memref<2x1x32xf32, #tpu.memory_space<vmem>>, vector<1x1x32xf32>
    %357 = vector.shape_cast %356 : vector<1x1x32xf32> to vector<1x32xf32>
    %358 = vector.broadcast %357 : vector<1x32xf32> to vector<32x32xf32>
    %359 = arith.addf %355, %358 : vector<32x32xf32>
    %c1_146 = arith.constant 1 : index
    %c0_147 = arith.constant 0 : index
    %c0_148 = arith.constant 0 : index
    %360 = vector.load %arg12[%c1_146, %c0_147, %c0_148] : memref<2x1x32xf32, #tpu.memory_space<vmem>>, vector<1x1x32xf32>
    %361 = vector.shape_cast %360 : vector<1x1x32xf32> to vector<1x32xf32>
    %c1_149 = arith.constant 1 : index
    %c0_150 = arith.constant 0 : index
    %c0_151 = arith.constant 0 : index
    %362 = vector.load %arg13[%c1_149, %c0_150, %c0_151] : memref<2x1x32xf32, #tpu.memory_space<vmem>>, vector<1x1x32xf32>
    %363 = vector.shape_cast %362 : vector<1x1x32xf32> to vector<1x32xf32>
    %cst_152 = arith.constant dense<0.000000e+00> : vector<32xf32>
    %364 = vector.multi_reduction <add>, %359, %cst_152 [1] : vector<32x32xf32> to vector<32xf32>
    %365 = vector.shape_cast %364 : vector<32xf32> to vector<32x1xf32>
    %cst_153 = arith.constant 3.200000e+01 : f32
    %366 = vector.broadcast %cst_153 : f32 to vector<32x1xf32>
    %367 = arith.divf %365, %366 : vector<32x1xf32>
    %368 = vector.broadcast %367 : vector<32x1xf32> to vector<32x32xf32>
    %369 = arith.subf %359, %368 : vector<32x32xf32>
    %370 = arith.mulf %369, %369 : vector<32x32xf32>
    %cst_154 = arith.constant dense<0.000000e+00> : vector<32xf32>
    %371 = vector.multi_reduction <add>, %370, %cst_154 [1] : vector<32x32xf32> to vector<32xf32>
    %372 = vector.shape_cast %371 : vector<32xf32> to vector<32x1xf32>
    %cst_155 = arith.constant 3.200000e+01 : f32
    %373 = vector.broadcast %cst_155 : f32 to vector<32x1xf32>
    %374 = arith.divf %372, %373 : vector<32x1xf32>
    %cst_156 = arith.constant 9.99999974E-6 : f32
    %375 = vector.broadcast %cst_156 : f32 to vector<32x1xf32>
    %376 = arith.addf %374, %375 : vector<32x1xf32>
    %377 = math.rsqrt %376 : vector<32x1xf32>
    %378 = vector.broadcast %377 : vector<32x1xf32> to vector<32x32xf32>
    %379 = arith.mulf %369, %378 : vector<32x32xf32>
    %380 = vector.broadcast %361 : vector<1x32xf32> to vector<32x32xf32>
    %381 = arith.mulf %379, %380 : vector<32x32xf32>
    %382 = vector.broadcast %363 : vector<1x32xf32> to vector<32x32xf32>
    %383 = arith.addf %381, %382 : vector<32x32xf32>
    %384 = arith.truncf %383 : vector<32x32xf32> to vector<32x32xbf16>
    %c1_157 = arith.constant 1 : index
    %c0_158 = arith.constant 0 : index
    %c0_159 = arith.constant 0 : index
    %385 = vector.load %arg14[%c1_157, %c0_158, %c0_159] : memref<2x32x128xbf16, #tpu.memory_space<vmem>>, vector<1x32x128xbf16>
    %386 = vector.shape_cast %385 : vector<1x32x128xbf16> to vector<32x128xbf16>
    %cst_160 = arith.constant dense<0.000000e+00> : vector<32x128xf32>
    %387 = tpu.matmul %384, %386, %cst_160 {dimension_numbers = #tpu.dot_dimension_numbers<[1], [0], [0], [1], [0, 0, 1, 1], [], []>} : vector<32x32xbf16>, vector<32x128xbf16>, vector<32x128xf32> -> vector<32x128xf32>
    %c1_161 = arith.constant 1 : index
    %c0_162 = arith.constant 0 : index
    %c0_163 = arith.constant 0 : index
    %388 = vector.load %arg15[%c1_161, %c0_162, %c0_163] : memref<2x1x128xf32, #tpu.memory_space<vmem>>, vector<1x1x128xf32>
    %389 = vector.shape_cast %388 : vector<1x1x128xf32> to vector<1x128xf32>
    %390 = vector.broadcast %389 : vector<1x128xf32> to vector<32x128xf32>
    %391 = arith.addf %387, %390 : vector<32x128xf32>
    %392 = arith.mulf %391, %391 : vector<32x128xf32>
    %393 = arith.mulf %391, %392 : vector<32x128xf32>
    %cst_164 = arith.constant 4.471500e-02 : f32
    %394 = vector.broadcast %cst_164 : f32 to vector<32x128xf32>
    %395 = arith.mulf %394, %393 : vector<32x128xf32>
    %396 = arith.addf %391, %395 : vector<32x128xf32>
    %cst_165 = arith.constant 0.797884583 : f32
    %397 = vector.broadcast %cst_165 : f32 to vector<32x128xf32>
    %398 = arith.mulf %397, %396 : vector<32x128xf32>
    %399 = math.tanh %398 : vector<32x128xf32>
    %cst_166 = arith.constant 1.000000e+00 : f32
    %400 = vector.broadcast %cst_166 : f32 to vector<32x128xf32>
    %401 = arith.addf %400, %399 : vector<32x128xf32>
    %cst_167 = arith.constant 5.000000e-01 : f32
    %402 = vector.broadcast %cst_167 : f32 to vector<32x128xf32>
    %403 = arith.mulf %402, %401 : vector<32x128xf32>
    %404 = arith.mulf %391, %403 : vector<32x128xf32>
    %405 = arith.truncf %404 : vector<32x128xf32> to vector<32x128xbf16>
    %c1_168 = arith.constant 1 : index
    %c0_169 = arith.constant 0 : index
    %c0_170 = arith.constant 0 : index
    %406 = vector.load %arg16[%c1_168, %c0_169, %c0_170] : memref<2x128x32xbf16, #tpu.memory_space<vmem>>, vector<1x128x32xbf16>
    %407 = vector.shape_cast %406 : vector<1x128x32xbf16> to vector<128x32xbf16>
    %cst_171 = arith.constant dense<0.000000e+00> : vector<32x32xf32>
    %408 = tpu.matmul %405, %407, %cst_171 {dimension_numbers = #tpu.dot_dimension_numbers<[1], [0], [0], [1], [0, 0, 1, 1], [], []>} : vector<32x128xbf16>, vector<128x32xbf16>, vector<32x32xf32> -> vector<32x32xf32>
    %c1_172 = arith.constant 1 : index
    %c0_173 = arith.constant 0 : index
    %c0_174 = arith.constant 0 : index
    %409 = vector.load %arg17[%c1_172, %c0_173, %c0_174] : memref<2x1x32xf32, #tpu.memory_space<vmem>>, vector<1x1x32xf32>
    %410 = vector.shape_cast %409 : vector<1x1x32xf32> to vector<1x32xf32>
    %411 = vector.broadcast %410 : vector<1x32xf32> to vector<32x32xf32>
    %412 = arith.addf %408, %411 : vector<32x32xf32>
    %413 = arith.addf %359, %412 : vector<32x32xf32>
    %c0_175 = arith.constant 0 : index
    %c0_176 = arith.constant 0 : index
    %414 = vector.load %arg18[%c0_175, %c0_176] : memref<1x32xf32, #tpu.memory_space<vmem>>, vector<1x32xf32>
    %c0_177 = arith.constant 0 : index
    %c0_178 = arith.constant 0 : index
    %415 = vector.load %arg19[%c0_177, %c0_178] : memref<1x32xf32, #tpu.memory_space<vmem>>, vector<1x32xf32>
    %cst_179 = arith.constant dense<0.000000e+00> : vector<32xf32>
    %416 = vector.multi_reduction <add>, %413, %cst_179 [1] : vector<32x32xf32> to vector<32xf32>
    %417 = vector.shape_cast %416 : vector<32xf32> to vector<32x1xf32>
    %cst_180 = arith.constant 3.200000e+01 : f32
    %418 = vector.broadcast %cst_180 : f32 to vector<32x1xf32>
    %419 = arith.divf %417, %418 : vector<32x1xf32>
    %420 = vector.broadcast %419 : vector<32x1xf32> to vector<32x32xf32>
    %421 = arith.subf %413, %420 : vector<32x32xf32>
    %422 = arith.mulf %421, %421 : vector<32x32xf32>
    %cst_181 = arith.constant dense<0.000000e+00> : vector<32xf32>
    %423 = vector.multi_reduction <add>, %422, %cst_181 [1] : vector<32x32xf32> to vector<32xf32>
    %424 = vector.shape_cast %423 : vector<32xf32> to vector<32x1xf32>
    %cst_182 = arith.constant 3.200000e+01 : f32
    %425 = vector.broadcast %cst_182 : f32 to vector<32x1xf32>
    %426 = arith.divf %424, %425 : vector<32x1xf32>
    %cst_183 = arith.constant 9.99999974E-6 : f32
    %427 = vector.broadcast %cst_183 : f32 to vector<32x1xf32>
    %428 = arith.addf %426, %427 : vector<32x1xf32>
    %429 = math.rsqrt %428 : vector<32x1xf32>
    %430 = vector.broadcast %429 : vector<32x1xf32> to vector<32x32xf32>
    %431 = arith.mulf %421, %430 : vector<32x32xf32>
    %432 = vector.broadcast %414 : vector<1x32xf32> to vector<32x32xf32>
    %433 = arith.mulf %431, %432 : vector<32x32xf32>
    %434 = vector.broadcast %415 : vector<1x32xf32> to vector<32x32xf32>
    %435 = arith.addf %433, %434 : vector<32x32xf32>
    %436 = vector.extract_strided_slice %435 {offsets = [0, 0], sizes = [16, 32], strides = [1, 1]} : vector<32x32xf32> to vector<16x32xf32>
    %cst_184 = arith.constant dense<0.000000e+00> : vector<32xf32>
    %437 = vector.multi_reduction <add>, %436, %cst_184 [0] : vector<16x32xf32> to vector<32xf32>
    %438 = vector.shape_cast %437 : vector<32xf32> to vector<1x32xf32>
    %cst_185 = arith.constant 1.600000e+01 : f32
    %439 = vector.broadcast %cst_185 : f32 to vector<1x32xf32>
    %440 = arith.divf %438, %439 : vector<1x32xf32>
    %441 = vector.extract_strided_slice %435 {offsets = [16, 0], sizes = [16, 32], strides = [1, 1]} : vector<32x32xf32> to vector<16x32xf32>
    %cst_186 = arith.constant dense<0.000000e+00> : vector<32xf32>
    %442 = vector.multi_reduction <add>, %441, %cst_186 [0] : vector<16x32xf32> to vector<32xf32>
    %443 = vector.shape_cast %442 : vector<32xf32> to vector<1x32xf32>
    %cst_187 = arith.constant 1.600000e+01 : f32
    %444 = vector.broadcast %cst_187 : f32 to vector<1x32xf32>
    %445 = arith.divf %443, %444 : vector<1x32xf32>
    %446 = tpu.concatenate %440, %445 in 0 : vector<1x32xf32>, vector<1x32xf32> -> vector<2x32xf32>
    %c0_188 = arith.constant 0 : index
    %c0_189 = arith.constant 0 : index
    %447 = vector.load %arg20[%c0_188, %c0_189] : memref<2x32xf32, #tpu.memory_space<vmem>>, vector<2x32xf32>
    tpu.vector_store %arg20[%c0_188, %c0_189], %446 {strides = array<i32>} : memref<2x32xf32, #tpu.memory_space<vmem>>, vector<2x32xf32>,
    return
  }
}

</mosaic_0001>

<bundles_post_ra>
// kernel: tpu_custom_call.1
= control target key start
LH: loop header
LB: loop body
LE: loop exit
PB: predicated region body
PF: predicated region fallthrough
CT: control target
= control target key end

     0   :  { %s4876_s0 = inlined_call_operand.vmem [shape: f32[32,48], index: 0, kind: input, shape index: {}]   ;;  %s4877_s1 = inlined_call_operand.vmem [shape: f32[32,32], index: 1, kind: input, shape index: {}]   ;;  %s4878_s2 = inlined_call_operand.vmem [shape: bf16[48,32], index: 2, kind: input, shape index: {}]   ;;  %s4879_s3 = inlined_call_operand.vmem [shape: f32[1,32], index: 3, kind: input, shape index: {}]   ;;  %s4880_s4 = inlined_call_operand.vmem [shape: f32[1,32], index: 4, kind: input, shape index: {}]   ;;  %s4881_s5 = inlined_call_operand.vmem [shape: f32[1,32], index: 5, kind: input, shape index: {}]   ;;  %s4882_s6 = inlined_call_operand.vmem [shape: f32[2,1,32], index: 6, kind: input, shape index: {}]   ;;  %s4883_s7 = inlined_call_operand.vmem [shape: f32[2,1,32], index: 7, kind: input, shape index: {}]   ;;  %s4884_s8 = inlined_call_operand.vmem [shape: bf16[2,32,96], index: 8, kind: input, shape index: {}]   ;;  %s4885_s9 = inlined_call_operand.vmem [shape: f32[2,1,96], index: 9, kind: input, shape index: {}]   ;;  %s4886_s10 = inlined_call_operand.vmem [shape: bf16[8,8,32], index: 10, kind: input, shape index: {}]   ;;  %s4887_s11 = inlined_call_operand.vmem [shape: f32[2,1,32], index: 11, kind: input, shape index: {}]   ;;  %s4888_s12 = inlined_call_operand.vmem [shape: f32[2,1,32], index: 12, kind: input, shape index: {}]   ;;  %s4889_s13 = inlined_call_operand.vmem [shape: f32[2,1,32], index: 13, kind: input, shape index: {}]   ;;  %s4890_s14 = inlined_call_operand.vmem [shape: bf16[2,32,128], index: 14, kind: input, shape index: {}]   ;;  %s4891_s15 = inlined_call_operand.vmem [shape: f32[2,1,128], index: 15, kind: input, shape index: {}]   ;;  %s4892_s16 = inlined_call_operand.vmem [shape: bf16[2,128,32], index: 16, kind: input, shape index: {}]   ;;  %s4893_s17 = inlined_call_operand.vmem [shape: f32[2,1,32], index: 17, kind: input, shape index: {}]   ;;  %s4894_s18 = inlined_call_operand.vmem [shape: f32[1,32], index: 18, kind: input, shape index: {}]   ;;  %s4895_s19 = inlined_call_operand.vmem [shape: f32[1,32], index: 19, kind: input, shape index: {}]   ;;  %s4896_s20 = inlined_call_operand.hbm [shape: f32[2,32], index: 20, kind: output, shape index: {}]  }
   0x1   :  { %4908 = sst [smem:[#allocation5_spill]] %s4876_s0 }
   0x2   :  { %4909 = sst [smem:[#allocation6_spill]] %s4877_s1 }
   0x3   :  { %4910 = sst [smem:[#allocation7_spill]] %s4878_s2 }
   0x4   :  { %4911 = sst [smem:[#allocation8_spill]] %s4879_s3 }
   0x5   :  { %4912 = sst [smem:[#allocation9_spill]] %s4880_s4 }
   0x6   :  { %s4913_s23 = sld [smem:[#allocation7_spill]]  ;;  %vm104_vm0 = vcmask 392192  }
   0x7   :  { %s4914_s26 = sld [smem:[#allocation5_spill]] }
   0xc   :  { %v3823_v0 = vld [vmem:[%s4913_s23 + $0x10] sm:$0xff]   ;;  %v3824_v1 = vld [vmem:[%s4913_s23 + $0x8] sm:$0xff]   ;;  %v3825_v4 = vld [vmem:[%s4913_s23] sm:$0xff]  }
   0xd   :  { %3529 = vmatprep.subr.bf16.mxu1 %v3823_v0  ;;  %v67_v2 = vld [vmem:[%s4914_s26] sm:$0xff]  ;;  %v68_v3 = vld [vmem:[%s4914_s26 + $0x8] sm:$0xff]  ;;  %v69_v6 = vld [vmem:[%s4914_s26 + $0x10] sm:$0xff] }
   0xe   :  { %3530 = vmatpush3.bf16.msra.mxu1 %v3823_v0  ;;  %v71_v5 = vpack.c.bf16 %v68_v3, %v67_v2  ;;  %v70_v7 = vld [vmem:[%s4914_s26 + $0x18] sm:$0xff] }
   0xf   :  { %3531 = vmatprep.subr.bf16.mxu1 %v3824_v1  ;;  %v72_v8 = vpack.c.bf16 %v70_v7, %v69_v6 }
  0x10   :  { %3535 = vmatprep.mubr.msk.bf16.mxu1 %vm104_vm0, %v71_v5 }
  0x12   :  { %3532 = vmatpush3.bf16.msra.mxu1 %v3824_v1 }
  0x13   :  { %3533 = vmatprep.subr.bf16.mxu1 %v3825_v4 }
  0x16   :  { %3534 = vmatpush3.bf16.msra.mxu1 %v3825_v4 }
  0x19   :  { %3536 = vmatmul.mubr.msk.bf16.vlgmr.msra.gmra.mxu1 %vm104_vm0, %v72_v8 }
  0x1a   :  { %25 = vsyncpa [#allocation3], 0  ;;  %s4915_s2 = sld [smem:[#allocation8_spill]]  ;;  %vm162_vm1 = vcmask 261120   ;;  %v3262_v57 = vld [vmem:[%s4881_s5] ss:$0 sm:$0xff] }
  0x1b   :  { %s4916_s3 = sld [smem:[#allocation9_spill]]  ;;  %vm402_vm2 = vcmask 64512   ;;  %s4069_s30 = smov 64   ;;  %vm760_vm3 = vcmask 1043456   ;;  %vm3237_vm4 = vcmask 1040384   ;;  %vm3239_vm5 = vcmask 254976  }
  0x1c   :  { %s4070_s0 = smov 88   ;;  %s4071_s21 = smov 120  }
  0x1d   :  { %s4072_s24 = smov 56   ;;  %s4073_s23 = smov 80  }
  0x1e   :  { %s4074_s25 = smov 112   ;;  %s4906_s26 = smov 72  }
  0x1f   :  { %s4904_s27 = smov 104   ;;  %s4902_s4 = smov 48  }
  0x20   :  { %v3255_v9 = vld [vmem:[%s4915_s2] ss:$0 sm:$0xff]  ;;  %s4068_s2 = smov 96   ;;  %s4900_s22 = smov 40  }
  0x21   :  { %v3261_v55 = vld [vmem:[%s4916_s3] ss:$0 sm:$0xff]  ;;  %s4917_s3 = sld [smem:[#allocation6_spill]]  ;;  %s4921_s29 = smov 40  }
  0xd9   :  { %v3537_v10 = vpop.f32.mrf.mxu1 }
  0xda   :  { %v154_v11 = vadd.f32 %v3537_v10, %v3255_v9 }
  0xdb   :  { %v145_v12 = vpop.f32.mrf.mxu1 }
  0xdc   :  { %v146_v13 = vadd.f32 %v3255_v9, %v145_v12  ;;  %v169_v14 = vsel %vm162_vm1, %v154_v11, 0.0 }
  0xdd   :  { %170 = vadd.xlane.f32.xlu1 %v169_v14  ;;  %v3538_v15 = vpop.f32.mrf.mxu1 }
  0xde   :  { %v157_v16 = vadd.f32 %v3538_v15, %v3255_v9  ;;  %v163_v17 = vsel %vm162_vm1, %v146_v13, 0.0 }
  0xdf   :  { %v148_v18 = vpop.f32.mrf.mxu1  ;;  %164 = vadd.xlane.f32.xlu0 %v163_v17 }
  0xe0   :  { %v149_v19 = vadd.f32 %v3255_v9, %v148_v18  ;;  %v172_v20 = vsel %vm162_vm1, %v157_v16, 0.0 }
  0xe1   :  { %173 = vadd.xlane.f32.xlu1 %v172_v20 }
  0xe2   :  { %v166_v21 = vsel %vm162_vm1, %v149_v19, 0.0 }
  0xe3   :  { %167 = vadd.xlane.f32.xlu0 %v166_v21 }
 0x166   :  { %v171_v22 = vpop.xlane.xlu1 %170 }
 0x167   :  { %v178_v23 = vmul.f32 0.03125, %v171_v22 }
 0x168   :  { %v165_v24 = vpop.xlane.xlu0 %164 }
 0x169   :  { %v176_v25 = vmul.f32 0.03125, %v165_v24  ;;  %v182_v27 = vsub.f32 %v154_v11, %v178_v23 }
 0x16a   :  { %v174_v26 = vpop.xlane.xlu1 %173 }
 0x16b   :  { %v180_v28 = vsub.f32 %v146_v13, %v176_v25  ;;  %v179_v29 = vmul.f32 0.03125, %v174_v26  ;;  %v186_v36 = vmul.f32 %v182_v27, %v182_v27 }
 0x16c   :  { %v168_v30 = vpop.xlane.xlu0 %167 }
 0x16d   :  { %v177_v31 = vmul.f32 0.03125, %v168_v30  ;;  %v184_v32 = vmul.f32 %v180_v28, %v180_v28  ;;  %v183_v33 = vsub.f32 %v157_v16, %v179_v29  ;;  %v194_v38 = vsel %vm162_vm1, %v186_v36, 0.0 }
 0x16f   :  { %v181_v34 = vsub.f32 %v149_v19, %v177_v31  ;;  %v188_v35 = vsel %vm162_vm1, %v184_v32, 0.0  ;;  %v187_v40 = vmul.f32 %v183_v33, %v183_v33  ;;  %v3826_v32 = vld [vmem:[%s4884_s8 + $0x8] sm:$0xff]  }
 0x170   :  { %189 = vadd.xlane.f32.xlu0 %v188_v35  ;;  %3539 = vmatprep.subr.bf16.mxu1 %v3826_v32 }
 0x171   :  { %v185_v37 = vmul.f32 %v181_v34, %v181_v34  ;;  %v197_v41 = vsel %vm162_vm1, %v187_v40, 0.0  ;;  %3540 = vmatpush3.bf16.msra.mxu1 %v3826_v32 }
 0x173   :  { %v191_v39 = vsel %vm162_vm1, %v185_v37, 0.0 }
 0x174   :  { %195 = vadd.xlane.f32.xlu0 %v194_v38  ;;  %192 = vadd.xlane.f32.xlu1 %v191_v39 }
 0x178   :  { %198 = vadd.xlane.f32.xlu1 %v197_v41 }
 0x1f9   :  { %v190_v42 = vpop.xlane.xlu0 %189 }
 0x1fa   :  { %v200_v43 = vmul.f32 0.03125, %v190_v42 }
 0x1fc   :  { %v204_v44 = vadd.f32 1e-05, %v200_v43 }
 0x1fd   :  { %v193_v45 = vpop.xlane.xlu1 %192  ;;  %v196_v46 = vpop.xlane.xlu0 %195 }
 0x1fe   :  { %3850 = vrsqrt.f32 %v204_v44  ;;  %v201_v47 = vmul.f32 0.03125, %v193_v45  ;;  %v202_v48 = vmul.f32 0.03125, %v196_v46 }
 0x200   :  { %v205_v49 = vadd.f32 1e-05, %v201_v47  ;;  %v206_v50 = vadd.f32 1e-05, %v202_v48  ;;  %v3263_v48 = vld [vmem:[%s4882_s6] ss:$0 sm:$0xff] }
 0x201   :  { %v199_v51 = vpop.xlane.xlu1 %198 }
 0x202   :  { %3852 = vrsqrt.f32 %v205_v49  ;;  %v203_v52 = vmul.f32 0.03125, %v199_v51 }
 0x203   :  { %3854 = vrsqrt.f32 %v206_v50 }
 0x204   :  { %v207_v53 = vadd.f32 1e-05, %v203_v52 }
 0x206   :  { %3856 = vrsqrt.f32 %v207_v53 }
 0x20b   :  { %v3851_v54 = vpop.eup %3850 }
 0x20c   :  { %v212_v56 = vmul.f32 %v3851_v54, %v180_v28  ;;  %v3264_v54 = vld [vmem:[%s4883_s7] ss:$0 sm:$0xff] }
 0x20e   :  { %v222_v58 = vmul.f32 %v3261_v55, %v212_v56 }
 0x20f   :  { %v3853_v59 = vpop.eup %3852 }
 0x210   :  { %v3855_v60 = vpop.eup %3854  ;;  %v4223_v61 = vadd.f32 %v3262_v57, %v222_v58  ;;  %v213_v62 = vmul.f32 %v3853_v59, %v181_v34 }
 0x211   :  { %v214_v63 = vmul.f32 %v3855_v60, %v182_v27 }
 0x212   :  { %v242_v0 = vsel %vm162_vm1, %v4223_v61, 0.0  ;;  %v223_v1 = vmul.f32 %v3261_v55, %v213_v62 }
 0x213   :  { %v3857_v2 = vpop.eup %3856  ;;  %243 = vadd.xlane.f32.xlu0 %v242_v0  ;;  %v224_v3 = vmul.f32 %v3261_v55, %v214_v63 }
 0x214   :  { %v4227_v4 = vadd.f32 %v3262_v57, %v223_v1  ;;  %v215_v5 = vmul.f32 %v3857_v2, %v183_v33  ;;  %v3827_v33 = vld [vmem:[%s4884_s8] sm:$0xff]  }
 0x215   :  { %v4229_v6 = vadd.f32 %v3262_v57, %v224_v3  ;;  %3541 = vmatprep.subr.bf16.mxu1 %v3827_v33 }
 0x216   :  { %v245_v7 = vsel %vm162_vm1, %v4227_v4, 0.0  ;;  %v225_v8 = vmul.f32 %v3261_v55, %v215_v5  ;;  %3542 = vmatpush3.bf16.msra.mxu1 %v3827_v33  ;;  %v3265_v5 = vld [vmem:[%s4885_s9] ss:$0 sm:$0xff] }
 0x217   :  { %246 = vadd.xlane.f32.xlu1 %v245_v7  ;;  %v248_v9 = vsel %vm162_vm1, %v4229_v6, 0.0 }
 0x218   :  { %249 = vadd.xlane.f32.xlu0 %v248_v9  ;;  %v4235_v10 = vadd.f32 %v3262_v57, %v225_v8 }
 0x21a   :  { %v251_v11 = vsel %vm162_vm1, %v4235_v10, 0.0 }
 0x21b   :  { %252 = vadd.xlane.f32.xlu1 %v251_v11 }
 0x29c   :  { %v244_v12 = vpop.xlane.xlu0 %243 }
 0x29d   :  { %v254_v13 = vmul.f32 0.03125, %v244_v12 }
 0x29f   :  { %v258_v14 = vsub.f32 %v4223_v61, %v254_v13 }
 0x2a0   :  { %v247_v15 = vpop.xlane.xlu1 %246 }
 0x2a1   :  { %v255_v16 = vmul.f32 0.03125, %v247_v15  ;;  %v250_v17 = vpop.xlane.xlu0 %249  ;;  %v262_v18 = vmul.f32 %v258_v14, %v258_v14 }
 0x2a2   :  { %v256_v19 = vmul.f32 0.03125, %v250_v17 }
 0x2a3   :  { %v259_v20 = vsub.f32 %v4227_v4, %v255_v16  ;;  %v266_v21 = vsel %vm162_vm1, %v262_v18, 0.0 }
 0x2a4   :  { %v260_v22 = vsub.f32 %v4229_v6, %v256_v19  ;;  %v253_v23 = vpop.xlane.xlu1 %252  ;;  %267 = vadd.xlane.f32.xlu0 %v266_v21 }
 0x2a5   :  { %v257_v24 = vmul.f32 0.03125, %v253_v23  ;;  %v263_v25 = vmul.f32 %v259_v20, %v259_v20 }
 0x2a6   :  { %v264_v26 = vmul.f32 %v260_v22, %v260_v22 }
 0x2a7   :  { %v261_v27 = vsub.f32 %v4235_v10, %v257_v24  ;;  %v269_v28 = vsel %vm162_vm1, %v263_v25, 0.0  ;;  %v4288_v24 = vld [vmem:[%s4917_s3 + $0x18] sm:$0xff] }
 0x2a8   :  { %270 = vadd.xlane.f32.xlu1 %v269_v28  ;;  %v272_v29 = vsel %vm162_vm1, %v264_v26, 0.0 }
 0x2a9   :  { %273 = vadd.xlane.f32.xlu0 %v272_v29  ;;  %v265_v30 = vmul.f32 %v261_v27, %v261_v27 }
 0x2ab   :  { %v275_v31 = vsel %vm162_vm1, %v265_v30, 0.0  ;;  %v4301_v30 = vld [vmem:[%s4917_s3 + $0x10] sm:$0xff] }
 0x2ac   :  { %276 = vadd.xlane.f32.xlu1 %v275_v31 }
 0x32d   :  { %v268_v34 = vpop.xlane.xlu0 %267 }
 0x32e   :  { %v278_v35 = vmul.f32 0.03125, %v268_v34 }
 0x330   :  { %v282_v36 = vadd.f32 1e-05, %v278_v35 }
 0x331   :  { %v271_v37 = vpop.xlane.xlu1 %270 }
 0x332   :  { %3858 = vrsqrt.f32 %v282_v36  ;;  %v279_v38 = vmul.f32 0.03125, %v271_v37  ;;  %v274_v39 = vpop.xlane.xlu0 %273 }
 0x333   :  { %v280_v40 = vmul.f32 0.03125, %v274_v39 }
 0x334   :  { %v283_v41 = vadd.f32 1e-05, %v279_v38 }
 0x335   :  { %v284_v42 = vadd.f32 1e-05, %v280_v40  ;;  %v277_v43 = vpop.xlane.xlu1 %276 }
 0x336   :  { %3860 = vrsqrt.f32 %v283_v41  ;;  %v281_v44 = vmul.f32 0.03125, %v277_v43 }
 0x337   :  { %3862 = vrsqrt.f32 %v284_v42 }
 0x338   :  { %v285_v45 = vadd.f32 1e-05, %v281_v44 }
 0x33a   :  { %3864 = vrsqrt.f32 %v285_v45 }
 0x33f   :  { %v3859_v46 = vpop.eup %3858 }
 0x340   :  { %v290_v47 = vmul.f32 %v3859_v46, %v258_v14 }
 0x342   :  { %v300_v52 = vmul.f32 %v3263_v48, %v290_v47 }
 0x343   :  { %v3861_v49 = vpop.eup %3860 }
 0x344   :  { %v3863_v50 = vpop.eup %3862  ;;  %v291_v51 = vmul.f32 %v3861_v49, %v259_v20  ;;  %v310_v58 = vadd.f32 %v3264_v54, %v300_v52 }
 0x345   :  { %v292_v53 = vmul.f32 %v3863_v50, %v260_v22  ;;  %v4283_v22 = vld [vmem:[%s4917_s3] sm:$0xff] }
 0x346   :  { %v301_v55 = vmul.f32 %v3263_v48, %v291_v51 }
 0x347   :  { %v3865_v56 = vpop.eup %3864  ;;  %v302_v60 = vmul.f32 %v3263_v48, %v292_v53 }
 0x348   :  { %v293_v57 = vmul.f32 %v3865_v56, %v261_v27  ;;  %v311_v59 = vadd.f32 %v3264_v54, %v301_v55  ;;  %v4294_v27 = vld [vmem:[%s4917_s3 + $0x8] sm:$0xff] }
 0x349   :  { %v312_v0 = vadd.f32 %v3264_v54, %v302_v60 }
 0x34a   :  { %v314_v62 = vpack.c.bf16 %v311_v59, %v310_v58  ;;  %v303_v63 = vmul.f32 %v3263_v48, %v293_v57 }
 0x34c   :  { %3543 = vmatprep.mubr.msk.bf16.mxu1 %vm162_vm1, %v314_v62  ;;  %v313_v1 = vadd.f32 %v3264_v54, %v303_v63 }
 0x34e   :  { %v315_v2 = vpack.c.bf16 %v313_v1, %v312_v0 }
 0x350   :  { %3544 = vmatmul.mubr.msk.bf16.vlgmr.msra.gmra.mxu1 %vm162_vm1, %v315_v2 }
 0x410   :  { %v3545_v3 = vpop.f32.mrf.mxu1 }
 0x411   :  { %v388_v9 = vadd.f32 %v3545_v3, %v3265_v5 }
 0x412   :  { %v379_v7 = vpop.f32.mrf.mxu1 }
 0x413   :  { %v380_v13 = vadd.f32 %v3265_v5, %v379_v7 }
 0x414   :  { %v3546_v8 = vpop.f32.mrf.mxu1 }
 0x415   :  { %v391_v11 = vadd.f32 %v3546_v8, %v3265_v5 }
 0x416   :  { %v382_v12 = vpop.f32.mrf.mxu1 }
 0x417   :  { %v4264_v14 = vpack.c.bf16 %v391_v11, %v388_v9  ;;  %v383_v15 = vadd.f32 %v3265_v5, %v382_v12 }
 0x419   :  { %v4266_v16 = vpack.c.bf16 %v383_v15, %v380_v13  ;;  %400 = vrot.lane.b32.xlu0 %v4264_v14, %s4068_s2 }
 0x41b   :  { %398 = vrot.lane.b32.xlu1 %v4266_v16, %s4068_s2  ;;  %3551 = vmatprep.mubr.msk.bf16.mxu1 %vm402_vm2, %v4266_v16 }
 0x48b   :  { %v401_v17 = vpop.permute.xlu0 %400 }
 0x48c   :  { %3787 = vmatprep.subr.msk.bf16.mxu1 %vm402_vm2, %v401_v17  ;;  %v413_v18 = vsel %vm402_vm2, %v401_v17, 0 }
 0x48d   :  { %3548 = vmatpush3.bf16.xpose.msra.mxu1 %v413_v18  ;;  %v399_v19 = vpop.permute.xlu1 %398 }
 0x48e   :  { %3788 = vmatprep.subr.msk.bf16.mxu1 %vm402_vm2, %v399_v19  ;;  %v410_v20 = vsel %vm402_vm2, %v399_v19, 0 }
 0x495   :  { %3550 = vmatpush3.bf16.xpose.msra.mxu1 %v410_v20 }
 0x49c   :  { %3552 = vmatmul.mubr.msk.bf16.vlgmr.msra.gmra.mxu1 %vm402_vm2, %v4264_v14 }
 0x55c   :  { %v3553_v21 = vpop.f32.mrf.mxu1 }
 0x55d   :  { %v458_v33 = vadd.f32 %v3553_v21, %v4301_v30  ;;  %v573_v21 = vld [vmem:[%s4886_s10] sm:$0xf] }
 0x55e   :  { %v449_v23 = vpop.f32.mrf.mxu1 }
 0x55f   :  { %v450_v25 = vadd.f32 %v449_v23, %v4283_v22  ;;  %v470_v36 = vsel %vm162_vm1, %v458_v33, -inf  ;;  %v820_v23 = vsel %vm760_vm3, %v573_v21, 0 }
 0x560   :  { %v3554_v26 = vpop.f32.mrf.mxu1 }
 0x561   :  { %v461_v28 = vadd.f32 %v3554_v26, %v4288_v24  ;;  %v464_v29 = vsel %vm162_vm1, %v450_v25, -inf }
 0x562   :  { %v452_v31 = vpop.f32.mrf.mxu1  ;;  %465 = vmax.xlane.f32.xlu1 %v464_v29 }
 0x563   :  { %v453_v32 = vadd.f32 %v452_v31, %v4294_v27  ;;  %v473_v35 = vsel %vm162_vm1, %v461_v28, -inf }
 0x565   :  { %v467_v34 = vsel %vm162_vm1, %v453_v32, -inf }
 0x566   :  { %468 = vmax.xlane.f32.xlu0 %v467_v34  ;;  %474 = vmax.xlane.f32.xlu1 %v473_v35 }
 0x56a   :  { %471 = vmax.xlane.f32.xlu0 %v470_v36 }
 0x577   :  { %510 = vrot.lane.b32.xlu1 %v4266_v16, %s4069_s30 }
 0x5eb   :  { %v466_v37 = vpop.xlane.xlu1 %465 }
 0x5ec   :  { %v476_v42 = vsub.f32 %v450_v25, %v466_v37 }
 0x5ee   :  { %v480_v47 = vmul.f32 1.442695, %v476_v42 }
 0x5ef   :  { %v469_v38 = vpop.xlane.xlu0 %468  ;;  %v475_v39 = vpop.xlane.xlu1 %474 }
 0x5f0   :  { %v477_v40 = vsub.f32 %v453_v32, %v469_v38  ;;  %v479_v41 = vsub.f32 %v461_v28, %v475_v39 }
 0x5f2   :  { %v486_v43 = vmul.f32 1.442695, %v479_v41  ;;  %v482_v44 = vmul.f32 1.442695, %v477_v40 }
 0x5f3   :  { %v472_v45 = vpop.xlane.xlu0 %471  ;;  %v511_v57 = vpop.permute.xlu1 %510 }
 0x5f4   :  { %v478_v46 = vsub.f32 %v458_v33, %v472_v45  ;;  %3866 = vpow2.f32 %v486_v43 }
 0x5f5   :  { %3868 = vpow2.f32 %v482_v44 }
 0x5f6   :  { %v484_v48 = vmul.f32 1.442695, %v478_v46 }
 0x5f8   :  { %3870 = vpow2.f32 %v484_v48 }
 0x5f9   :  { %3872 = vpow2.f32 %v480_v47 }
 0x601   :  { %v3867_v49 = vpop.eup %3866 }
 0x602   :  { %v497_v50 = vsel %vm162_vm1, %v3867_v49, 0.0  ;;  %v3869_v51 = vpop.eup %3868 }
 0x603   :  { %498 = vadd.xlane.f32.xlu1 %v497_v50  ;;  %v491_v55 = vsel %vm162_vm1, %v3869_v51, 0.0 }
 0x605   :  { %v3871_v52 = vpop.eup %3870 }
 0x606   :  { %v494_v53 = vsel %vm162_vm1, %v3871_v52, 0.0  ;;  %v3873_v54 = vpop.eup %3872 }
 0x607   :  { %495 = vadd.xlane.f32.xlu0 %v494_v53  ;;  %492 = vadd.xlane.f32.xlu1 %v491_v55  ;;  %v488_v56 = vsel %vm162_vm1, %v3873_v54, 0.0 }
 0x60b   :  { %489 = vadd.xlane.f32.xlu0 %v488_v56 }
 0x618   :  { %580 = vrot.lane.b32.xlu1 %v4264_v14, %s4070_s0 }
 0x61c   :  { %578 = vrot.lane.b32.xlu1 %v4266_v16, %s4070_s0 }
 0x620   :  { %576 = vrot.lane.b32.xlu1 %v4264_v14, %s4071_s21 }
 0x621   :  { %512 = vrot.lane.b32.xlu0 %v4264_v14, %s4069_s30 }
 0x625   :  { %574 = vrot.lane.b32.xlu0 %v4266_v16, %s4071_s21 }
 0x68c   :  { %v499_v58 = vpop.xlane.xlu1 %498 }
 0x690   :  { %v496_v59 = vpop.xlane.xlu0 %495  ;;  %v493_v60 = vpop.xlane.xlu1 %492 }
 0x691   :  { %3874 = vrcp.f32 %v496_v59 }
 0x692   :  { %3876 = vrcp.f32 %v493_v60 }
 0x693   :  { %3878 = vrcp.f32 %v499_v58 }
 0x694   :  { %v490_v62 = vpop.xlane.xlu0 %489  ;;  %v581_v0 = vpop.permute.xlu1 %580 }
 0x695   :  { %3880 = vrcp.f32 %v490_v62  ;;  %v592_v17 = vsel %vm402_vm2, %v581_v0, 0 }
 0x698   :  { %v513_v63 = vpop.permute.xlu0 %512  ;;  %v579_v18 = vpop.permute.xlu1 %578 }
 0x699   :  { %3555 = vmatprep.subr.bf16.mxu0 %v513_v63  ;;  %v589_v19 = vsel %vm402_vm2, %v579_v18, 0 }
 0x69a   :  { %3556 = vmatpush3.bf16.msra.mxu0 %v513_v63 }
 0x69b   :  { %3557 = vmatprep.subr.bf16.mxu0 %v511_v57 }
 0x69c   :  { %v575_v15 = vpop.permute.xlu0 %574  ;;  %v577_v20 = vpop.permute.xlu1 %576 }
 0x69e   :  { %3558 = vmatpush3.bf16.msra.mxu0 %v511_v57  ;;  %v3875_v1 = vpop.eup %3874 }
 0x69f   :  { %3789 = vmatprep.subr.msk.bf16.mxu0 %vm402_vm2, %v581_v0  ;;  %v3877_v2 = vpop.eup %3876  ;;  %v506_v7 = vmul.f32 %v3875_v1, %v3871_v52 }
 0x6a0   :  { %v3879_v3 = vpop.eup %3878  ;;  %v505_v9 = vmul.f32 %v3877_v2, %v3869_v51 }
 0x6a1   :  { %v507_v11 = vmul.f32 %v3879_v3, %v3867_v49 }
 0x6a2   :  { %v3881_v5 = vpop.eup %3880 }
 0x6a3   :  { %v504_v8 = vmul.f32 %v3881_v5, %v3873_v54  ;;  %v509_v13 = vpack.c.bf16 %v507_v11, %v506_v7  ;;  %v3278_v11 = vld [vmem:[%s4886_s10 + $0x4] sm:$0xf] }
 0x6a5   :  { %v508_v12 = vpack.c.bf16 %v505_v9, %v504_v8 }
 0x6a7   :  { %3559 = vmatprep.mubr.msk.bf16.mxu0 %vm162_vm1, %v508_v12 }
 0x6a8   :  { %3560 = vmatmul.mubr.msk.bf16.vlgmr.msra.gmra.mxu0 %vm162_vm1, %v509_v13 }
 0x6a9   :  { %3564 = vmatpush3.bf16.xpose.msra.mxu0 %v592_v17  ;;  %3567 = vmatprep.mubr.msk.bf16.mxu0 %vm402_vm2, %v575_v15 }
 0x6aa   :  { %3790 = vmatprep.subr.msk.bf16.mxu0 %vm402_vm2, %v579_v18 }
 0x6b1   :  { %3566 = vmatpush3.bf16.xpose.msra.mxu0 %v589_v19 }
 0x6b2   :  { %3792 = vmatprep.subr.msk.bf16.mxu0 %vm760_vm3, %v573_v21 }
 0x6b8   :  { %3568 = vmatmul.mubr.msk.bf16.vlgmr.msra.gmra.mxu0 %vm402_vm2, %v577_v20 }
 0x6b9   :  { %3586 = vmatpush3.bf16.msra.mxu0 %v820_v23 }
 0x768   :  { %v3561_v25 = vpop.f32.mrf.mxu0 }
 0x76a   :  { %v556_v26 = vpop.f32.mrf.mxu0 }
 0x76c   :  { %v3562_v28 = vpop.f32.mrf.mxu0 }
 0x76d   :  { %v572_v32 = vpack.c.bf16 %v3562_v28, %v3561_v25 }
 0x76e   :  { %v559_v29 = vpop.f32.mrf.mxu0 }
 0x76f   :  { %v571_v31 = vpack.c.bf16 %v559_v29, %v556_v26  ;;  %v762_v26 = vsel %vm760_vm3, %v3278_v11, 0 }
 0x771   :  { %3587 = vmatprep.mubr.msk.bf16.mxu0 %vm402_vm2, %v571_v31 }
 0x772   :  { %3588 = vmatmul.mubr.msk.bf16.vlgmr.msra.gmra.mxu0 %vm402_vm2, %v572_v32 }
 0x778   :  { %v3569_v33 = vpop.f32.mrf.mxu0 }
 0x779   :  { %v637_v37 = vadd.f32 %v3569_v33, %v4301_v30 }
 0x77a   :  { %v628_v34 = vpop.f32.mrf.mxu0 }
 0x77b   :  { %v629_v35 = vadd.f32 %v628_v34, %v4283_v22  ;;  %v649_v43 = vsel %vm162_vm1, %v637_v37, -inf }
 0x77c   :  { %v3570_v36 = vpop.f32.mrf.mxu0 }
 0x77d   :  { %v643_v38 = vsel %vm162_vm1, %v629_v35, -inf  ;;  %v640_v41 = vadd.f32 %v3570_v36, %v4288_v24 }
 0x77e   :  { %v631_v39 = vpop.f32.mrf.mxu0  ;;  %644 = vmax.xlane.f32.xlu0 %v643_v38 }
 0x77f   :  { %v632_v40 = vadd.f32 %v631_v39, %v4294_v27  ;;  %v652_v44 = vsel %vm162_vm1, %v640_v41, -inf }
 0x781   :  { %v646_v42 = vsel %vm162_vm1, %v632_v40, -inf }
 0x782   :  { %647 = vmax.xlane.f32.xlu1 %v646_v42  ;;  %650 = vmax.xlane.f32.xlu0 %v649_v43 }
 0x786   :  { %653 = vmax.xlane.f32.xlu0 %v652_v44 }
 0x807   :  { %v645_v45 = vpop.xlane.xlu0 %644 }
 0x808   :  { %v655_v46 = vsub.f32 %v629_v35, %v645_v45 }
 0x80a   :  { %v659_v52 = vmul.f32 1.442695, %v655_v46 }
 0x80b   :  { %v648_v47 = vpop.xlane.xlu1 %647  ;;  %v651_v48 = vpop.xlane.xlu0 %650 }
 0x80c   :  { %v657_v49 = vsub.f32 %v637_v37, %v651_v48  ;;  %v656_v50 = vsub.f32 %v632_v40, %v648_v47 }
 0x80e   :  { %v663_v51 = vmul.f32 1.442695, %v657_v49  ;;  %v661_v55 = vmul.f32 1.442695, %v656_v50 }
 0x80f   :  { %v654_v53 = vpop.xlane.xlu0 %653 }
 0x810   :  { %v658_v54 = vsub.f32 %v640_v41, %v654_v53  ;;  %3882 = vpow2.f32 %v663_v51 }
 0x811   :  { %3884 = vpow2.f32 %v659_v52 }
 0x812   :  { %v665_v56 = vmul.f32 1.442695, %v658_v54 }
 0x814   :  { %3886 = vpow2.f32 %v665_v56 }
 0x815   :  { %3888 = vpow2.f32 %v661_v55 }
 0x81d   :  { %v3883_v57 = vpop.eup %3882 }
 0x81e   :  { %v673_v58 = vsel %vm162_vm1, %v3883_v57, 0.0  ;;  %v3885_v59 = vpop.eup %3884 }
 0x81f   :  { %674 = vadd.xlane.f32.xlu0 %v673_v58  ;;  %v667_v0 = vsel %vm162_vm1, %v3885_v59, 0.0 }
 0x821   :  { %v3887_v60 = vpop.eup %3886 }
 0x822   :  { %v676_v62 = vsel %vm162_vm1, %v3887_v60, 0.0  ;;  %v3889_v63 = vpop.eup %3888 }
 0x823   :  { %677 = vadd.xlane.f32.xlu1 %v676_v62  ;;  %668 = vadd.xlane.f32.xlu0 %v667_v0  ;;  %v670_v1 = vsel %vm162_vm1, %v3889_v63, 0.0 }
 0x827   :  { %671 = vadd.xlane.f32.xlu1 %v670_v1 }
 0x838   :  { %689 = vrot.lane.b32.xlu1 %v4266_v16, %s4072_s24 }
 0x839   :  { %691 = vrot.lane.b32.xlu0 %v4264_v14, %s4072_s24 }
 0x83c   :  { %877 = vrot.lane.b32.xlu1 %v4264_v14, %s4073_s23 }
 0x83d   :  { %871 = vrot.lane.b32.xlu0 %v4266_v16, %s4074_s25 }
 0x840   :  { %875 = vrot.lane.b32.xlu1 %v4266_v16, %s4073_s23 }
 0x841   :  { %1119 = vrot.lane.b32.xlu0 %v4264_v14, %s4906_s26 }
 0x844   :  { %873 = vrot.lane.b32.xlu1 %v4264_v14, %s4074_s25 }
 0x845   :  { %1113 = vrot.lane.b32.xlu0 %v4266_v16, %s4904_s27 }
 0x848   :  { %1117 = vrot.lane.b32.xlu1 %v4266_v16, %s4906_s26 }
 0x84c   :  { %1115 = vrot.lane.b32.xlu1 %v4264_v14, %s4904_s27  ;;  %s4919_s27 = smov 104  }
 0x8a8   :  { %v675_v2 = vpop.xlane.xlu0 %674 }
 0x8ac   :  { %v678_v3 = vpop.xlane.xlu1 %677  ;;  %v669_v5 = vpop.xlane.xlu0 %668 }
 0x8ad   :  { %3890 = vrcp.f32 %v678_v3 }
 0x8ae   :  { %3892 = vrcp.f32 %v669_v5 }
 0x8af   :  { %3894 = vrcp.f32 %v675_v2 }
 0x8b0   :  { %v672_v7 = vpop.xlane.xlu1 %671  ;;  %v692_v8 = vpop.permute.xlu0 %691 }
 0x8b1   :  { %3896 = vrcp.f32 %v672_v7  ;;  %3571 = vmatprep.subr.bf16.mxu1 %v692_v8 }
 0x8b2   :  { %3572 = vmatpush3.bf16.msra.mxu1 %v692_v8 }
 0x8b4   :  { %v690_v9 = vpop.permute.xlu1 %689  ;;  %v872_v36 = vpop.permute.xlu0 %871 }
 0x8b5   :  { %3573 = vmatprep.subr.bf16.mxu1 %v690_v9 }
 0x8b6   :  { %3574 = vmatpush3.bf16.msra.mxu1 %v690_v9 }
 0x8b7   :  { %3791 = vmatprep.subr.msk.bf16.mxu1 %vm760_vm3, %v3278_v11 }
 0x8b8   :  { %v878_v28 = vpop.permute.xlu1 %877  ;;  %v1120_v40 = vpop.permute.xlu0 %1119 }
 0x8b9   :  { %v889_v37 = vsel %vm402_vm2, %v878_v28, 0  ;;  %v1131_v43 = vsel %vm402_vm2, %v1120_v40, 0 }
 0x8ba   :  { %v3891_v12 = vpop.eup %3890 }
 0x8bb   :  { %v3893_v13 = vpop.eup %3892  ;;  %v686_v18 = vmul.f32 %v3891_v12, %v3887_v60 }
 0x8bc   :  { %v3895_v15 = vpop.eup %3894  ;;  %v683_v19 = vmul.f32 %v3893_v13, %v3885_v59  ;;  %v876_v38 = vpop.permute.xlu1 %875 }
 0x8bd   :  { %v685_v21 = vmul.f32 %v3895_v15, %v3883_v57  ;;  %v886_v39 = vsel %vm402_vm2, %v876_v38, 0  ;;  %v1114_v42 = vpop.permute.xlu0 %1113 }
 0x8be   :  { %v3897_v17 = vpop.eup %3896 }
 0x8bf   :  { %v684_v20 = vmul.f32 %v3897_v17, %v3889_v63  ;;  %v688_v25 = vpack.c.bf16 %v686_v18, %v685_v21 }
 0x8c0   :  { %v874_v41 = vpop.permute.xlu1 %873 }
 0x8c1   :  { %v687_v23 = vpack.c.bf16 %v684_v20, %v683_v19 }
 0x8c3   :  { %3575 = vmatprep.mubr.msk.bf16.mxu1 %vm162_vm1, %v687_v23 }
 0x8c4   :  { %3576 = vmatmul.mubr.msk.bf16.vlgmr.msra.gmra.mxu1 %vm162_vm1, %v688_v25  ;;  %v1118_v44 = vpop.permute.xlu1 %1117 }
 0x8c5   :  { %3580 = vmatpush3.bf16.msra.mxu1 %v762_v26  ;;  %v1128_v45 = vsel %vm402_vm2, %v1118_v44, 0 }
 0x8c6   :  { %3793 = vmatprep.subr.msk.bf16.mxu1 %vm402_vm2, %v878_v28 }
 0x8c8   :  { %v1116_v46 = vpop.permute.xlu1 %1115 }
 0x984   :  { %v3577_v29 = vpop.f32.mrf.mxu1 }
 0x986   :  { %v735_v31 = vpop.f32.mrf.mxu1 }
 0x988   :  { %v3578_v32 = vpop.f32.mrf.mxu1 }
 0x989   :  { %v751_v35 = vpack.c.bf16 %v3578_v32, %v3577_v29 }
 0x98a   :  { %v738_v33 = vpop.f32.mrf.mxu1 }
 0x98b   :  { %v750_v34 = vpack.c.bf16 %v738_v33, %v735_v31 }
 0x98d   :  { %3581 = vmatprep.mubr.msk.bf16.mxu1 %vm402_vm2, %v750_v34 }
 0x98e   :  { %3582 = vmatmul.mubr.msk.bf16.vlgmr.msra.gmra.mxu1 %vm402_vm2, %v751_v35 }
 0x98f   :  { %3592 = vmatpush3.bf16.xpose.msra.mxu1 %v889_v37  ;;  %3595 = vmatprep.mubr.msk.bf16.mxu1 %vm402_vm2, %v872_v36 }
 0x990   :  { %3794 = vmatprep.subr.msk.bf16.mxu1 %vm402_vm2, %v876_v38 }
 0x997   :  { %3594 = vmatpush3.bf16.xpose.msra.mxu1 %v886_v39 }
 0x998   :  { %3796 = vmatprep.subr.msk.bf16.mxu1 %vm402_vm2, %v1120_v40 }
 0x99e   :  { %3596 = vmatmul.mubr.msk.bf16.vlgmr.msra.gmra.mxu1 %vm402_vm2, %v874_v41 }
 0x99f   :  { %3614 = vmatpush3.bf16.xpose.msra.mxu1 %v1131_v43  ;;  %3617 = vmatprep.mubr.msk.bf16.mxu1 %vm402_vm2, %v1114_v42 }
 0x9a0   :  { %3797 = vmatprep.subr.msk.bf16.mxu1 %vm402_vm2, %v1118_v44 }
 0x9a7   :  { %3616 = vmatpush3.bf16.xpose.msra.mxu1 %v1128_v45 }
 0x9ae   :  { %3618 = vmatmul.mubr.msk.bf16.vlgmr.msra.gmra.mxu1 %vm402_vm2, %v1116_v46 }
 0xa4e   :  { %v4392_v47 = vpop.f32.mrf.mxu1 }
 0xa50   :  { %v4394_v48 = vpop.f32.mrf.mxu1 }
 0xa52   :  { %v4396_v49 = vpop.f32.mrf.mxu1 }
 0xa54   :  { %v4398_v50 = vpop.f32.mrf.mxu1 }
 0xa5e   :  { %v3597_v51 = vpop.f32.mrf.mxu1 }
 0xa5f   :  { %v934_v55 = vadd.f32 %v3597_v51, %v4301_v30 }
 0xa60   :  { %v925_v52 = vpop.f32.mrf.mxu1 }
 0xa61   :  { %v926_v53 = vadd.f32 %v925_v52, %v4283_v22  ;;  %v946_v62 = vsel %vm162_vm1, %v934_v55, -inf }
 0xa62   :  { %v3598_v54 = vpop.f32.mrf.mxu1 }
 0xa63   :  { %v940_v56 = vsel %vm162_vm1, %v926_v53, -inf  ;;  %v937_v59 = vadd.f32 %v3598_v54, %v4288_v24 }
 0xa64   :  { %v928_v57 = vpop.f32.mrf.mxu1  ;;  %941 = vmax.xlane.f32.xlu0 %v940_v56 }
 0xa65   :  { %v929_v58 = vadd.f32 %v928_v57, %v4294_v27  ;;  %v949_v63 = vsel %vm162_vm1, %v937_v59, -inf }
 0xa67   :  { %v943_v60 = vsel %vm162_vm1, %v929_v58, -inf }
 0xa68   :  { %944 = vmax.xlane.f32.xlu1 %v943_v60  ;;  %947 = vmax.xlane.f32.xlu0 %v946_v62 }
 0xa6c   :  { %950 = vmax.xlane.f32.xlu0 %v949_v63 }
 0xa6e   :  { %v3619_v28 = vpop.f32.mrf.mxu1 }
 0xa6f   :  { %v1176_v35 = vadd.f32 %v3619_v28, %v4301_v30 }
 0xa70   :  { %v1167_v29 = vpop.f32.mrf.mxu1 }
 0xa71   :  { %v1168_v34 = vadd.f32 %v1167_v29, %v4283_v22  ;;  %v1188_v39 = vsel %vm162_vm1, %v1176_v35, -inf }
 0xa72   :  { %v3620_v31 = vpop.f32.mrf.mxu1 }
 0xa73   :  { %v1179_v37 = vadd.f32 %v3620_v31, %v4288_v24  ;;  %v1182_v38 = vsel %vm162_vm1, %v1168_v34, -inf }
 0xa74   :  { %v1170_v32 = vpop.f32.mrf.mxu1 }
 0xa75   :  { %v1171_v33 = vadd.f32 %v1170_v32, %v4294_v27  ;;  %v1191_v40 = vsel %vm162_vm1, %v1179_v37, -inf }
 0xa77   :  { %v1185_v36 = vsel %vm162_vm1, %v1171_v33, -inf }
 0xaed   :  { %v942_v0 = vpop.xlane.xlu0 %941 }
 0xaee   :  { %v952_v1 = vsub.f32 %v926_v53, %v942_v0 }
 0xaf0   :  { %v956_v9 = vmul.f32 1.442695, %v952_v1 }
 0xaf1   :  { %v945_v2 = vpop.xlane.xlu1 %944  ;;  %v948_v3 = vpop.xlane.xlu0 %947 }
 0xaf2   :  { %v954_v5 = vsub.f32 %v934_v55, %v948_v3  ;;  %v953_v7 = vsub.f32 %v929_v58, %v945_v2 }
 0xaf4   :  { %v960_v8 = vmul.f32 1.442695, %v954_v5  ;;  %v958_v13 = vmul.f32 1.442695, %v953_v7 }
 0xaf5   :  { %v951_v11 = vpop.xlane.xlu0 %950 }
 0xaf6   :  { %v955_v12 = vsub.f32 %v937_v59, %v951_v11  ;;  %3898 = vpow2.f32 %v960_v8 }
 0xaf7   :  { %3900 = vpow2.f32 %v956_v9 }
 0xaf8   :  { %v962_v15 = vmul.f32 1.442695, %v955_v12 }
 0xafa   :  { %3902 = vpow2.f32 %v962_v15 }
 0xafb   :  { %3904 = vpow2.f32 %v958_v13 }
 0xb03   :  { %v3899_v17 = vpop.eup %3898 }
 0xb04   :  { %v970_v18 = vsel %vm162_vm1, %v3899_v17, 0.0  ;;  %v3901_v19 = vpop.eup %3900 }
 0xb05   :  { %971 = vadd.xlane.f32.xlu0 %v970_v18  ;;  %v964_v25 = vsel %vm162_vm1, %v3901_v19, 0.0 }
 0xb07   :  { %v3903_v20 = vpop.eup %3902 }
 0xb08   :  { %v973_v21 = vsel %vm162_vm1, %v3903_v20, 0.0  ;;  %v3905_v23 = vpop.eup %3904 }
 0xb09   :  { %974 = vadd.xlane.f32.xlu1 %v973_v21  ;;  %965 = vadd.xlane.f32.xlu0 %v964_v25  ;;  %v967_v26 = vsel %vm162_vm1, %v3905_v23, 0.0  ;;  %v3589_v21 = vpop.f32.mrf.mxu0 }
 0xb0d   :  { %968 = vadd.xlane.f32.xlu1 %v967_v26 }
 0xb1e   :  { %986 = vrot.lane.b32.xlu1 %v4266_v16, %s4902_s4 }
 0xb1f   :  { %988 = vrot.lane.b32.xlu0 %v4264_v14, %s4902_s4 }
 0xb3e   :  { %1186 = vmax.xlane.f32.xlu0 %v1185_v36 }
 0xb42   :  { %1183 = vmax.xlane.f32.xlu1 %v1182_v38  ;;  %1189 = vmax.xlane.f32.xlu0 %v1188_v39 }
 0xb46   :  { %1192 = vmax.xlane.f32.xlu1 %v1191_v40 }
 0xb8e   :  { %v972_v41 = vpop.xlane.xlu0 %971 }
 0xb92   :  { %v975_v27 = vpop.xlane.xlu1 %974  ;;  %v966_v42 = vpop.xlane.xlu0 %965 }
 0xb93   :  { %3906 = vrcp.f32 %v975_v27 }
 0xb94   :  { %3908 = vrcp.f32 %v966_v42 }
 0xb95   :  { %3910 = vrcp.f32 %v972_v41 }
 0xb96   :  { %v969_v22 = vpop.xlane.xlu1 %968  ;;  %v989_v30 = vpop.permute.xlu0 %988 }
 0xb97   :  { %3912 = vrcp.f32 %v969_v22  ;;  %3599 = vmatprep.subr.bf16.mxu0 %v989_v30 }
 0xb98   :  { %3600 = vmatpush3.bf16.msra.mxu0 %v989_v30 }
 0xb9a   :  { %v987_v24 = vpop.permute.xlu1 %986 }
 0xb9b   :  { %3601 = vmatprep.subr.bf16.mxu0 %v987_v24 }
 0xb9c   :  { %3602 = vmatpush3.bf16.msra.mxu0 %v987_v24 }
 0xba0   :  { %v3907_v43 = vpop.eup %3906 }
 0xba1   :  { %v3909_v44 = vpop.eup %3908  ;;  %v983_v51 = vmul.f32 %v3907_v43, %v3903_v20 }
 0xba2   :  { %v3911_v45 = vpop.eup %3910  ;;  %v980_v52 = vmul.f32 %v3909_v44, %v3901_v19  ;;  %v3287_v19 = vld [vmem:[%s4886_s10 + $0x8] sm:$0xf] }
 0xba3   :  { %v982_v54 = vmul.f32 %v3911_v45, %v3899_v17  ;;  %3795 = vmatprep.subr.msk.bf16.mxu0 %vm760_vm3, %v3287_v19  ;;  %v1058_v20 = vsel %vm760_vm3, %v3287_v19, 0  ;;  %v3294_v45 = vld [vmem:[%s4886_s10 + $0xc] sm:$0xf] }
 0xba4   :  { %v3913_v46 = vpop.eup %3912 }
 0xba5   :  { %v981_v53 = vmul.f32 %v3913_v46, %v3905_v23  ;;  %v985_v56 = vpack.c.bf16 %v983_v51, %v982_v54  ;;  %v856_v23 = vpop.f32.mrf.mxu0  ;;  %v1300_v46 = vsel %vm760_vm3, %v3294_v45, 0  ;;  %v865_v51 = vadd.f32 %v3589_v21, %v4392_v47 }
 0xba7   :  { %v984_v55 = vpack.c.bf16 %v981_v53, %v980_v52  ;;  %v3590_v25 = vpop.f32.mrf.mxu0  ;;  %v857_v53 = vadd.f32 %v856_v23, %v4394_v48 }
 0xba9   :  { %3603 = vmatprep.mubr.msk.bf16.mxu0 %vm162_vm1, %v984_v55  ;;  %v859_v26 = vpop.f32.mrf.mxu0 }
 0xbaa   :  { %3604 = vmatmul.mubr.msk.bf16.vlgmr.msra.gmra.mxu0 %vm162_vm1, %v985_v56  ;;  %v868_v56 = vadd.f32 %v3590_v25, %v4396_v49 }
 0xbab   :  { %3608 = vmatpush3.bf16.msra.mxu0 %v1058_v20 }
 0xbc7   :  { %v1187_v57 = vpop.xlane.xlu0 %1186 }
 0xbc8   :  { %v1195_v63 = vsub.f32 %v1171_v33, %v1187_v57 }
 0xbca   :  { %v1200_v5 = vmul.f32 1.442695, %v1195_v63 }
 0xbcb   :  { %v1184_v58 = vpop.xlane.xlu1 %1183  ;;  %v1190_v60 = vpop.xlane.xlu0 %1189 }
 0xbcc   :  { %v1194_v59 = vsub.f32 %v1168_v34, %v1184_v58  ;;  %v1196_v62 = vsub.f32 %v1176_v35, %v1190_v60 }
 0xbce   :  { %v1198_v0 = vmul.f32 1.442695, %v1194_v59  ;;  %v1202_v1 = vmul.f32 1.442695, %v1196_v62  ;;  %v860_v59 = vadd.f32 %v859_v26, %v4398_v50 }
 0xbcf   :  { %v1193_v2 = vpop.xlane.xlu1 %1192 }
 0xbd0   :  { %v1197_v3 = vsub.f32 %v1179_v37, %v1193_v2  ;;  %3914 = vpow2.f32 %v1202_v1 }
 0xbd1   :  { %3916 = vpow2.f32 %v1198_v0 }
 0xbd2   :  { %v1204_v7 = vmul.f32 1.442695, %v1197_v3 }
 0xbd4   :  { %3918 = vpow2.f32 %v1204_v7 }
 0xbd5   :  { %3920 = vpow2.f32 %v1200_v5 }
 0xbdd   :  { %v3915_v8 = vpop.eup %3914 }
 0xbde   :  { %v1212_v9 = vsel %vm162_vm1, %v3915_v8, 0.0  ;;  %v3917_v11 = vpop.eup %3916 }
 0xbdf   :  { %1213 = vadd.xlane.f32.xlu0 %v1212_v9  ;;  %v1206_v17 = vsel %vm162_vm1, %v3917_v11, 0.0 }
 0xbe1   :  { %v3919_v12 = vpop.eup %3918 }
 0xbe2   :  { %v1215_v13 = vsel %vm162_vm1, %v3919_v12, 0.0  ;;  %v3921_v15 = vpop.eup %3920 }
 0xbe3   :  { %1216 = vadd.xlane.f32.xlu1 %v1215_v13  ;;  %1207 = vadd.xlane.f32.xlu0 %v1206_v17  ;;  %v1209_v18 = vsel %vm162_vm1, %v3921_v15, 0.0 }
 0xbe7   :  { %1210 = vadd.xlane.f32.xlu1 %v1209_v18 }
 0xbf8   :  { %1228 = vrot.lane.b32.xlu1 %v4266_v16, %s4900_s22 }
 0xbf9   :  { %1230 = vrot.lane.b32.xlu0 %v4264_v14, %s4900_s22 }
 0xc68   :  { %v1214_v28 = vpop.xlane.xlu0 %1213 }
 0xc6a   :  { %v3605_v29 = vpop.f32.mrf.mxu0 }
 0xc6c   :  { %v1217_v31 = vpop.xlane.xlu1 %1216  ;;  %v1032_v32 = vpop.f32.mrf.mxu0 }
 0xc6d   :  { %v1208_v33 = vpop.xlane.xlu0 %1207  ;;  %3922 = vrcp.f32 %v1217_v31 }
 0xc6e   :  { %v3606_v34 = vpop.f32.mrf.mxu0  ;;  %3924 = vrcp.f32 %v1208_v33 }
 0xc6f   :  { %3926 = vrcp.f32 %v1214_v28  ;;  %v1048_v38 = vpack.c.bf16 %v3606_v34, %v3605_v29 }
 0xc70   :  { %v1035_v35 = vpop.f32.mrf.mxu0  ;;  %v1211_v36 = vpop.xlane.xlu1 %1210 }
 0xc71   :  { %v1047_v37 = vpack.c.bf16 %v1035_v35, %v1032_v32  ;;  %3928 = vrcp.f32 %v1211_v36  ;;  %v1231_v16 = vpop.permute.xlu0 %1230 }
 0xc72   :  { %3621 = vmatprep.subr.bf16.mxu0 %v1231_v16 }
 0xc73   :  { %3609 = vmatprep.mubr.msk.bf16.mxu0 %vm402_vm2, %v1047_v37 }
 0xc74   :  { %3610 = vmatmul.mubr.msk.bf16.vlgmr.msra.gmra.mxu0 %vm402_vm2, %v1048_v38  ;;  %v1229_v14 = vpop.permute.xlu1 %1228 }
 0xc75   :  { %3622 = vmatpush3.bf16.msra.mxu0 %v1231_v16 }
 0xc76   :  { %3623 = vmatprep.subr.bf16.mxu0 %v1229_v14 }
 0xc79   :  { %3624 = vmatpush3.bf16.msra.mxu0 %v1229_v14 }
 0xc7a   :  { %v3923_v39 = vpop.eup %3922  ;;  %3798 = vmatprep.subr.msk.bf16.mxu0 %vm760_vm3, %v3294_v45 }
 0xc7b   :  { %v3925_v40 = vpop.eup %3924  ;;  %v1225_v42 = vmul.f32 %v3923_v39, %v3919_v12  ;;  %v3297_v12 = vld [vmem:[%s4887_s11] ss:$0 sm:$0xff] }
 0xc7c   :  { %v3927_v41 = vpop.eup %3926  ;;  %v1222_v22 = vmul.f32 %v3925_v40, %v3917_v11 }
 0xc7d   :  { %v1224_v24 = vmul.f32 %v3927_v41, %v3915_v8 }
 0xc7e   :  { %v3929_v27 = vpop.eup %3928 }
 0xc7f   :  { %v1223_v30 = vmul.f32 %v3929_v27, %v3921_v15  ;;  %v1227_v44 = vpack.c.bf16 %v1225_v42, %v1224_v24  ;;  %v3828_v24 = vld [vmem:[%s4890_s14 + $0x8] sm:$0xff]  }
 0xc80   :  { %3635 = vmatprep.subr.bf16.mxu1 %v3828_v24 }
 0xc81   :  { %v1226_v43 = vpack.c.bf16 %v1223_v30, %v1222_v22  ;;  %3636 = vmatpush3.bf16.msra.mxu1 %v3828_v24 }
 0xc83   :  { %3625 = vmatprep.mubr.msk.bf16.mxu0 %vm162_vm1, %v1226_v43  ;;  %v3829_v43 = vld [vmem:[%s4890_s14] sm:$0xff]  }
 0xc84   :  { %3626 = vmatmul.mubr.msk.bf16.vlgmr.msra.gmra.mxu0 %vm162_vm1, %v1227_v44  ;;  %3637 = vmatprep.subr.bf16.mxu1 %v3829_v43 }
 0xc85   :  { %3630 = vmatpush3.bf16.msra.mxu0 %v1300_v46  ;;  %3638 = vmatpush3.bf16.msra.mxu1 %v3829_v43 }
 0xd34   :  { %v3611_v52 = vpop.f32.mrf.mxu0 }
 0xd35   :  { %v1111_v54 = vadd.f32 %v3611_v52, %v865_v51 }
 0xd36   :  { %v1094_v55 = vpop.f32.mrf.mxu0 }
 0xd37   :  { %v1109_v57 = vadd.f32 %v1094_v55, %v857_v53 }
 0xd38   :  { %v3612_v58 = vpop.f32.mrf.mxu0 }
 0xd39   :  { %v1112_v60 = vadd.f32 %v3612_v58, %v868_v56 }
 0xd3a   :  { %v1097_v62 = vpop.f32.mrf.mxu0 }
 0xd3b   :  { %v1110_v63 = vadd.f32 %v1097_v62, %v860_v59 }
 0xd44   :  { %v3627_v0 = vpop.f32.mrf.mxu0 }
 0xd46   :  { %v1274_v1 = vpop.f32.mrf.mxu0 }
 0xd48   :  { %v3628_v2 = vpop.f32.mrf.mxu0 }
 0xd49   :  { %v1290_v47 = vpack.c.bf16 %v3628_v2, %v3627_v0 }
 0xd4a   :  { %v1277_v3 = vpop.f32.mrf.mxu0 }
 0xd4b   :  { %v1289_v5 = vpack.c.bf16 %v1277_v3, %v1274_v1  ;;  %v3299_v3 = vld [vmem:[%s4889_s13] ss:$0 sm:$0xff] }
 0xd4d   :  { %3631 = vmatprep.mubr.msk.bf16.mxu0 %vm402_vm2, %v1289_v5 }
 0xd4e   :  { %3632 = vmatmul.mubr.msk.bf16.vlgmr.msra.gmra.mxu0 %vm402_vm2, %v1290_v47 }
 0xe0e   :  { %v3633_v48 = vpop.f32.mrf.mxu0 }
 0xe0f   :  { %v1353_v9 = vadd.f32 %v3633_v48, %v1111_v54 }
 0xe10   :  { %v1336_v7 = vpop.f32.mrf.mxu0 }
 0xe11   :  { %v1351_v49 = vadd.f32 %v1336_v7, %v1109_v57  ;;  %v1357_v19 = vadd.f32 %v1353_v9, %v4229_v6 }
 0xe12   :  { %v3634_v8 = vpop.f32.mrf.mxu0 }
 0xe13   :  { %v1355_v50 = vadd.f32 %v1351_v49, %v4223_v61  ;;  %v1354_v11 = vadd.f32 %v3634_v8, %v1112_v60  ;;  %v4469_v25 = vadd.f32 %v3297_v12, %v1357_v19  ;;  %v3830_v19 = vld [vmem:[%s4892_s16 + $0x38] sm:$0xff]  }
 0xe14   :  { %v1339_v13 = vpop.f32.mrf.mxu0  ;;  %3643 = vmatprep.subr.bf16.mxu0 %v3830_v19 }
 0xe15   :  { %v4458_v15 = vadd.f32 %v3297_v12, %v1355_v50  ;;  %v1358_v17 = vadd.f32 %v1354_v11, %v4235_v10  ;;  %v1352_v18 = vadd.f32 %v1339_v13, %v1110_v63  ;;  %v1378_v6 = vsel %vm162_vm1, %v4469_v25, 0.0  ;;  %v3298_v63 = vld [vmem:[%s4888_s12] ss:$0 sm:$0xff]  ;;  %3644 = vmatpush3.bf16.msra.mxu0 %v3830_v19 }
 0xe17   :  { %v4462_v20 = vadd.f32 %v3297_v12, %v1358_v17  ;;  %v1356_v21 = vadd.f32 %v1352_v18, %v4227_v4  ;;  %v1372_v61 = vsel %vm162_vm1, %v4458_v15, 0.0 }
 0xe18   :  { %1373 = vadd.xlane.f32.xlu1 %v1372_v61  ;;  %v3832_v61 = vld [vmem:[%s4892_s16 + $0x28] sm:$0xff]  }
 0xe19   :  { %v4467_v23 = vadd.f32 %v3297_v12, %v1356_v21  ;;  %v1381_v26 = vsel %vm162_vm1, %v4462_v20, 0.0  ;;  %v3831_v21 = vld [vmem:[%s4892_s16 + $0x30] sm:$0xff]  }
 0xe1a   :  { %3645 = vmatprep.subr.bf16.mxu0 %v3831_v21 }
 0xe1b   :  { %v1375_v10 = vsel %vm162_vm1, %v4467_v23, 0.0  ;;  %3646 = vmatpush3.bf16.msra.mxu0 %v3831_v21 }
 0xe1c   :  { %1382 = vadd.xlane.f32.xlu1 %v1381_v26  ;;  %1376 = vadd.xlane.f32.xlu0 %v1375_v10  ;;  %v3833_v26 = vld [vmem:[%s4892_s16 + $0x20] sm:$0xff]   ;;  %v3834_v10 = vld [vmem:[%s4892_s16 + $0x18] sm:$0xff]  }
 0xe1d   :  { %3647 = vmatprep.subr.bf16.mxu0 %v3832_v61 }
 0xe1f   :  { %3648 = vmatpush3.bf16.msra.mxu0 %v3832_v61 }
 0xe20   :  { %1379 = vadd.xlane.f32.xlu0 %v1378_v6  ;;  %3649 = vmatprep.subr.bf16.mxu0 %v3833_v26  ;;  %v3835_v6 = vld [vmem:[%s4892_s16 + $0x10] sm:$0xff]  }
 0xe23   :  { %3650 = vmatpush3.bf16.msra.mxu0 %v3833_v26 }
 0xe24   :  { %3651 = vmatprep.subr.bf16.mxu0 %v3834_v10 }
 0xe27   :  { %3652 = vmatpush3.bf16.msra.mxu0 %v3834_v10 }
 0xe28   :  { %3653 = vmatprep.subr.bf16.mxu0 %v3835_v6 }
 0xe2b   :  { %3654 = vmatpush3.bf16.msra.mxu0 %v3835_v6 }
 0xea1   :  { %v1374_v4 = vpop.xlane.xlu1 %1373 }
 0xea2   :  { %v1384_v28 = vmul.f32 0.03125, %v1374_v4  ;;  %v3836_v4 = vld [vmem:[%s4892_s16 + $0x8] sm:$0xff]  }
 0xea3   :  { %3655 = vmatprep.subr.bf16.mxu0 %v3836_v4 }
 0xea4   :  { %v1388_v29 = vsub.f32 %v4458_v15, %v1384_v28  ;;  %3656 = vmatpush3.bf16.msra.mxu0 %v3836_v4  ;;  %v3837_v28 = vld [vmem:[%s4892_s16] sm:$0xff]  }
 0xea5   :  { %v1383_v31 = vpop.xlane.xlu1 %1382  ;;  %v1377_v32 = vpop.xlane.xlu0 %1376  ;;  %3657 = vmatprep.subr.bf16.mxu0 %v3837_v28 }
 0xea6   :  { %v1387_v33 = vmul.f32 0.03125, %v1383_v31  ;;  %v1385_v34 = vmul.f32 0.03125, %v1377_v32  ;;  %v1392_v35 = vmul.f32 %v1388_v29, %v1388_v29 }
 0xea8   :  { %v1391_v36 = vsub.f32 %v4462_v20, %v1387_v33  ;;  %v1389_v37 = vsub.f32 %v4467_v23, %v1385_v34  ;;  %v1396_v16 = vsel %vm162_vm1, %v1392_v35, 0.0  ;;  %3658 = vmatpush3.bf16.msra.mxu0 %v3837_v28 }
 0xea9   :  { %1397 = vadd.xlane.f32.xlu0 %v1396_v16  ;;  %v1380_v38 = vpop.xlane.xlu0 %1379 }
 0xeaa   :  { %v1386_v14 = vmul.f32 0.03125, %v1380_v38  ;;  %v1393_v39 = vmul.f32 %v1389_v37, %v1389_v37  ;;  %v1395_v27 = vmul.f32 %v1391_v36, %v1391_v36 }
 0xeac   :  { %v1390_v40 = vsub.f32 %v4469_v25, %v1386_v14  ;;  %v1399_v41 = vsel %vm162_vm1, %v1393_v39, 0.0  ;;  %v1405_v22 = vsel %vm162_vm1, %v1395_v27, 0.0 }
 0xead   :  { %1400 = vadd.xlane.f32.xlu1 %v1399_v41 }
 0xeae   :  { %v1394_v42 = vmul.f32 %v1390_v40, %v1390_v40 }
 0xeb0   :  { %v1402_v30 = vsel %vm162_vm1, %v1394_v42, 0.0 }
 0xeb1   :  { %1406 = vadd.xlane.f32.xlu1 %v1405_v22  ;;  %1403 = vadd.xlane.f32.xlu0 %v1402_v30 }
 0xf32   :  { %v1398_v44 = vpop.xlane.xlu0 %1397 }
 0xf33   :  { %v1408_v45 = vmul.f32 0.03125, %v1398_v44 }
 0xf35   :  { %v1412_v46 = vadd.f32 1e-05, %v1408_v45 }
 0xf36   :  { %v1401_v51 = vpop.xlane.xlu1 %1400 }
 0xf37   :  { %3930 = vrsqrt.f32 %v1412_v46  ;;  %v1409_v52 = vmul.f32 0.03125, %v1401_v51 }
 0xf39   :  { %v1413_v53 = vadd.f32 1e-05, %v1409_v52 }
 0xf3a   :  { %v1407_v54 = vpop.xlane.xlu1 %1406  ;;  %v1404_v55 = vpop.xlane.xlu0 %1403 }
 0xf3b   :  { %3932 = vrsqrt.f32 %v1413_v53  ;;  %v1411_v56 = vmul.f32 0.03125, %v1407_v54  ;;  %v1410_v57 = vmul.f32 0.03125, %v1404_v55 }
 0xf3d   :  { %v1415_v58 = vadd.f32 1e-05, %v1411_v56  ;;  %v1414_v59 = vadd.f32 1e-05, %v1410_v57 }
 0xf3f   :  { %3934 = vrsqrt.f32 %v1415_v58 }
 0xf40   :  { %3936 = vrsqrt.f32 %v1414_v59 }
 0xf44   :  { %v3931_v60 = vpop.eup %3930 }
 0xf45   :  { %v1420_v62 = vmul.f32 %v3931_v60, %v1388_v29  ;;  %v3300_v29 = vld [vmem:[%s4891_s15] ss:$0 sm:$0xff] }
 0xf47   :  { %v1430_v2 = vmul.f32 %v3298_v63, %v1420_v62 }
 0xf48   :  { %v3933_v0 = vpop.eup %3932 }
 0xf49   :  { %v1421_v1 = vmul.f32 %v3933_v0, %v1389_v37  ;;  %v1440_v49 = vadd.f32 %v3299_v3, %v1430_v2 }
 0xf4b   :  { %v1431_v5 = vmul.f32 %v3298_v63, %v1421_v1 }
 0xf4c   :  { %v3935_v47 = vpop.eup %3934 }
 0xf4d   :  { %v3937_v48 = vpop.eup %3936  ;;  %v1423_v7 = vmul.f32 %v3935_v47, %v1391_v36  ;;  %v1441_v8 = vadd.f32 %v3299_v3, %v1431_v5 }
 0xf4e   :  { %v1422_v9 = vmul.f32 %v3937_v48, %v1390_v40 }
 0xf4f   :  { %v1444_v50 = vpack.c.bf16 %v1441_v8, %v1440_v49  ;;  %v1433_v11 = vmul.f32 %v3298_v63, %v1423_v7 }
 0xf50   :  { %v1432_v12 = vmul.f32 %v3298_v63, %v1422_v9 }
 0xf51   :  { %3639 = vmatprep.mubr.msk.bf16.mxu1 %vm162_vm1, %v1444_v50  ;;  %v1443_v13 = vadd.f32 %v3299_v3, %v1433_v11 }
 0xf52   :  { %v1442_v17 = vadd.f32 %v3299_v3, %v1432_v12  ;;  %v3305_v12 = vld [vmem:[%s4893_s17] ss:$0 sm:$0xff] }
 0xf54   :  { %v1445_v18 = vpack.c.bf16 %v1443_v13, %v1442_v17 }
 0xf56   :  { %3640 = vmatmul.mubr.msk.bf16.vlgmr.msra.gmra.mxu1 %vm162_vm1, %v1445_v18 }
0x1016   :  { %v3641_v31 = vpop.f32.mrf.mxu1 }
0x1017   :  { %v1518_v32 = vadd.f32 %v3641_v31, %v3300_v29 }
0x1018   :  { %v1509_v33 = vpop.f32.mrf.mxu1 }
0x1019   :  { %v1526_v34 = vmul.f32 %v1518_v32, %v1518_v32  ;;  %v1510_v35 = vadd.f32 %v3300_v29, %v1509_v33 }
0x101a   :  { %v3642_v36 = vpop.f32.mrf.mxu1 }
0x101b   :  { %v1530_v37 = vmul.f32 %v1526_v34, %v1518_v32  ;;  %v1524_v16 = vmul.f32 %v1510_v35, %v1510_v35  ;;  %v1521_v38 = vadd.f32 %v3642_v36, %v3300_v29 }
0x101c   :  { %v1512_v14 = vpop.f32.mrf.mxu1 }
0x101d   :  { %v1534_v39 = vmul.f32 0.044715, %v1530_v37  ;;  %v1528_v40 = vmul.f32 %v1524_v16, %v1510_v35  ;;  %v1527_v41 = vmul.f32 %v1521_v38, %v1521_v38  ;;  %v1513_v27 = vadd.f32 %v3300_v29, %v1512_v14 }
0x101f   :  { %v1538_v42 = vadd.f32 %v1534_v39, %v1518_v32  ;;  %v1532_v22 = vmul.f32 0.044715, %v1528_v40  ;;  %v1531_v30 = vmul.f32 %v1527_v41, %v1521_v38  ;;  %v1525_v24 = vmul.f32 %v1513_v27, %v1513_v27 }
0x1021   :  { %v1542_v43 = vmul.f32 0.7978846, %v1538_v42  ;;  %v1536_v44 = vadd.f32 %v1532_v22, %v1510_v35  ;;  %v1535_v45 = vmul.f32 0.044715, %v1531_v30  ;;  %v1529_v46 = vmul.f32 %v1525_v24, %v1513_v27 }
0x1023   :  { %v1540_v51 = vmul.f32 0.7978846, %v1536_v44  ;;  %v1539_v52 = vadd.f32 %v1535_v45, %v1521_v38  ;;  %v1533_v53 = vmul.f32 0.044715, %v1529_v46  ;;  %3938 = vtanh.f32 %v1542_v43  ;;  %v3838_v44 = vld [vmem:[%s4884_s8 + $0x18] sm:$0xff]   ;;  %v3839_v45 = vld [vmem:[%s4884_s8 + $0x10] sm:$0xff]  }
0x1024   :  { %3663 = vmatprep.subr.bf16.mxu1 %v3838_v44  ;;  %s4920_s8 = smov 48  }
0x1025   :  { %3940 = vtanh.f32 %v1540_v51  ;;  %v1543_v54 = vmul.f32 0.7978846, %v1539_v52  ;;  %v1537_v55 = vadd.f32 %v1533_v53, %v1513_v27  ;;  %3664 = vmatpush3.bf16.msra.mxu1 %v3838_v44  ;;  %v4613_v44 = vld [vmem:[%s4917_s3 + $0x10] sm:$0xff] }
0x1026   :  { %3665 = vmatprep.subr.bf16.mxu1 %v3839_v45 }
0x1027   :  { %3942 = vtanh.f32 %v1543_v54  ;;  %v1541_v56 = vmul.f32 0.7978846, %v1537_v55 }
0x1029   :  { %3944 = vtanh.f32 %v1541_v56  ;;  %3666 = vmatpush3.bf16.msra.mxu1 %v3839_v45 }
0x1030   :  { %v3939_v57 = vpop.eup %3938 }
0x1031   :  { %v1550_v62 = vadd.f32 1.0, %v3939_v57 }
0x1032   :  { %v3941_v58 = vpop.eup %3940 }
0x1033   :  { %v1548_v59 = vadd.f32 1.0, %v3941_v58  ;;  %v1554_v5 = vmul.f32 0.5, %v1550_v62 }
0x1034   :  { %v3943_v60 = vpop.eup %3942 }
0x1035   :  { %v1551_v63 = vadd.f32 1.0, %v3943_v60  ;;  %v1552_v3 = vmul.f32 0.5, %v1548_v59  ;;  %v1558_v8 = vmul.f32 %v1554_v5, %v1518_v32 }
0x1036   :  { %v3945_v0 = vpop.eup %3944 }
0x1037   :  { %v1555_v1 = vmul.f32 0.5, %v1551_v63  ;;  %v1549_v2 = vadd.f32 1.0, %v3945_v0  ;;  %v1556_v7 = vmul.f32 %v1552_v3, %v1510_v35 }
0x1039   :  { %v1553_v47 = vmul.f32 0.5, %v1549_v2  ;;  %v1559_v48 = vmul.f32 %v1555_v1, %v1521_v38  ;;  %v3316_v1 = vld [vmem:[%s4882_s6 + $0x1] ss:$0 sm:$0xff] }
0x103b   :  { %v1557_v49 = vmul.f32 %v1553_v47, %v1513_v27  ;;  %v1561_v50 = vpack.c.bf16 %v1559_v48, %v1558_v8 }
0x103d   :  { %v1560_v9 = vpack.c.bf16 %v1557_v49, %v1556_v7  ;;  %v3317_v7 = vld [vmem:[%s4883_s7 + $0x1] ss:$0 sm:$0xff] }
0x103f   :  { %3659 = vmatprep.mubr.bf16.mxu0 %v1560_v9 }
0x1040   :  { %3660 = vmatmul.mubr.bf16.vlgmr.msra.gmra.mxu0 %v1561_v50 }
0x1100   :  { %v3661_v11 = vpop.f32.mrf.mxu0 }
0x1101   :  { %v1676_v17 = vadd.f32 %v3661_v11, %v3305_v12 }
0x1102   :  { %v1667_v13 = vpop.f32.mrf.mxu0 }
0x1103   :  { %v1668_v18 = vadd.f32 %v3305_v12, %v1667_v13  ;;  %v4533_v26 = vadd.f32 %v1676_v17, %v4469_v25 }
0x1104   :  { %v3662_v19 = vpop.f32.mrf.mxu0 }
0x1105   :  { %v4530_v21 = vadd.f32 %v1668_v18, %v4458_v15  ;;  %v1679_v10 = vadd.f32 %v3662_v19, %v3305_v12  ;;  %v1696_v31 = vsel %vm162_vm1, %v4533_v26, 0.0 }
0x1106   :  { %v1670_v61 = vpop.f32.mrf.mxu0 }
0x1107   :  { %v1671_v6 = vadd.f32 %v3305_v12, %v1670_v61  ;;  %v1690_v4 = vsel %vm162_vm1, %v4530_v21, 0.0  ;;  %v4541_v29 = vadd.f32 %v1679_v10, %v4462_v20 }
0x1108   :  { %1691 = vadd.xlane.f32.xlu0 %v1690_v4 }
0x1109   :  { %v4538_v28 = vadd.f32 %v1671_v6, %v4467_v23  ;;  %v1699_v25 = vsel %vm162_vm1, %v4541_v29, 0.0  ;;  %v3323_v6 = vld [vmem:[%s4885_s9 + $0x1] ss:$0 sm:$0xff] }
0x110b   :  { %v1693_v15 = vsel %vm162_vm1, %v4538_v28, 0.0 }
0x110c   :  { %1694 = vadd.xlane.f32.xlu1 %v1693_v15  ;;  %1697 = vadd.xlane.f32.xlu0 %v1696_v31 }
0x1110   :  { %1700 = vadd.xlane.f32.xlu1 %v1699_v25 }
0x1191   :  { %v1692_v32 = vpop.xlane.xlu0 %1691 }
0x1192   :  { %v1702_v33 = vmul.f32 0.03125, %v1692_v32 }
0x1194   :  { %v1706_v23 = vsub.f32 %v4530_v21, %v1702_v33 }
0x1195   :  { %v1695_v34 = vpop.xlane.xlu1 %1694  ;;  %v1698_v35 = vpop.xlane.xlu0 %1697 }
0x1196   :  { %v1703_v20 = vmul.f32 0.03125, %v1695_v34  ;;  %v1704_v36 = vmul.f32 0.03125, %v1698_v35  ;;  %v1710_v37 = vmul.f32 %v1706_v23, %v1706_v23 }
0x1198   :  { %v1707_v16 = vsub.f32 %v4538_v28, %v1703_v20  ;;  %v1708_v38 = vsub.f32 %v4533_v26, %v1704_v36  ;;  %v1714_v14 = vsel %vm162_vm1, %v1710_v37, 0.0 }
0x1199   :  { %v1701_v39 = vpop.xlane.xlu1 %1700  ;;  %1715 = vadd.xlane.f32.xlu0 %v1714_v14 }
0x119a   :  { %v1705_v40 = vmul.f32 0.03125, %v1701_v39  ;;  %v1711_v41 = vmul.f32 %v1707_v16, %v1707_v16  ;;  %v1712_v27 = vmul.f32 %v1708_v38, %v1708_v38 }
0x119c   :  { %v1709_v42 = vsub.f32 %v4541_v29, %v1705_v40  ;;  %v1717_v22 = vsel %vm162_vm1, %v1711_v41, 0.0  ;;  %v1720_v30 = vsel %vm162_vm1, %v1712_v27, 0.0 }
0x119d   :  { %1718 = vadd.xlane.f32.xlu1 %v1717_v22  ;;  %1721 = vadd.xlane.f32.xlu0 %v1720_v30  ;;  %v4607_v30 = vld [vmem:[%s4917_s3] sm:$0xff] }
0x119e   :  { %v1713_v24 = vmul.f32 %v1709_v42, %v1709_v42 }
0x11a0   :  { %v1723_v43 = vsel %vm162_vm1, %v1713_v24, 0.0 }
0x11a1   :  { %1724 = vadd.xlane.f32.xlu1 %v1723_v43 }
0x1222   :  { %v1716_v46 = vpop.xlane.xlu0 %1715 }
0x1223   :  { %v1726_v51 = vmul.f32 0.03125, %v1716_v46 }
0x1225   :  { %v1730_v52 = vadd.f32 1e-05, %v1726_v51 }
0x1226   :  { %v1719_v53 = vpop.xlane.xlu1 %1718  ;;  %v1722_v54 = vpop.xlane.xlu0 %1721 }
0x1227   :  { %3946 = vrsqrt.f32 %v1730_v52  ;;  %v1727_v55 = vmul.f32 0.03125, %v1719_v53  ;;  %v1728_v56 = vmul.f32 0.03125, %v1722_v54  ;;  %v4620_v53 = vld [vmem:[%s4917_s3 + $0x8] sm:$0xff] }
0x1229   :  { %v1731_v57 = vadd.f32 1e-05, %v1727_v55  ;;  %v1732_v58 = vadd.f32 1e-05, %v1728_v56  ;;  %v4626_v56 = vld [vmem:[%s4917_s3 + $0x18] sm:$0xff]  ;;  %s4918_s3 = smov 72  }
0x122a   :  { %v1725_v59 = vpop.xlane.xlu1 %1724 }
0x122b   :  { %3948 = vrsqrt.f32 %v1731_v57  ;;  %v1729_v60 = vmul.f32 0.03125, %v1725_v59 }
0x122c   :  { %3950 = vrsqrt.f32 %v1732_v58 }
0x122d   :  { %v1733_v62 = vadd.f32 1e-05, %v1729_v60 }
0x122f   :  { %3952 = vrsqrt.f32 %v1733_v62 }
0x1234   :  { %v3947_v63 = vpop.eup %3946 }
0x1235   :  { %v1738_v0 = vmul.f32 %v3947_v63, %v1706_v23 }
0x1237   :  { %v1748_v47 = vmul.f32 %v3316_v1, %v1738_v0 }
0x1238   :  { %v3949_v2 = vpop.eup %3948 }
0x1239   :  { %v3951_v3 = vpop.eup %3950  ;;  %v1739_v5 = vmul.f32 %v3949_v2, %v1707_v16  ;;  %v1758_v50 = vadd.f32 %v3317_v7, %v1748_v47 }
0x123a   :  { %v1740_v48 = vmul.f32 %v3951_v3, %v1708_v38 }
0x123b   :  { %v1749_v49 = vmul.f32 %v3316_v1, %v1739_v5 }
0x123c   :  { %v3953_v8 = vpop.eup %3952  ;;  %v1750_v12 = vmul.f32 %v3316_v1, %v1740_v48 }
0x123d   :  { %v1741_v9 = vmul.f32 %v3953_v8, %v1709_v42  ;;  %v1759_v11 = vadd.f32 %v3317_v7, %v1749_v49 }
0x123e   :  { %v1760_v18 = vadd.f32 %v3317_v7, %v1750_v12 }
0x123f   :  { %v1762_v13 = vpack.c.bf16 %v1759_v11, %v1758_v50  ;;  %v1751_v17 = vmul.f32 %v3316_v1, %v1741_v9 }
0x1241   :  { %3667 = vmatprep.mubr.msk.bf16.mxu1 %vm162_vm1, %v1762_v13  ;;  %v1761_v19 = vadd.f32 %v3317_v7, %v1751_v17 }
0x1243   :  { %v1763_v61 = vpack.c.bf16 %v1761_v19, %v1760_v18 }
0x1245   :  { %3668 = vmatmul.mubr.msk.bf16.vlgmr.msra.gmra.mxu1 %vm162_vm1, %v1763_v61 }
0x1305   :  { %v3669_v10 = vpop.f32.mrf.mxu1 }
0x1306   :  { %v1838_v31 = vadd.f32 %v3669_v10, %v3323_v6 }
0x1307   :  { %v1829_v4 = vpop.f32.mrf.mxu1 }
0x1308   :  { %v1830_v33 = vadd.f32 %v3323_v6, %v1829_v4 }
0x1309   :  { %v3670_v15 = vpop.f32.mrf.mxu1 }
0x130a   :  { %v1841_v25 = vadd.f32 %v3670_v15, %v3323_v6 }
0x130b   :  { %v1832_v32 = vpop.f32.mrf.mxu1 }
0x130c   :  { %v4574_v23 = vpack.c.bf16 %v1841_v25, %v1838_v31  ;;  %v1833_v34 = vadd.f32 %v3323_v6, %v1832_v32 }
0x130e   :  { %v4576_v35 = vpack.c.bf16 %v1833_v34, %v1830_v33  ;;  %1850 = vrot.lane.b32.xlu0 %v4574_v23, %s4068_s2 }
0x1310   :  { %1848 = vrot.lane.b32.xlu1 %v4576_v35, %s4068_s2  ;;  %3675 = vmatprep.mubr.msk.bf16.mxu1 %vm402_vm2, %v4576_v35 }
0x1312   :  { %2024 = vrot.lane.b32.xlu0 %v4576_v35, %s4071_s21 }
0x1314   :  { %2030 = vrot.lane.b32.xlu1 %v4574_v23, %s4070_s0 }
0x1318   :  { %2028 = vrot.lane.b32.xlu1 %v4576_v35, %s4070_s0 }
0x131c   :  { %2026 = vrot.lane.b32.xlu1 %v4574_v23, %s4071_s21 }
0x1380   :  { %v1851_v20 = vpop.permute.xlu0 %1850 }
0x1381   :  { %v1862_v36 = vsel %vm402_vm2, %v1851_v20, 0  ;;  %3799 = vmatprep.subr.msk.bf16.mxu1 %vm402_vm2, %v1851_v20 }
0x1382   :  { %3672 = vmatpush3.bf16.xpose.msra.mxu1 %v1862_v36  ;;  %v1849_v37 = vpop.permute.xlu1 %1848 }
0x1383   :  { %3800 = vmatprep.subr.msk.bf16.mxu1 %vm402_vm2, %v1849_v37  ;;  %v1859_v39 = vsel %vm402_vm2, %v1849_v37, 0 }
0x1384   :  { %v2025_v16 = vpop.permute.xlu0 %2024 }
0x1385   :  { %3691 = vmatprep.mubr.msk.bf16.mxu0 %vm402_vm2, %v2025_v16 }
0x1386   :  { %v2031_v38 = vpop.permute.xlu1 %2030 }
0x1387   :  { %v2042_v14 = vsel %vm402_vm2, %v2031_v38, 0  ;;  %3801 = vmatprep.subr.msk.bf16.mxu0 %vm402_vm2, %v2031_v38 }
0x1388   :  { %3688 = vmatpush3.bf16.xpose.msra.mxu0 %v2042_v14 }
0x138a   :  { %3674 = vmatpush3.bf16.xpose.msra.mxu1 %v1859_v39  ;;  %v2029_v40 = vpop.permute.xlu1 %2028 }
0x138b   :  { %3802 = vmatprep.subr.msk.bf16.mxu0 %vm402_vm2, %v2029_v40  ;;  %v2039_v41 = vsel %vm402_vm2, %v2029_v40, 0 }
0x138e   :  { %v2027_v27 = vpop.permute.xlu1 %2026 }
0x1390   :  { %3690 = vmatpush3.bf16.xpose.msra.mxu0 %v2039_v41 }
0x1391   :  { %3676 = vmatmul.mubr.msk.bf16.vlgmr.msra.gmra.mxu1 %vm402_vm2, %v4574_v23 }
0x1397   :  { %3692 = vmatmul.mubr.msk.bf16.vlgmr.msra.gmra.mxu0 %vm402_vm2, %v2027_v27 }
0x1451   :  { %v3677_v42 = vpop.f32.mrf.mxu1 }
0x1452   :  { %v1907_v45 = vadd.f32 %v4613_v44, %v3677_v42 }
0x1453   :  { %v1898_v22 = vpop.f32.mrf.mxu1 }
0x1454   :  { %v1899_v24 = vadd.f32 %v4607_v30, %v1898_v22  ;;  %v1919_v59 = vsel %vm162_vm1, %v1907_v45, -inf }
0x1455   :  { %v3678_v43 = vpop.f32.mrf.mxu1 }
0x1456   :  { %v1913_v46 = vsel %vm162_vm1, %v1899_v24, -inf  ;;  %v1910_v57 = vadd.f32 %v4626_v56, %v3678_v43 }
0x1457   :  { %v1901_v51 = vpop.f32.mrf.mxu1  ;;  %v3693_v52 = vpop.f32.mrf.mxu0  ;;  %1914 = vmax.xlane.f32.xlu0 %v1913_v46 }
0x1458   :  { %v1902_v54 = vadd.f32 %v4620_v53, %v1901_v51  ;;  %v1922_v1 = vsel %vm162_vm1, %v1910_v57, -inf  ;;  %v2087_v5 = vadd.f32 %v4613_v44, %v3693_v52 }
0x1459   :  { %v2078_v55 = vpop.f32.mrf.mxu0 }
0x145a   :  { %v1916_v58 = vsel %vm162_vm1, %v1902_v54, -inf  ;;  %v2079_v63 = vadd.f32 %v4607_v30, %v2078_v55  ;;  %v2099_v7 = vsel %vm162_vm1, %v2087_v5, -inf }
0x145b   :  { %v3694_v60 = vpop.f32.mrf.mxu0  ;;  %1917 = vmax.xlane.f32.xlu1 %v1916_v58  ;;  %1920 = vmax.xlane.f32.xlu0 %v1919_v59 }
0x145c   :  { %v2090_v2 = vadd.f32 %v4626_v56, %v3694_v60  ;;  %v2093_v47 = vsel %vm162_vm1, %v2079_v63, -inf }
0x145d   :  { %v2081_v62 = vpop.f32.mrf.mxu0 }
0x145e   :  { %v2082_v0 = vadd.f32 %v4620_v53, %v2081_v62  ;;  %v2102_v48 = vsel %vm162_vm1, %v2090_v2, -inf }
0x145f   :  { %1923 = vmax.xlane.f32.xlu0 %v1922_v1 }
0x1460   :  { %v2096_v3 = vsel %vm162_vm1, %v2082_v0, -inf }
0x1461   :  { %2097 = vmax.xlane.f32.xlu1 %v2096_v3 }
0x1463   :  { %2094 = vmax.xlane.f32.xlu0 %v2093_v47 }
0x1465   :  { %2103 = vmax.xlane.f32.xlu1 %v2102_v48 }
0x1467   :  { %2100 = vmax.xlane.f32.xlu0 %v2099_v7 }
0x1476   :  { %1959 = vrot.lane.b32.xlu1 %v4576_v35, %s4069_s30 }
0x147a   :  { %2141 = vrot.lane.b32.xlu1 %v4574_v23, %s4072_s24 }
0x14e0   :  { %v1915_v49 = vpop.xlane.xlu0 %1914 }
0x14e1   :  { %v1925_v6 = vsub.f32 %v1899_v24, %v1915_v49 }
0x14e3   :  { %v1929_v34 = vmul.f32 1.442695, %v1925_v6 }
0x14e4   :  { %v1921_v8 = vpop.xlane.xlu0 %1920  ;;  %v1918_v50 = vpop.xlane.xlu1 %1917 }
0x14e5   :  { %v1927_v9 = vsub.f32 %v1907_v45, %v1921_v8  ;;  %v1926_v19 = vsub.f32 %v1902_v54, %v1918_v50 }
0x14e7   :  { %v1933_v11 = vmul.f32 1.442695, %v1927_v9  ;;  %v1931_v15 = vmul.f32 1.442695, %v1926_v19 }
0x14e8   :  { %v1924_v12 = vpop.xlane.xlu0 %1923 }
0x14e9   :  { %v1928_v13 = vsub.f32 %v1910_v57, %v1924_v12  ;;  %3954 = vpow2.f32 %v1933_v11 }
0x14ea   :  { %v2098_v17 = vpop.xlane.xlu1 %2097 }
0x14eb   :  { %v1935_v18 = vmul.f32 1.442695, %v1928_v13  ;;  %v2106_v25 = vsub.f32 %v2082_v0, %v2098_v17 }
0x14ec   :  { %v2095_v61 = vpop.xlane.xlu0 %2094 }
0x14ed   :  { %3956 = vpow2.f32 %v1935_v18  ;;  %v2105_v20 = vsub.f32 %v2079_v63, %v2095_v61  ;;  %v2111_v37 = vmul.f32 1.442695, %v2106_v25  ;;  %v3337_v25 = vld [vmem:[%s4886_s10 + $0x14] sm:$0xf] }
0x14ee   :  { %v2104_v10 = vpop.xlane.xlu1 %2103 }
0x14ef   :  { %v2108_v4 = vsub.f32 %v2090_v2, %v2104_v10  ;;  %v2109_v38 = vmul.f32 1.442695, %v2105_v20 }
0x14f0   :  { %v2101_v31 = vpop.xlane.xlu0 %2100 }
0x14f1   :  { %v2115_v32 = vmul.f32 1.442695, %v2108_v4  ;;  %v2107_v33 = vsub.f32 %v2087_v5, %v2101_v31 }
0x14f2   :  { %v1960_v57 = vpop.permute.xlu1 %1959 }
0x14f3   :  { %3958 = vpow2.f32 %v2115_v32  ;;  %v2113_v36 = vmul.f32 1.442695, %v2107_v33 }
0x14f4   :  { %3960 = vpow2.f32 %v1931_v15 }
0x14f5   :  { %3962 = vpow2.f32 %v2113_v36  ;;  %v3332_v36 = vld [vmem:[%s4886_s10 + $0x10] sm:$0xf] }
0x14f6   :  { %v4644_v16 = vpop.eup %3954  ;;  %3964 = vpow2.f32 %v1929_v34  ;;  %v2142_v58 = vpop.permute.xlu1 %2141  ;;  %v2211_v34 = vsel %vm760_vm3, %v3337_v25, 0  ;;  %3804 = vmatprep.subr.msk.bf16.mxu0 %vm760_vm3, %v3332_v36 }
0x14f7   :  { %v1943_v14 = vsel %vm162_vm1, %v4644_v16, 0.0  ;;  %3966 = vpow2.f32 %v2111_v37  ;;  %v2269_v37 = vsel %vm760_vm3, %v3332_v36, 0 }
0x14f8   :  { %1944 = vadd.xlane.f32.xlu0 %v1943_v14  ;;  %3968 = vpow2.f32 %v2109_v38  ;;  %3710 = vmatpush3.bf16.msra.mxu0 %v2269_v37 }
0x14fa   :  { %v3957_v39 = vpop.eup %3956 }
0x14fb   :  { %v1946_v40 = vsel %vm162_vm1, %v3957_v39, 0.0 }
0x14fc   :  { %1947 = vadd.xlane.f32.xlu1 %v1946_v40 }
0x1500   :  { %v4649_v41 = vpop.eup %3958 }
0x1501   :  { %v3961_v27 = vpop.eup %3960  ;;  %v2126_v42 = vsel %vm162_vm1, %v4649_v41, 0.0 }
0x1502   :  { %v4653_v22 = vpop.eup %3962  ;;  %2127 = vadd.xlane.f32.xlu1 %v2126_v42  ;;  %v1940_v45 = vsel %vm162_vm1, %v3961_v27, 0.0 }
0x1503   :  { %v2123_v24 = vsel %vm162_vm1, %v4653_v22, 0.0  ;;  %v3965_v43 = vpop.eup %3964 }
0x1504   :  { %2124 = vadd.xlane.f32.xlu0 %v2123_v24  ;;  %v3967_v46 = vpop.eup %3966  ;;  %v1937_v51 = vsel %vm162_vm1, %v3965_v43, 0.0 }
0x1505   :  { %v3969_v52 = vpop.eup %3968  ;;  %v2120_v54 = vsel %vm162_vm1, %v3967_v46, 0.0 }
0x1506   :  { %1941 = vadd.xlane.f32.xlu1 %v1940_v45  ;;  %v2117_v55 = vsel %vm162_vm1, %v3969_v52, 0.0 }
0x1508   :  { %1938 = vadd.xlane.f32.xlu0 %v1937_v51 }
0x150a   :  { %2121 = vadd.xlane.f32.xlu1 %v2120_v54 }
0x150c   :  { %2118 = vadd.xlane.f32.xlu0 %v2117_v55 }
0x151b   :  { %2139 = vrot.lane.b32.xlu1 %v4576_v35, %s4072_s24 }
0x151f   :  { %2324 = vrot.lane.b32.xlu1 %v4576_v35, %s4073_s23 }
0x1522   :  { %1961 = vrot.lane.b32.xlu0 %v4574_v23, %s4069_s30 }
0x1523   :  { %2322 = vrot.lane.b32.xlu1 %v4574_v23, %s4074_s25 }
0x1526   :  { %2326 = vrot.lane.b32.xlu0 %v4574_v23, %s4073_s23 }
0x1527   :  { %2566 = vrot.lane.b32.xlu1 %v4576_v35, %s4918_s3 }
0x152a   :  { %2320 = vrot.lane.b32.xlu0 %v4576_v35, %s4074_s25 }
0x152b   :  { %2564 = vrot.lane.b32.xlu1 %v4574_v23, %s4919_s27 }
0x152e   :  { %2568 = vrot.lane.b32.xlu0 %v4574_v23, %s4918_s3 }
0x1532   :  { %2562 = vrot.lane.b32.xlu0 %v4576_v35, %s4919_s27 }
0x1581   :  { %v1945_v60 = vpop.xlane.xlu0 %1944 }
0x1585   :  { %v1948_v59 = vpop.xlane.xlu1 %1947 }
0x1586   :  { %3970 = vrcp.f32 %v1948_v59 }
0x158b   :  { %v2128_v62 = vpop.xlane.xlu1 %2127 }
0x158d   :  { %v2125_v63 = vpop.xlane.xlu0 %2124 }
0x158f   :  { %v1942_v0 = vpop.xlane.xlu1 %1941 }
0x1590   :  { %3972 = vrcp.f32 %v1942_v0 }
0x1591   :  { %3974 = vrcp.f32 %v1945_v60  ;;  %v1939_v1 = vpop.xlane.xlu0 %1938 }
0x1592   :  { %3976 = vrcp.f32 %v1939_v1 }
0x1593   :  { %v2122_v2 = vpop.xlane.xlu1 %2121  ;;  %v3971_v47 = vpop.eup %3970 }
0x1594   :  { %3978 = vrcp.f32 %v2122_v2  ;;  %v1956_v8 = vmul.f32 %v3971_v47, %v3957_v39 }
0x1595   :  { %v2119_v3 = vpop.xlane.xlu0 %2118 }
0x1596   :  { %3980 = vrcp.f32 %v2119_v3 }
0x1597   :  { %3982 = vrcp.f32 %v2125_v63  ;;  %v2140_v4 = vpop.permute.xlu1 %2139 }
0x1598   :  { %3984 = vrcp.f32 %v2128_v62 }
0x1599   :  { %v1962_v5 = vpop.permute.xlu0 %1961 }
0x159a   :  { %3679 = vmatprep.subr.bf16.mxu1 %v1962_v5 }
0x159b   :  { %3680 = vmatpush3.bf16.msra.mxu1 %v1962_v5 }
0x159c   :  { %3681 = vmatprep.subr.bf16.mxu1 %v1960_v57 }
0x159d   :  { %v3973_v48 = vpop.eup %3972  ;;  %v2327_v20 = vpop.permute.xlu0 %2326 }
0x159e   :  { %v3975_v7 = vpop.eup %3974  ;;  %v1954_v50 = vmul.f32 %v3973_v48, %v3961_v27 }
0x159f   :  { %v3977_v49 = vpop.eup %3976  ;;  %3682 = vmatpush3.bf16.msra.mxu1 %v1960_v57  ;;  %v1955_v12 = vmul.f32 %v3975_v7, %v4644_v16 }
0x15a0   :  { %3695 = vmatprep.subr.bf16.mxu1 %v2142_v58  ;;  %v1953_v9 = vmul.f32 %v3977_v49, %v3965_v43 }
0x15a1   :  { %v3979_v11 = vpop.eup %3978  ;;  %v1958_v18 = vpack.c.bf16 %v1956_v8, %v1955_v12  ;;  %v2321_v51 = vpop.permute.xlu0 %2320 }
0x15a2   :  { %v1957_v13 = vpack.c.bf16 %v1954_v50, %v1953_v9  ;;  %v2134_v10 = vmul.f32 %v3979_v11, %v3967_v46  ;;  %v2338_v46 = vsel %vm402_vm2, %v2327_v20, 0 }
0x15a3   :  { %v3981_v17 = vpop.eup %3980 }
0x15a4   :  { %v3983_v19 = vpop.eup %3982  ;;  %3683 = vmatprep.mubr.msk.bf16.mxu1 %vm162_vm1, %v1957_v13  ;;  %v2133_v61 = vmul.f32 %v3981_v17, %v3969_v52  ;;  %v2325_v52 = vpop.permute.xlu1 %2324 }
0x15a5   :  { %3684 = vmatmul.mubr.msk.bf16.vlgmr.msra.gmra.mxu1 %vm162_vm1, %v1958_v18  ;;  %v3985_v6 = vpop.eup %3984  ;;  %v2135_v31 = vmul.f32 %v3983_v19, %v4653_v22  ;;  %v2335_v54 = vsel %vm402_vm2, %v2325_v52, 0  ;;  %v2569_v55 = vpop.permute.xlu0 %2568 }
0x15a6   :  { %3696 = vmatpush3.bf16.msra.mxu1 %v2142_v58  ;;  %v2137_v15 = vpack.c.bf16 %v2134_v10, %v2133_v61  ;;  %v2136_v32 = vmul.f32 %v3985_v6, %v4649_v41  ;;  %v2580_v58 = vsel %vm402_vm2, %v2569_v55, 0 }
0x15a7   :  { %3697 = vmatprep.subr.bf16.mxu1 %v2140_v4 }
0x15a8   :  { %3699 = vmatprep.mubr.msk.bf16.mxu1 %vm162_vm1, %v2137_v15  ;;  %v2138_v33 = vpack.c.bf16 %v2136_v32, %v2135_v31  ;;  %v2323_v57 = vpop.permute.xlu1 %2322 }
0x15a9   :  { %v2563_v59 = vpop.permute.xlu0 %2562 }
0x15aa   :  { %3698 = vmatpush3.bf16.msra.mxu1 %v2140_v4 }
0x15ab   :  { %3803 = vmatprep.subr.msk.bf16.mxu1 %vm760_vm3, %v3337_v25 }
0x15ac   :  { %v2567_v60 = vpop.permute.xlu1 %2566 }
0x15ad   :  { %3700 = vmatmul.mubr.msk.bf16.vlgmr.msra.gmra.mxu1 %vm162_vm1, %v2138_v33  ;;  %v2577_v62 = vsel %vm402_vm2, %v2567_v60, 0 }
0x15ae   :  { %3704 = vmatpush3.bf16.msra.mxu1 %v2211_v34 }
0x15af   :  { %3805 = vmatprep.subr.msk.bf16.mxu1 %vm402_vm2, %v2327_v20 }
0x15b0   :  { %v2565_v63 = vpop.permute.xlu1 %2564 }
0x1665   :  { %v3685_v16 = vpop.f32.mrf.mxu1 }
0x1667   :  { %v2005_v38 = vpop.f32.mrf.mxu1 }
0x1669   :  { %v3686_v14 = vpop.f32.mrf.mxu1 }
0x166a   :  { %v2021_v41 = vpack.c.bf16 %v3686_v14, %v3685_v16 }
0x166b   :  { %v2008_v39 = vpop.f32.mrf.mxu1 }
0x166c   :  { %v2020_v40 = vpack.c.bf16 %v2008_v39, %v2005_v38 }
0x166d   :  { %v3701_v27 = vpop.f32.mrf.mxu1 }
0x166e   :  { %3711 = vmatprep.mubr.msk.bf16.mxu0 %vm402_vm2, %v2020_v40 }
0x166f   :  { %v2185_v42 = vpop.f32.mrf.mxu1  ;;  %3712 = vmatmul.mubr.msk.bf16.vlgmr.msra.gmra.mxu0 %vm402_vm2, %v2021_v41 }
0x1671   :  { %v3702_v22 = vpop.f32.mrf.mxu1 }
0x1672   :  { %v2201_v45 = vpack.c.bf16 %v3702_v22, %v3701_v27 }
0x1673   :  { %v2188_v24 = vpop.f32.mrf.mxu1 }
0x1674   :  { %v2200_v43 = vpack.c.bf16 %v2188_v24, %v2185_v42 }
0x1676   :  { %3705 = vmatprep.mubr.msk.bf16.mxu1 %vm402_vm2, %v2200_v43 }
0x1677   :  { %3706 = vmatmul.mubr.msk.bf16.vlgmr.msra.gmra.mxu1 %vm402_vm2, %v2201_v45 }
0x1678   :  { %3716 = vmatpush3.bf16.xpose.msra.mxu1 %v2338_v46  ;;  %3719 = vmatprep.mubr.msk.bf16.mxu1 %vm402_vm2, %v2321_v51 }
0x1679   :  { %3806 = vmatprep.subr.msk.bf16.mxu1 %vm402_vm2, %v2325_v52 }
0x1680   :  { %3718 = vmatpush3.bf16.xpose.msra.mxu1 %v2335_v54 }
0x1681   :  { %3808 = vmatprep.subr.msk.bf16.mxu1 %vm402_vm2, %v2569_v55 }
0x1687   :  { %3720 = vmatmul.mubr.msk.bf16.vlgmr.msra.gmra.mxu1 %vm402_vm2, %v2323_v57 }
0x1688   :  { %3738 = vmatpush3.bf16.xpose.msra.mxu1 %v2580_v58  ;;  %3741 = vmatprep.mubr.msk.bf16.mxu1 %vm402_vm2, %v2563_v59 }
0x1689   :  { %3809 = vmatprep.subr.msk.bf16.mxu1 %vm402_vm2, %v2567_v60 }
0x1690   :  { %3740 = vmatpush3.bf16.xpose.msra.mxu1 %v2577_v62 }
0x1697   :  { %3742 = vmatmul.mubr.msk.bf16.vlgmr.msra.gmra.mxu1 %vm402_vm2, %v2565_v63 }
0x172f   :  { %v3713_v0 = vpop.f32.mrf.mxu0 }
0x1731   :  { %v2305_v1 = vpop.f32.mrf.mxu0 }
0x1733   :  { %v3714_v48 = vpop.f32.mrf.mxu0 }
0x1737   :  { %v3707_v2 = vpop.f32.mrf.mxu1 }
0x1738   :  { %v4714_v3 = vadd.f32 %v3713_v0, %v3707_v2 }
0x1739   :  { %v2247_v5 = vpop.f32.mrf.mxu1 }
0x173a   :  { %v4716_v47 = vadd.f32 %v2305_v1, %v2247_v5 }
0x173b   :  { %v3708_v7 = vpop.f32.mrf.mxu1 }
0x173c   :  { %v4718_v49 = vadd.f32 %v3714_v48, %v3708_v7 }
0x173d   :  { %v4720_v8 = vpop.f32.mrf.mxu1 }
0x1747   :  { %v3721_v9 = vpop.f32.mrf.mxu1 }
0x1748   :  { %v2383_v13 = vadd.f32 %v4613_v44, %v3721_v9 }
0x1749   :  { %v2374_v50 = vpop.f32.mrf.mxu1 }
0x174a   :  { %v2375_v11 = vadd.f32 %v4607_v30, %v2374_v50  ;;  %v2395_v6 = vsel %vm162_vm1, %v2383_v13, -inf }
0x174b   :  { %v3722_v12 = vpop.f32.mrf.mxu1 }
0x174c   :  { %v2389_v17 = vsel %vm162_vm1, %v2375_v11, -inf  ;;  %v2386_v61 = vadd.f32 %v4626_v56, %v3722_v12 }
0x174d   :  { %v2377_v18 = vpop.f32.mrf.mxu1  ;;  %2390 = vmax.xlane.f32.xlu0 %v2389_v17 }
0x174e   :  { %v2378_v19 = vadd.f32 %v4620_v53, %v2377_v18  ;;  %v2398_v4 = vsel %vm162_vm1, %v2386_v61, -inf }
0x1750   :  { %v2392_v10 = vsel %vm162_vm1, %v2378_v19, -inf }
0x1751   :  { %2393 = vmax.xlane.f32.xlu1 %v2392_v10  ;;  %2396 = vmax.xlane.f32.xlu0 %v2395_v6 }
0x1755   :  { %2399 = vmax.xlane.f32.xlu0 %v2398_v4 }
0x1757   :  { %v3743_v45 = vpop.f32.mrf.mxu1 }
0x1758   :  { %v2625_v57 = vadd.f32 %v4613_v44, %v3743_v45 }
0x1759   :  { %v2616_v46 = vpop.f32.mrf.mxu1 }
0x175a   :  { %v2617_v55 = vadd.f32 %v4607_v30, %v2616_v46  ;;  %v2637_v62 = vsel %vm162_vm1, %v2625_v57, -inf }
0x175b   :  { %v3744_v51 = vpop.f32.mrf.mxu1 }
0x175c   :  { %v2628_v59 = vadd.f32 %v4626_v56, %v3744_v51  ;;  %v2631_v60 = vsel %vm162_vm1, %v2617_v55, -inf }
0x175d   :  { %v2619_v52 = vpop.f32.mrf.mxu1 }
0x175e   :  { %v2620_v54 = vadd.f32 %v4620_v53, %v2619_v52  ;;  %v2640_v63 = vsel %vm162_vm1, %v2628_v59, -inf }
0x1760   :  { %v2634_v58 = vsel %vm162_vm1, %v2620_v54, -inf }
0x17d6   :  { %v2391_v15 = vpop.xlane.xlu0 %2390 }
0x17d7   :  { %v2401_v31 = vsub.f32 %v2375_v11, %v2391_v15 }
0x17d9   :  { %v2405_v36 = vmul.f32 1.442695, %v2401_v31 }
0x17da   :  { %v2394_v25 = vpop.xlane.xlu1 %2393  ;;  %v2397_v32 = vpop.xlane.xlu0 %2396 }
0x17db   :  { %v2403_v33 = vsub.f32 %v2383_v13, %v2397_v32  ;;  %v2402_v34 = vsub.f32 %v2378_v19, %v2394_v25 }
0x17dd   :  { %v2409_v20 = vmul.f32 1.442695, %v2403_v33  ;;  %v2407_v38 = vmul.f32 1.442695, %v2402_v34 }
0x17de   :  { %v2400_v37 = vpop.xlane.xlu0 %2399 }
0x17df   :  { %v2404_v16 = vsub.f32 %v2386_v61, %v2400_v37  ;;  %3986 = vpow2.f32 %v2409_v20 }
0x17e0   :  { %3988 = vpow2.f32 %v2405_v36 }
0x17e1   :  { %v2411_v14 = vmul.f32 1.442695, %v2404_v16 }
0x17e3   :  { %3990 = vpow2.f32 %v2411_v14 }
0x17e4   :  { %3992 = vpow2.f32 %v2407_v38 }
0x17ec   :  { %v3987_v39 = vpop.eup %3986 }
0x17ed   :  { %v2419_v40 = vsel %vm162_vm1, %v3987_v39, 0.0  ;;  %v3989_v41 = vpop.eup %3988 }
0x17ee   :  { %2420 = vadd.xlane.f32.xlu0 %v2419_v40  ;;  %v2413_v24 = vsel %vm162_vm1, %v3989_v41, 0.0 }
0x17f0   :  { %v3991_v27 = vpop.eup %3990 }
0x17f1   :  { %v2422_v42 = vsel %vm162_vm1, %v3991_v27, 0.0  ;;  %v3993_v22 = vpop.eup %3992 }
0x17f2   :  { %2423 = vadd.xlane.f32.xlu1 %v2422_v42  ;;  %2414 = vadd.xlane.f32.xlu0 %v2413_v24  ;;  %v2416_v43 = vsel %vm162_vm1, %v3993_v22, 0.0  ;;  %v2308_v42 = vpop.f32.mrf.mxu0 }
0x17f6   :  { %2417 = vadd.xlane.f32.xlu1 %v2416_v43 }
0x1807   :  { %2435 = vrot.lane.b32.xlu1 %v4576_v35, %s4920_s8 }
0x1808   :  { %2437 = vrot.lane.b32.xlu0 %v4574_v23, %s4920_s8 }
0x1827   :  { %2635 = vmax.xlane.f32.xlu0 %v2634_v58 }
0x182b   :  { %2632 = vmax.xlane.f32.xlu1 %v2631_v60  ;;  %2638 = vmax.xlane.f32.xlu0 %v2637_v62 }
0x182f   :  { %2641 = vmax.xlane.f32.xlu1 %v2640_v63 }
0x1877   :  { %v2421_v0 = vpop.xlane.xlu0 %2420 }
0x187b   :  { %v2424_v53 = vpop.xlane.xlu1 %2423  ;;  %v2415_v1 = vpop.xlane.xlu0 %2414 }
0x187c   :  { %3994 = vrcp.f32 %v2424_v53 }
0x187d   :  { %3996 = vrcp.f32 %v2415_v1 }
0x187e   :  { %3998 = vrcp.f32 %v2421_v0 }
0x187f   :  { %v2418_v30 = vpop.xlane.xlu1 %2417  ;;  %v2438_v44 = vpop.permute.xlu0 %2437 }
0x1880   :  { %4000 = vrcp.f32 %v2418_v30  ;;  %3723 = vmatprep.subr.bf16.mxu0 %v2438_v44 }
0x1881   :  { %3724 = vmatpush3.bf16.msra.mxu0 %v2438_v44 }
0x1883   :  { %v2436_v56 = vpop.permute.xlu1 %2435 }
0x1884   :  { %3725 = vmatprep.subr.bf16.mxu0 %v2436_v56 }
0x1885   :  { %3726 = vmatpush3.bf16.msra.mxu0 %v2436_v56  ;;  %v3353_v56 = vld [vmem:[%s4886_s10 + $0x1c] sm:$0xf] }
0x1889   :  { %v3995_v2 = vpop.eup %3994 }
0x188a   :  { %v3997_v5 = vpop.eup %3996  ;;  %v2432_v9 = vmul.f32 %v3995_v2, %v3991_v27  ;;  %v2749_v2 = vsel %vm760_vm3, %v3353_v56, 0 }
0x188b   :  { %v3999_v48 = vpop.eup %3998  ;;  %v2429_v50 = vmul.f32 %v3997_v5, %v3989_v41  ;;  %v3346_v41 = vld [vmem:[%s4886_s10 + $0x18] sm:$0xf] }
0x188c   :  { %v2431_v12 = vmul.f32 %v3999_v48, %v3987_v39  ;;  %3807 = vmatprep.subr.msk.bf16.mxu0 %vm760_vm3, %v3346_v41  ;;  %v2507_v27 = vsel %vm760_vm3, %v3346_v41, 0 }
0x188d   :  { %v4001_v7 = vpop.eup %4000 }
0x188e   :  { %v2430_v11 = vmul.f32 %v4001_v7, %v3993_v22  ;;  %v2434_v17 = vpack.c.bf16 %v2432_v9, %v2431_v12 }
0x1890   :  { %v2433_v13 = vpack.c.bf16 %v2430_v11, %v2429_v50  ;;  %v2309_v11 = vadd.f32 %v2308_v42, %v4720_v8 }
0x1892   :  { %3727 = vmatprep.mubr.msk.bf16.mxu0 %vm162_vm1, %v2433_v13 }
0x1893   :  { %3728 = vmatmul.mubr.msk.bf16.vlgmr.msra.gmra.mxu0 %vm162_vm1, %v2434_v17 }
0x1894   :  { %3732 = vmatpush3.bf16.msra.mxu0 %v2507_v27 }
0x18b0   :  { %v2636_v18 = vpop.xlane.xlu0 %2635 }
0x18b1   :  { %v2644_v4 = vsub.f32 %v2620_v54, %v2636_v18 }
0x18b3   :  { %v2649_v33 = vmul.f32 1.442695, %v2644_v4 }
0x18b4   :  { %v2633_v19 = vpop.xlane.xlu1 %2632  ;;  %v2639_v10 = vpop.xlane.xlu0 %2638 }
0x18b5   :  { %v2643_v61 = vsub.f32 %v2617_v55, %v2633_v19  ;;  %v2645_v6 = vsub.f32 %v2625_v57, %v2639_v10 }
0x18b7   :  { %v2647_v15 = vmul.f32 1.442695, %v2643_v61  ;;  %v2651_v31 = vmul.f32 1.442695, %v2645_v6 }
0x18b8   :  { %v2642_v25 = vpop.xlane.xlu1 %2641 }
0x18b9   :  { %v2646_v32 = vsub.f32 %v2628_v59, %v2642_v25  ;;  %4002 = vpow2.f32 %v2651_v31 }
0x18ba   :  { %4004 = vpow2.f32 %v2647_v15 }
0x18bb   :  { %v2653_v34 = vmul.f32 1.442695, %v2646_v32  ;;  %v3357_v32 = vld [vmem:[%s4887_s11 + $0x1] ss:$0 sm:$0xff] }
0x18bd   :  { %4006 = vpow2.f32 %v2653_v34 }
0x18be   :  { %4008 = vpow2.f32 %v2649_v33 }
0x18c6   :  { %v4003_v20 = vpop.eup %4002 }
0x18c7   :  { %v2661_v36 = vsel %vm162_vm1, %v4003_v20, 0.0  ;;  %v4005_v37 = vpop.eup %4004 }
0x18c8   :  { %2662 = vadd.xlane.f32.xlu0 %v2661_v36  ;;  %v2655_v39 = vsel %vm162_vm1, %v4005_v37, 0.0 }
0x18ca   :  { %v4007_v16 = vpop.eup %4006 }
0x18cb   :  { %v2664_v38 = vsel %vm162_vm1, %v4007_v16, 0.0  ;;  %v4009_v14 = vpop.eup %4008 }
0x18cc   :  { %2665 = vadd.xlane.f32.xlu1 %v2664_v38  ;;  %2656 = vadd.xlane.f32.xlu0 %v2655_v39  ;;  %v2658_v40 = vsel %vm162_vm1, %v4009_v14, 0.0 }
0x18d0   :  { %2659 = vadd.xlane.f32.xlu1 %v2658_v40 }
0x18e1   :  { %2677 = vrot.lane.b32.xlu1 %v4576_v35, %s4921_s29 }
0x18e2   :  { %2679 = vrot.lane.b32.xlu0 %v4574_v23, %s4921_s29 }
0x1951   :  { %v2663_v22 = vpop.xlane.xlu0 %2662 }
0x1953   :  { %v3729_v24 = vpop.f32.mrf.mxu0 }
0x1955   :  { %v2666_v43 = vpop.xlane.xlu1 %2665  ;;  %v2481_v45 = vpop.f32.mrf.mxu0 }
0x1956   :  { %v2657_v46 = vpop.xlane.xlu0 %2656  ;;  %4010 = vrcp.f32 %v2666_v43 }
0x1957   :  { %v3730_v51 = vpop.f32.mrf.mxu0  ;;  %4012 = vrcp.f32 %v2657_v46 }
0x1958   :  { %4014 = vrcp.f32 %v2663_v22  ;;  %v2497_v58 = vpack.c.bf16 %v3730_v51, %v3729_v24 }
0x1959   :  { %v2484_v52 = vpop.f32.mrf.mxu0  ;;  %v2660_v54 = vpop.xlane.xlu1 %2659 }
0x195a   :  { %v2496_v55 = vpack.c.bf16 %v2484_v52, %v2481_v45  ;;  %4016 = vrcp.f32 %v2660_v54  ;;  %v2680_v57 = vpop.permute.xlu0 %2679 }
0x195b   :  { %3745 = vmatprep.subr.bf16.mxu0 %v2680_v57 }
0x195c   :  { %3733 = vmatprep.mubr.msk.bf16.mxu0 %vm402_vm2, %v2496_v55 }
0x195d   :  { %3734 = vmatmul.mubr.msk.bf16.vlgmr.msra.gmra.mxu0 %vm402_vm2, %v2497_v58  ;;  %v2678_v23 = vpop.permute.xlu1 %2677 }
0x195e   :  { %3746 = vmatpush3.bf16.msra.mxu0 %v2680_v57 }
0x195f   :  { %3747 = vmatprep.subr.bf16.mxu0 %v2678_v23 }
0x1962   :  { %3748 = vmatpush3.bf16.msra.mxu0 %v2678_v23 }
0x1963   :  { %v4011_v35 = vpop.eup %4010  ;;  %3810 = vmatprep.subr.msk.bf16.mxu0 %vm760_vm3, %v3353_v56 }
0x1964   :  { %v4013_v59 = vpop.eup %4012  ;;  %v2674_v63 = vmul.f32 %v4011_v35, %v4007_v16 }
0x1965   :  { %v4015_v60 = vpop.eup %4014  ;;  %v2671_v0 = vmul.f32 %v4013_v59, %v4005_v37 }
0x1966   :  { %v2673_v1 = vmul.f32 %v4015_v60, %v4003_v20 }
0x1967   :  { %v4017_v62 = vpop.eup %4016 }
0x1968   :  { %v2672_v53 = vmul.f32 %v4017_v62, %v4009_v14  ;;  %v2676_v44 = vpack.c.bf16 %v2674_v63, %v2673_v1  ;;  %v3840_v63 = vld [vmem:[%s4890_s14 + $0x18] sm:$0xff]  }
0x1969   :  { %3759 = vmatprep.subr.bf16.mxu1 %v3840_v63 }
0x196a   :  { %v2675_v30 = vpack.c.bf16 %v2672_v53, %v2671_v0  ;;  %v3841_v0 = vld [vmem:[%s4890_s14 + $0x10] sm:$0xff]   ;;  %3760 = vmatpush3.bf16.msra.mxu1 %v3840_v63 }
0x196b   :  { %3761 = vmatprep.subr.bf16.mxu1 %v3841_v0 }
0x196c   :  { %3749 = vmatprep.mubr.msk.bf16.mxu0 %vm162_vm1, %v2675_v30 }
0x196d   :  { %3750 = vmatmul.mubr.msk.bf16.vlgmr.msra.gmra.mxu0 %vm162_vm1, %v2676_v44 }
0x196e   :  { %3754 = vmatpush3.bf16.msra.mxu0 %v2749_v2  ;;  %3762 = vmatpush3.bf16.msra.mxu1 %v3841_v0 }
0x1a1d   :  { %v3735_v5 = vpop.f32.mrf.mxu0 }
0x1a1e   :  { %v2560_v48 = vadd.f32 %v3735_v5, %v4714_v3 }
0x1a1f   :  { %v2543_v7 = vpop.f32.mrf.mxu0 }
0x1a20   :  { %v2558_v9 = vadd.f32 %v2543_v7, %v4716_v47 }
0x1a21   :  { %v3736_v50 = vpop.f32.mrf.mxu0 }
0x1a22   :  { %v2561_v12 = vadd.f32 %v3736_v50, %v4718_v49 }
0x1a23   :  { %v2546_v13 = vpop.f32.mrf.mxu0 }
0x1a24   :  { %v2559_v17 = vadd.f32 %v2546_v13, %v2309_v11 }
0x1a2d   :  { %v3751_v18 = vpop.f32.mrf.mxu0 }
0x1a2f   :  { %v2723_v19 = vpop.f32.mrf.mxu0 }
0x1a31   :  { %v3752_v61 = vpop.f32.mrf.mxu0 }
0x1a32   :  { %v2739_v4 = vpack.c.bf16 %v3752_v61, %v3751_v18 }
0x1a33   :  { %v2726_v10 = vpop.f32.mrf.mxu0 }
0x1a34   :  { %v2738_v6 = vpack.c.bf16 %v2726_v10, %v2723_v19  ;;  %v3361_v10 = vld [vmem:[%s4889_s13 + $0x1] ss:$0 sm:$0xff] }
0x1a36   :  { %3755 = vmatprep.mubr.msk.bf16.mxu0 %vm402_vm2, %v2738_v6 }
0x1a37   :  { %3756 = vmatmul.mubr.msk.bf16.vlgmr.msra.gmra.mxu0 %vm402_vm2, %v2739_v4 }
0x1af7   :  { %v3757_v3 = vpop.f32.mrf.mxu0 }
0x1af8   :  { %v2802_v25 = vadd.f32 %v3757_v3, %v2560_v48 }
0x1af9   :  { %v2785_v15 = vpop.f32.mrf.mxu0 }
0x1afa   :  { %v2800_v47 = vadd.f32 %v2785_v15, %v2558_v9  ;;  %v2806_v37 = vadd.f32 %v2802_v25, %v4533_v26 }
0x1afb   :  { %v3758_v31 = vpop.f32.mrf.mxu0 }
0x1afc   :  { %v2804_v8 = vadd.f32 %v2800_v47, %v4530_v21  ;;  %v2803_v49 = vadd.f32 %v3758_v31, %v2561_v12  ;;  %v4791_v39 = vadd.f32 %v3357_v32, %v2806_v37  ;;  %v3842_v37 = vld [vmem:[%s4892_s16 + $0x78] sm:$0xff]  }
0x1afd   :  { %v2788_v33 = vpop.f32.mrf.mxu0  ;;  %3767 = vmatprep.subr.bf16.mxu0 %v3842_v37 }
0x1afe   :  { %v4780_v34 = vadd.f32 %v3357_v32, %v2804_v8  ;;  %v2807_v20 = vadd.f32 %v2803_v49, %v4541_v29  ;;  %v2801_v36 = vadd.f32 %v2788_v33, %v2559_v17  ;;  %v2830_v26 = vsel %vm162_vm1, %v4791_v39, 0.0  ;;  %v3360_v17 = vld [vmem:[%s4888_s12 + $0x1] ss:$0 sm:$0xff]  ;;  %3768 = vmatpush3.bf16.msra.mxu0 %v3842_v37 }
0x1b00   :  { %v4784_v16 = vadd.f32 %v3357_v32, %v2807_v20  ;;  %v2805_v38 = vadd.f32 %v2801_v36, %v4538_v28  ;;  %v2824_v21 = vsel %vm162_vm1, %v4780_v34, 0.0 }
0x1b01   :  { %2825 = vadd.xlane.f32.xlu1 %v2824_v21  ;;  %v3844_v21 = vld [vmem:[%s4892_s16 + $0x68] sm:$0xff]  }
0x1b02   :  { %v4789_v14 = vadd.f32 %v3357_v32, %v2805_v38  ;;  %v2833_v40 = vsel %vm162_vm1, %v4784_v16, 0.0  ;;  %v3843_v38 = vld [vmem:[%s4892_s16 + $0x70] sm:$0xff]  }
0x1b03   :  { %3769 = vmatprep.subr.bf16.mxu0 %v3843_v38 }
0x1b04   :  { %v2827_v29 = vsel %vm162_vm1, %v4789_v14, 0.0  ;;  %3770 = vmatpush3.bf16.msra.mxu0 %v3843_v38 }
0x1b05   :  { %2834 = vadd.xlane.f32.xlu1 %v2833_v40  ;;  %2828 = vadd.xlane.f32.xlu0 %v2827_v29  ;;  %v3845_v40 = vld [vmem:[%s4892_s16 + $0x60] sm:$0xff]   ;;  %v3846_v29 = vld [vmem:[%s4892_s16 + $0x58] sm:$0xff]  }
0x1b06   :  { %3771 = vmatprep.subr.bf16.mxu0 %v3844_v21 }
0x1b08   :  { %3772 = vmatpush3.bf16.msra.mxu0 %v3844_v21 }
0x1b09   :  { %2831 = vadd.xlane.f32.xlu0 %v2830_v26  ;;  %3773 = vmatprep.subr.bf16.mxu0 %v3845_v40  ;;  %v3847_v26 = vld [vmem:[%s4892_s16 + $0x50] sm:$0xff]  }
0x1b0c   :  { %3774 = vmatpush3.bf16.msra.mxu0 %v3845_v40 }
0x1b0d   :  { %3775 = vmatprep.subr.bf16.mxu0 %v3846_v29 }
0x1b10   :  { %3776 = vmatpush3.bf16.msra.mxu0 %v3846_v29 }
0x1b11   :  { %3777 = vmatprep.subr.bf16.mxu0 %v3847_v26 }
0x1b14   :  { %3778 = vmatpush3.bf16.msra.mxu0 %v3847_v26 }
0x1b8a   :  { %v2826_v28 = vpop.xlane.xlu1 %2825 }
0x1b8b   :  { %v2836_v41 = vmul.f32 0.03125, %v2826_v28  ;;  %v3848_v28 = vld [vmem:[%s4892_s16 + $0x48] sm:$0xff]  }
0x1b8c   :  { %3779 = vmatprep.subr.bf16.mxu0 %v3848_v28 }
0x1b8d   :  { %v2840_v27 = vsub.f32 %v4780_v34, %v2836_v41  ;;  %3780 = vmatpush3.bf16.msra.mxu0 %v3848_v28  ;;  %v3849_v41 = vld [vmem:[%s4892_s16 + $0x40] sm:$0xff]  }
0x1b8e   :  { %v2835_v42 = vpop.xlane.xlu1 %2834  ;;  %v2829_v22 = vpop.xlane.xlu0 %2828  ;;  %3781 = vmatprep.subr.bf16.mxu0 %v3849_v41 }
0x1b8f   :  { %v2839_v24 = vmul.f32 0.03125, %v2835_v42  ;;  %v2837_v43 = vmul.f32 0.03125, %v2829_v22  ;;  %v2844_v45 = vmul.f32 %v2840_v27, %v2840_v27 }
0x1b91   :  { %v2843_v46 = vsub.f32 %v4784_v16, %v2839_v24  ;;  %v2841_v51 = vsub.f32 %v4789_v14, %v2837_v43  ;;  %v2848_v52 = vsel %vm162_vm1, %v2844_v45, 0.0  ;;  %3782 = vmatpush3.bf16.msra.mxu0 %v3849_v41 }
0x1b92   :  { %2849 = vadd.xlane.f32.xlu0 %v2848_v52  ;;  %v2832_v54 = vpop.xlane.xlu0 %2831 }
0x1b93   :  { %v2838_v55 = vmul.f32 0.03125, %v2832_v54  ;;  %v2845_v57 = vmul.f32 %v2841_v51, %v2841_v51  ;;  %v2847_v35 = vmul.f32 %v2843_v46, %v2843_v46 }
0x1b95   :  { %v2842_v58 = vsub.f32 %v4791_v39, %v2838_v55  ;;  %v2851_v23 = vsel %vm162_vm1, %v2845_v57, 0.0  ;;  %v2857_v60 = vsel %vm162_vm1, %v2847_v35, 0.0 }
0x1b96   :  { %2852 = vadd.xlane.f32.xlu1 %v2851_v23 }
0x1b97   :  { %v2846_v59 = vmul.f32 %v2842_v58, %v2842_v58 }
0x1b99   :  { %v2854_v62 = vsel %vm162_vm1, %v2846_v59, 0.0 }
0x1b9a   :  { %2858 = vadd.xlane.f32.xlu1 %v2857_v60  ;;  %2855 = vadd.xlane.f32.xlu0 %v2854_v62 }
0x1c1b   :  { %v2850_v53 = vpop.xlane.xlu0 %2849 }
0x1c1c   :  { %v2860_v1 = vmul.f32 0.03125, %v2850_v53 }
0x1c1e   :  { %v2864_v30 = vadd.f32 1e-05, %v2860_v1 }
0x1c1f   :  { %v2853_v44 = vpop.xlane.xlu1 %2852 }
0x1c20   :  { %4018 = vrsqrt.f32 %v2864_v30  ;;  %v2861_v56 = vmul.f32 0.03125, %v2853_v44 }
0x1c22   :  { %v2865_v2 = vadd.f32 1e-05, %v2861_v56 }
0x1c23   :  { %v2859_v5 = vpop.xlane.xlu1 %2858  ;;  %v2856_v48 = vpop.xlane.xlu0 %2855 }
0x1c24   :  { %4020 = vrsqrt.f32 %v2865_v2  ;;  %v2863_v7 = vmul.f32 0.03125, %v2859_v5  ;;  %v2862_v9 = vmul.f32 0.03125, %v2856_v48 }
0x1c26   :  { %v2867_v50 = vadd.f32 1e-05, %v2863_v7  ;;  %v2866_v11 = vadd.f32 1e-05, %v2862_v9 }
0x1c28   :  { %4022 = vrsqrt.f32 %v2867_v50 }
0x1c29   :  { %4024 = vrsqrt.f32 %v2866_v11 }
0x1c2d   :  { %v4019_v12 = vpop.eup %4018 }
0x1c2e   :  { %v2872_v13 = vmul.f32 %v4019_v12, %v2840_v27  ;;  %v3367_v27 = vld [vmem:[%s4891_s15 + $0x1] ss:$0 sm:$0xff] }
0x1c30   :  { %v2882_v61 = vmul.f32 %v3360_v17, %v2872_v13 }
0x1c31   :  { %v4021_v18 = vpop.eup %4020 }
0x1c32   :  { %v2873_v19 = vmul.f32 %v4021_v18, %v2841_v51  ;;  %v2892_v47 = vadd.f32 %v3361_v10, %v2882_v61 }
0x1c34   :  { %v2883_v6 = vmul.f32 %v3360_v17, %v2873_v19 }
0x1c35   :  { %v4023_v4 = vpop.eup %4022 }
0x1c36   :  { %v4025_v3 = vpop.eup %4024  ;;  %v2875_v15 = vmul.f32 %v4023_v4, %v2843_v46  ;;  %v2893_v31 = vadd.f32 %v3361_v10, %v2883_v6 }
0x1c37   :  { %v2874_v25 = vmul.f32 %v4025_v3, %v2842_v58 }
0x1c38   :  { %v2896_v8 = vpack.c.bf16 %v2893_v31, %v2892_v47  ;;  %v2885_v49 = vmul.f32 %v3360_v17, %v2875_v15 }
0x1c39   :  { %v2884_v32 = vmul.f32 %v3360_v17, %v2874_v25 }
0x1c3a   :  { %3763 = vmatprep.mubr.msk.bf16.mxu1 %vm162_vm1, %v2896_v8  ;;  %v2895_v33 = vadd.f32 %v3361_v10, %v2885_v49 }
0x1c3b   :  { %v2894_v20 = vadd.f32 %v3361_v10, %v2884_v32  ;;  %v3389_v32 = vld [vmem:[%s4893_s17 + $0x1] ss:$0 sm:$0xff] }
0x1c3d   :  { %v2897_v36 = vpack.c.bf16 %v2895_v33, %v2894_v20 }
0x1c3f   :  { %3764 = vmatmul.mubr.msk.bf16.vlgmr.msra.gmra.mxu1 %vm162_vm1, %v2897_v36 }
0x1cff   :  { %v3765_v42 = vpop.f32.mrf.mxu1 }
0x1d00   :  { %v2972_v22 = vadd.f32 %v3765_v42, %v3367_v27 }
0x1d01   :  { %v2963_v24 = vpop.f32.mrf.mxu1 }
0x1d02   :  { %v2980_v43 = vmul.f32 %v2972_v22, %v2972_v22  ;;  %v2964_v45 = vadd.f32 %v3367_v27, %v2963_v24 }
0x1d03   :  { %v3766_v46 = vpop.f32.mrf.mxu1 }
0x1d04   :  { %v2984_v51 = vmul.f32 %v2980_v43, %v2972_v22  ;;  %v2978_v52 = vmul.f32 %v2964_v45, %v2964_v45  ;;  %v2975_v54 = vadd.f32 %v3766_v46, %v3367_v27 }
0x1d05   :  { %v2966_v55 = vpop.f32.mrf.mxu1 }
0x1d06   :  { %v2988_v57 = vmul.f32 0.044715, %v2984_v51  ;;  %v2982_v58 = vmul.f32 %v2978_v52, %v2964_v45  ;;  %v2981_v23 = vmul.f32 %v2975_v54, %v2975_v54  ;;  %v2967_v35 = vadd.f32 %v3367_v27, %v2966_v55 }
0x1d08   :  { %v2992_v59 = vadd.f32 %v2988_v57, %v2972_v22  ;;  %v2986_v60 = vmul.f32 0.044715, %v2982_v58  ;;  %v2985_v62 = vmul.f32 %v2981_v23, %v2975_v54  ;;  %v2979_v63 = vmul.f32 %v2967_v35, %v2967_v35 }
0x1d0a   :  { %v2996_v0 = vmul.f32 0.7978846, %v2992_v59  ;;  %v2990_v53 = vadd.f32 %v2986_v60, %v2964_v45  ;;  %v2989_v1 = vmul.f32 0.044715, %v2985_v62  ;;  %v2983_v30 = vmul.f32 %v2979_v63, %v2967_v35 }
0x1d0c   :  { %v2994_v44 = vmul.f32 0.7978846, %v2990_v53  ;;  %v2993_v56 = vadd.f32 %v2989_v1, %v2975_v54  ;;  %v2987_v2 = vmul.f32 0.044715, %v2983_v30  ;;  %4026 = vtanh.f32 %v2996_v0 }
0x1d0e   :  { %4028 = vtanh.f32 %v2994_v44  ;;  %v2997_v5 = vmul.f32 0.7978846, %v2993_v56  ;;  %v2991_v48 = vadd.f32 %v2987_v2, %v2967_v35 }
0x1d10   :  { %4030 = vtanh.f32 %v2997_v5  ;;  %v2995_v7 = vmul.f32 0.7978846, %v2991_v48 }
0x1d12   :  { %4032 = vtanh.f32 %v2995_v7 }
0x1d19   :  { %v4027_v9 = vpop.eup %4026 }
0x1d1a   :  { %v3004_v13 = vadd.f32 1.0, %v4027_v9 }
0x1d1b   :  { %v4029_v50 = vpop.eup %4028 }
0x1d1c   :  { %v3002_v11 = vadd.f32 1.0, %v4029_v50  ;;  %v3008_v6 = vmul.f32 0.5, %v3004_v13  ;;  %v3398_v13 = vld [vmem:[%s4894_s18] ss:$0 sm:$0xff]  ;;  %s4079_s18 = smov [#allocation2]  }
0x1d1d   :  { %v4031_v12 = vpop.eup %4030 }
0x1d1e   :  { %v3005_v17 = vadd.f32 1.0, %v4031_v12  ;;  %v3006_v10 = vmul.f32 0.5, %v3002_v11  ;;  %v3012_v31 = vmul.f32 %v3008_v6, %v2972_v22 }
0x1d1f   :  { %v4033_v18 = vpop.eup %4032 }
0x1d20   :  { %v3009_v19 = vmul.f32 0.5, %v3005_v17  ;;  %v3003_v61 = vadd.f32 1.0, %v4033_v18  ;;  %v3010_v15 = vmul.f32 %v3006_v10, %v2964_v45 }
0x1d22   :  { %v3007_v4 = vmul.f32 0.5, %v3003_v61  ;;  %v3013_v3 = vmul.f32 %v3009_v19, %v2975_v54  ;;  %v3399_v61 = vld [vmem:[%s4895_s19] ss:$0 sm:$0xff]  ;;  %s3247_s19 = sshll.u32 %s4079_s18, 4  ;;  %s3248_s19 = int_to_ptr.vmem [resolvable:$true] %s3247_s19 }
0x1d23   :  { %s4046_s14 = scalar_lea.vmem %s3248_s19, 32  ;;  %p4051_p1 = scmp.lt.s32.totalorder %s3248_s19, %s3248_s19 }
0x1d24   :  { %v3011_v47 = vmul.f32 %v3007_v4, %v2967_v35  ;;  %v3015_v8 = vpack.c.bf16 %v3013_v3, %v3012_v31  ;;  %p4047_p0 = scmp.ne.s32.totalorder %s3248_s19, %s4046_s14  ;;  %p4052_p2 = scmp.lt.s32.totalorder %s4046_s14, %s4046_s14 }
0x1d26   :  { %v3014_v25 = vpack.c.bf16 %v3011_v47, %v3010_v15  ;;  %p4053_p3 = por %p4052_p2, %p4051_p1 }
0x1d28   :  { %3783 = vmatprep.mubr.bf16.mxu0 %v3014_v25  ;;  %p4054_p4 = pnand %p4053_p3, %p4047_p0 }
0x1d29   :  { %3784 = vmatmul.mubr.bf16.vlgmr.msra.gmra.mxu0 %v3015_v8 }
0x1de9   :  { %v3785_v49 = vpop.f32.mrf.mxu0 }
0x1dea   :  { %v3132_v20 = vadd.f32 %v3785_v49, %v3389_v32 }
0x1deb   :  { %v3123_v33 = vpop.f32.mrf.mxu0 }
0x1dec   :  { %v3124_v36 = vadd.f32 %v3389_v32, %v3123_v33  ;;  %v3140_v40 = vadd.f32 %v3132_v20, %v4791_v39 }
0x1ded   :  { %v3786_v37 = vpop.f32.mrf.mxu0 }
0x1dee   :  { %v3138_v38 = vadd.f32 %v3124_v36, %v4780_v34  ;;  %v3135_v29 = vadd.f32 %v3786_v37, %v3389_v32  ;;  %v3150_v22 = vsel %vm162_vm1, %v3140_v40, 0.0 }
0x1def   :  { %v3126_v21 = vpop.f32.mrf.mxu0 }
0x1df0   :  { %v3127_v26 = vadd.f32 %v3389_v32, %v3126_v21  ;;  %v3144_v28 = vsel %vm162_vm1, %v3138_v38, 0.0  ;;  %v3141_v27 = vadd.f32 %v3135_v29, %v4784_v16 }
0x1df1   :  { %3145 = vadd.xlane.f32.xlu0 %v3144_v28 }
0x1df2   :  { %v3139_v41 = vadd.f32 %v3127_v26, %v4789_v14  ;;  %v3153_v34 = vsel %vm162_vm1, %v3141_v27, 0.0 }
0x1df4   :  { %v3147_v42 = vsel %vm162_vm1, %v3139_v41, 0.0 }
0x1df5   :  { %3148 = vadd.xlane.f32.xlu1 %v3147_v42  ;;  %3151 = vadd.xlane.f32.xlu0 %v3150_v22 }
0x1df9   :  { %3154 = vadd.xlane.f32.xlu1 %v3153_v34 }
0x1e7a   :  { %v3146_v24 = vpop.xlane.xlu0 %3145 }
0x1e7b   :  { %v3156_v39 = vmul.f32 0.03125, %v3146_v24 }
0x1e7d   :  { %v3160_v43 = vsub.f32 %v3138_v38, %v3156_v39 }
0x1e7e   :  { %v3149_v45 = vpop.xlane.xlu1 %3148  ;;  %v3152_v46 = vpop.xlane.xlu0 %3151 }
0x1e7f   :  { %v3157_v51 = vmul.f32 0.03125, %v3149_v45  ;;  %v3158_v52 = vmul.f32 0.03125, %v3152_v46  ;;  %v3164_v54 = vmul.f32 %v3160_v43, %v3160_v43 }
0x1e81   :  { %v3161_v14 = vsub.f32 %v3139_v41, %v3157_v51  ;;  %v3162_v55 = vsub.f32 %v3140_v40, %v3158_v52  ;;  %v3168_v16 = vsel %vm162_vm1, %v3164_v54, 0.0 }
0x1e82   :  { %v3155_v57 = vpop.xlane.xlu1 %3154  ;;  %3169 = vadd.xlane.f32.xlu0 %v3168_v16 }
0x1e83   :  { %v3159_v58 = vmul.f32 0.03125, %v3155_v57  ;;  %v3165_v23 = vmul.f32 %v3161_v14, %v3161_v14  ;;  %v3166_v35 = vmul.f32 %v3162_v55, %v3162_v55 }
0x1e85   :  { %v3163_v59 = vsub.f32 %v3141_v27, %v3159_v58  ;;  %v3171_v60 = vsel %vm162_vm1, %v3165_v23, 0.0  ;;  %v3174_v62 = vsel %vm162_vm1, %v3166_v35, 0.0 }
0x1e86   :  { %3172 = vadd.xlane.f32.xlu1 %v3171_v60  ;;  %3175 = vadd.xlane.f32.xlu0 %v3174_v62 }
0x1e87   :  { %v3167_v63 = vmul.f32 %v3163_v59, %v3163_v59 }
0x1e89   :  { %v3177_v0 = vsel %vm162_vm1, %v3167_v63, 0.0 }
0x1e8a   :  { %3178 = vadd.xlane.f32.xlu1 %v3177_v0 }
0x1f0b   :  { %v3170_v53 = vpop.xlane.xlu0 %3169 }
0x1f0c   :  { %v3180_v1 = vmul.f32 0.03125, %v3170_v53 }
0x1f0e   :  { %v3184_v30 = vadd.f32 1e-05, %v3180_v1 }
0x1f0f   :  { %v3173_v44 = vpop.xlane.xlu1 %3172  ;;  %v3176_v56 = vpop.xlane.xlu0 %3175 }
0x1f10   :  { %4034 = vrsqrt.f32 %v3184_v30  ;;  %v3181_v2 = vmul.f32 0.03125, %v3173_v44  ;;  %v3182_v5 = vmul.f32 0.03125, %v3176_v56 }
0x1f12   :  { %v3185_v48 = vadd.f32 1e-05, %v3181_v2  ;;  %v3186_v7 = vadd.f32 1e-05, %v3182_v5 }
0x1f13   :  { %v3179_v9 = vpop.xlane.xlu1 %3178 }
0x1f14   :  { %4036 = vrsqrt.f32 %v3185_v48  ;;  %v3183_v50 = vmul.f32 0.03125, %v3179_v9 }
0x1f15   :  { %4038 = vrsqrt.f32 %v3186_v7 }
0x1f16   :  { %v3187_v11 = vadd.f32 1e-05, %v3183_v50 }
0x1f18   :  { %4040 = vrsqrt.f32 %v3187_v11 }
0x1f1d   :  { %v4035_v12 = vpop.eup %4034 }
0x1f1e   :  { %v3192_v17 = vmul.f32 %v4035_v12, %v3160_v43 }
0x1f20   :  { %v3202_v18 = vmul.f32 %v3398_v13, %v3192_v17 }
0x1f21   :  { %v4037_v19 = vpop.eup %4036 }
0x1f22   :  { %v4039_v10 = vpop.eup %4038  ;;  %v3193_v6 = vmul.f32 %v4037_v19, %v3161_v14  ;;  %v3212_v15 = vadd.f32 %v3399_v61, %v3202_v18 }
0x1f23   :  { %v3194_v4 = vmul.f32 %v4039_v10, %v3162_v55 }
0x1f24   :  { %v3203_v3 = vmul.f32 %v3398_v13, %v3193_v6  ;;  %v3216_v33 = vsel %vm162_vm1, %v3212_v15, 0.0 }
0x1f25   :  { %v4041_v47 = vpop.eup %4040  ;;  %v3204_v31 = vmul.f32 %v3398_v13, %v3194_v4 }
0x1f26   :  { %v3195_v25 = vmul.f32 %v4041_v47, %v3163_v59  ;;  %v3213_v8 = vadd.f32 %v3399_v61, %v3203_v3 }
0x1f27   :  { %v3214_v32 = vadd.f32 %v3399_v61, %v3204_v31 }
0x1f28   :  { %v3205_v49 = vmul.f32 %v3398_v13, %v3195_v25  ;;  %v3217_v20 = vsel %vm162_vm1, %v3213_v8, 0.0 }
0x1f29   :  { %v3218_v36 = vadd.f32 %v3217_v20, %v3216_v33  ;;  %v3227_v21 = vsel %vm162_vm1, %v3214_v32, 0.0 }
0x1f2a   :  { %v3215_v37 = vadd.f32 %v3399_v61, %v3205_v49 }
0x1f2b   :  { %v3219_v38 = vrot.slane %v3218_v36, 4 }
0x1f2c   :  { %v3228_v40 = vsel %vm162_vm1, %v3215_v37, 0.0 }
0x1f2d   :  { %v3220_v29 = vadd.f32 %v3219_v38, %v3218_v36  ;;  %v3229_v26 = vadd.f32 %v3228_v40, %v3227_v21 }
0x1f2f   :  { %v3221_v28 = vrot.slane %v3220_v29, 2  ;;  %v3230_v41 = vrot.slane %v3229_v26, 4 }
0x1f31   :  { %v3222_v27 = vadd.f32 %v3221_v28, %v3220_v29  ;;  %v3231_v42 = vadd.f32 %v3230_v41, %v3229_v26 }
0x1f33   :  { %v3223_v22 = vrot.slane %v3222_v27, 1  ;;  %v3232_v34 = vrot.slane %v3231_v42, 2 }
0x1f35   :  { %v3233_v24 = vadd.f32 %v3232_v34, %v3231_v42  ;;  %v3224_v39 = vadd.f32 %v3223_v22, %v3222_v27 }
0x1f37   :  { %v3234_v43 = vrot.slane %v3233_v24, 1  ;;  %v3226_v46 = vmul.f32 0.0625, %v3224_v39 }
0x1f39   :  { %v3235_v45 = vadd.f32 %v3234_v43, %v3233_v24 }
0x1f3b   :  { %v3236_v51 = vmul.f32 0.0625, %v3235_v45 }
0x1f3d   :  { %v3238_v52 = vsel %vm3237_vm4, %v3226_v46, %v3236_v51 }
0x1f3e   :  { %3240 = vst.msk [vmem:[#allocation2] sm:$0x3] %vm3239_vm5, %v3238_v52 }
0x1f3f   :  { %4057 = shalt.err (!%p4054_p4)
}
0x1f40   :  { %3250 = dma.vmem_to_hbm [thread:$0]  %s3248_s19, 32, %s4896_s20, [#allocation3]  }
0x1f41   :  { %4066 = dma.done.wait [#allocation3], 32  }
0x1f42   :  { %4067 = vsyncadd [#allocation3], 4294967264 }
0x1f43   :  { %3254 = vsyncpa [#allocation3], 1 }

</bundles_post_ra>
